<compile_context>
chip_gen: v5e
topology: v5e:2x2
jax: 0.10.0
libtpu: 0.0.40
codegen_flags: <defaults>
</compile_context>

<pallas_src>
import jax
import jax.numpy as jnp
from jax import lax
from jax.experimental import pallas as pl
from jax.experimental.pallas import tpu as pltpu

# --- Loihi CUBA neuron parameters (normally parsed from network.yaml) -------
I_DECAY = 1024            # current decay, Loihi units (out of 4096)
V_DECAY = 128             # voltage decay, Loihi units (out of 4096)
VTH_MANT = 10             # threshold mantissa
W_SCALE = 64.0            # weight scale = 2**(6 + wgtExp), wgtExp = 0
THETA = VTH_MANT * 64.0   # scaled threshold
ALPHA_I = (4096.0 - I_DECAY) / 4096.0
ALPHA_V = (4096.0 - V_DECAY) / 4096.0
# TODO(synk): Loihi uses 12-bit fixed-point decays with truncation; approximated in f32.

N_IN = 16
N_HID = 128
B_TILE = 32                # batch rows per grid step -> 4 independent (8,128) vregs per LIF step
LIF_UNROLL = 4             # static unroll of the serial LIF recurrence (ILP w/o spills)
MAX_FLOOR_DELAY = 2        # delays initialised in [0, 3) -> floor(delay) in {0,1,2}
PAD = MAX_FLOOR_DELAY + 2  # max whole-sample history needed after fusing delayShift(1): 4
T_TILE_MAX = 128           # timesteps per grid step (decouples VMEM from T)
VMEM_LIMIT_BYTES = 48 * 1024 * 1024   # safe on v5e/v6e (128 MiB) and v7x (64 MiB physical)


def _lif_loihi(z_ref, s_ref, u_ref, v_ref, t_len):
    """Loihi CUBA LIF over t_len steps.

    Reads weighted drive z_ref[t] (B,128) f32, carries (u, v) state in
    u_ref/v_ref (persistent across T tiles), writes binary spikes (bf16) to
    s_ref[t + PAD]; rows [0, PAD) of s_ref hold the previous tile's halo.
    """
    def step(t, carry):
        u, v = carry
        u = ALPHA_I * u + z_ref[t]
        v = ALPHA_V * v + u
        fire = v >= THETA                       # TODO(synk): verify >= vs > against SLAYER spikeLoihi
        s_ref[t + PAD] = jnp.where(fire, 1.0, 0.0).astype(s_ref.dtype)  # amplitude 1/TS == 1
        v = jnp.where(fire, 0.0, v)             # reset on spike
        return u, v

    def chunk(c, carry):
        t0 = pl.multiple_of(c * LIF_UNROLL, LIF_UNROLL)
        for i in range(LIF_UNROLL):             # static unroll -> LLO scheduler visibility
            carry = step(t0 + i, carry)
        return carry

    carry = (u_ref[...], v_ref[...])
    n_chunks = t_len // LIF_UNROLL
    carry = lax.fori_loop(0, n_chunks, chunk, carry)
    carry = lax.fori_loop(n_chunks * LIF_UNROLL, t_len, step, carry)  # tail (0 trips here)
    u_fin, v_fin = carry
    u_ref[...] = u_fin
    v_ref[...] = v_fin


def emg_feature_kernel(z1_ref, w2f_ref, c2_ref, out_ref,
                       z2_scr, s1_scr, s2_scr, u1, v1, u2, v2):
    T_TILE = z1_ref.shape[0]
    B = z1_ref.shape[1]

    # New batch tile (t-tile index 0): reset LIF state and clear the spike halos.
    @pl.when(pl.program_id(1) == 0)
    def _():
        u1[...] = jnp.zeros_like(u1)
        v1[...] = jnp.zeros_like(v1)
        u2[...] = jnp.zeros_like(u2)
        v2[...] = jnp.zeros_like(v2)
        s1_scr[pl.ds(0, PAD)] = jnp.zeros((PAD, B, N_HID), s1_scr.dtype)
        s2_scr[pl.ds(0, PAD)] = jnp.zeros((PAD, B, N_HID), s2_scr.dtype)

    # Layer 1 LIF (fc1 hoisted to the wrapper; z1 already includes W_SCALE).
    _lif_loihi(z1_ref, s1_scr, u1, v1, T_TILE)

    # delayShift(1) + delay1 + fc2, fused:
    #   z2[t] = sum_{j=1..PAD} s1[t-j] @ (diag(c1_j) * W_SCALE * W2)
    # Binary bf16 spikes x bf16 folded weights -> native MXU matmuls.
    z2 = jnp.dot(s1_scr[pl.ds(PAD - 1, T_TILE)].reshape(T_TILE * B, N_HID),
                 w2f_ref[0], preferred_element_type=jnp.float32)
    for j in range(2, PAD + 1):
        z2 = z2 + jnp.dot(s1_scr[pl.ds(PAD - j, T_TILE)].reshape(T_TILE * B, N_HID),
                          w2f_ref[j - 1], preferred_element_type=jnp.float32)
    z2_scr[...] = z2.reshape(T_TILE, B, N_HID)

    # Layer 2 LIF.
    _lif_loihi(z2_scr, s2_scr, u2, v2, T_TILE)

    # delayShift(1) + delay2 -> fractionally interpolated output spikes.
    out = c2_ref[0] * s2_scr[pl.ds(PAD - 1, T_TILE)].astype(jnp.float32)
    for j in range(2, PAD + 1):
        out = out + c2_ref[j - 1] * s2_scr[pl.ds(PAD - j, T_TILE)].astype(jnp.float32)
    out_ref[...] = out

    # Roll the last PAD spike rows into the halo for the next T tile.
    s1_scr[pl.ds(0, PAD)] = s1_scr[pl.ds(T_TILE, PAD)]
    s2_scr[pl.ds(0, PAD)] = s2_scr[pl.ds(T_TILE, PAD)]


def _delay_coeffs(d):
    """Per-neuron delays -> (PAD, 1, 128) interpolation coefficients.

    Fuses delayShift(spike, 1): total shift D = 1 + d, k = floor(D), f = D - k;
    out[t] = (1-f)*s[t-k] + f*s[t-k-1]  ==  sum_{j=1..PAD} c[j-1] * s[t-j].
    Delays are clamped to [0, MAX_FLOOR_DELAY + 1] so no contribution is dropped.
    """
    d = jnp.clip(jnp.asarray(d, jnp.float32).reshape(-1),
                 0.0, float(MAX_FLOOR_DELAY + 1))
    D = d + 1.0
    k = jnp.floor(D)
    f = D - k
    j = jnp.arange(1, PAD + 1, dtype=jnp.float32)[:, None]      # (PAD, 1)
    c = (jnp.where(j == k[None, :], 1.0 - f[None, :], 0.0)
         + jnp.where(j == k[None, :] + 1.0, f[None, :], 0.0))
    return c.reshape(PAD, 1, N_HID)


def emg_feature_forward(spike, w1_t, w2_t, d1, d2, *, time_major_out=False):
    """spike: (N, 16, 1, 1, T) f32 -> (N, 128, 1, 1, T) f32.

    w1_t: (16, 128)  = transpose of the PyTorch fc1 weight (128,16,1,1,1)
    w2_t: (128, 128) = transpose of the PyTorch fc2 weight (128,128,1,1,1)
    d1, d2: per-neuron delays (128 values each)
    time_major_out=True returns (T, N, 128) and skips the final HBM transpose pass.
    """
    N = spike.shape[0]
    T = spike.shape[-1]

    # fc1 hoisted to XLA (K=16 is a poor MXU fit and its kernel input block would be
    # lane-padded 16->128 in VMEM anyway). W_SCALE folded into the weights.
    x = spike.reshape(N, N_IN, T).transpose(2, 0, 1).astype(jnp.float32)   # (T, N, 16)
    w1s = jnp.asarray(w1_t, jnp.float32) * W_SCALE
    z1 = jnp.dot(x, w1s)                                                   # (T, N, 128)

    # delayShift(1) + delay1 folded into PAD bf16 pre-scaled fc2 weights.
    # TODO(synk): bf16 folded fc2 weights (spikes stay exact) may flip spikes that are
    # borderline at the threshold vs the f32 PyTorch reference.
    c1 = _delay_coeffs(d1)                                                 # (PAD, 1, 128)
    w2s = jnp.asarray(w2_t, jnp.float32) * W_SCALE                         # (128, 128)
    w2f = (c1.reshape(PAD, N_HID, 1) * w2s[None]).astype(jnp.bfloat16)     # (PAD, 128, 128)
    c2 = _delay_coeffs(d2)                                                 # (PAD, 1, 128)

    # Pad batch and time to tile multiples (zero drive -> no effect on causal outputs).
    if T <= T_TILE_MAX:
        t_tile = max(PAD, pl.cdiv(T, LIF_UNROLL) * LIF_UNROLL)
    else:
        t_tile = T_TILE_MAX
    Tp = pl.cdiv(T, t_tile) * t_tile
    Np = pl.cdiv(N, B_TILE) * B_TILE
    z1 = jnp.pad(z1, ((0, Tp - T), (0, Np - N), (0, 0)))

    out = pl.pallas_call(
        emg_feature_kernel,
        out_shape=jax.ShapeDtypeStruct((Tp, Np, N_HID), jnp.float32),
        grid_spec=pltpu.PrefetchScalarGridSpec(
            num_scalar_prefetch=0,
            grid=(Np // B_TILE, Tp // t_tile),
            in_specs=[
                pl.BlockSpec((t_tile, B_TILE, N_HID), lambda b, t: (t, b, 0)),
                pl.BlockSpec((PAD, N_HID, N_HID), lambda b, t: (0, 0, 0)),
                pl.BlockSpec((PAD, 1, N_HID), lambda b, t: (0, 0, 0)),
            ],
            out_specs=pl.BlockSpec((t_tile, B_TILE, N_HID), lambda b, t: (t, b, 0)),
            scratch_shapes=[
                pltpu.VMEM((t_tile, B_TILE, N_HID), jnp.float32),           # fc2 drive z2
                pltpu.VMEM((t_tile + PAD, B_TILE, N_HID), jnp.bfloat16),    # layer-1 spikes + halo
                pltpu.VMEM((t_tile + PAD, B_TILE, N_HID), jnp.bfloat16),    # layer-2 spikes + halo
                pltpu.VMEM((B_TILE, N_HID), jnp.float32),                   # u1 (carried)
                pltpu.VMEM((B_TILE, N_HID), jnp.float32),                   # v1 (carried)
                pltpu.VMEM((B_TILE, N_HID), jnp.float32),                   # u2 (carried)
                pltpu.VMEM((B_TILE, N_HID), jnp.float32),                   # v2 (carried)
            ]),
        compiler_params=pltpu.CompilerParams(
            dimension_semantics=("parallel", "arbitrary"),  # batch tiles shard across TCs
            vmem_limit_bytes=VMEM_LIMIT_BYTES),
    )(z1, w2f, c2)

    out = out[:T, :N]                                 # drop time/batch padding; (T, N, 128)
    if time_major_out:
        return out
    # Back to PyTorch layout (N, 128, 1, 1, T).
    return out.transpose(1, 2, 0).reshape(N, N_HID, 1, 1, T)


if __name__ == "__main__":
    key = jax.random.PRNGKey(0)
    k1, k2, k3, k4, k5 = jax.random.split(key, 5)

    N, T = 2, 32
    # binary input spike trains, PyTorch layout (N, C, H, W, T) with C*H*W = 16
    spike = (jax.random.uniform(k1, (N, N_IN, 1, 1, T)) < 0.3).astype(jnp.float32)

    # deterministic synthetic parameters (stand-ins for the .npy checkpoints)
    w1 = 0.5 * jax.random.normal(k2, (N_HID, N_IN), jnp.float32)    # fc1 (128,16,1,1,1)
    w2 = 0.2 * jax.random.normal(k3, (N_HID, N_HID), jnp.float32)   # fc2 (128,128,1,1,1)
    d1 = jax.random.uniform(k4, (1, N_HID), jnp.float32, 0.0, 3.0)  # delay1 (128,)
    d2 = jax.random.uniform(k5, (1, N_HID), jnp.float32, 0.0, 3.0)  # delay2 (128,)

    out = emg_feature_forward(spike, w1.T, w2.T, d1, d2)
    jax.block_until_ready(out)
    assert out.shape == (N, N_HID, 1, 1, T)
    assert out.dtype == jnp.float32
    assert bool(jnp.all(jnp.isfinite(out)))
    print("KERNEL_OK")
</pallas_src>

<mosaic_0001>
module attributes {stable_mosaic.version = 11 : i64} {
  func.func @emg_feature_kernel(%arg0: i32, %arg1: i32, %arg2: memref<32x32x128xf32, #tpu.memory_space<vmem>>, %arg3: memref<4x128x128xbf16, #tpu.memory_space<vmem>>, %arg4: memref<4x1x128xf32, #tpu.memory_space<vmem>>, %arg5: memref<32x32x128xf32, #tpu.memory_space<vmem>>, %arg6: memref<32x32x128xf32, #tpu.memory_space<vmem>>, %arg7: memref<36x32x128xbf16, #tpu.memory_space<vmem>>, %arg8: memref<36x32x128xbf16, #tpu.memory_space<vmem>>, %arg9: memref<32x128xf32, #tpu.memory_space<vmem>>, %arg10: memref<32x128xf32, #tpu.memory_space<vmem>>, %arg11: memref<32x128xf32, #tpu.memory_space<vmem>>, %arg12: memref<32x128xf32, #tpu.memory_space<vmem>>) attributes {dimension_semantics = [#tpu.dimension_semantics<parallel>, #tpu.dimension_semantics<arbitrary>], iteration_bounds = array<i64: 1, 1>, scalar_prefetch = 0 : i64, scratch_operands = 7 : i64, tpu.core_type = #tpu.core_type<tc>, window_params = [{transform_indices = @transform_0, window_bounds = array<i64: 32, 32, 128>}, {pipeline_mode = #tpu.pipeline_mode<synchronous>, transform_indices = @transform_1, window_bounds = array<i64: 4, 128, 128>}, {pipeline_mode = #tpu.pipeline_mode<synchronous>, transform_indices = @transform_2, window_bounds = array<i64: 4, 1, 128>}, {transform_indices = @transform_3, window_bounds = array<i64: 32, 32, 128>}]} {
    %c0_i32 = arith.constant 0 : i32
    %0 = arith.cmpi eq, %arg1, %c0_i32 : i32
    %1 = arith.extui %0 : i1 to i32
    %c0_i32_0 = arith.constant 0 : i32
    %2 = arith.cmpi ne, %1, %c0_i32_0 : i32
    scf.if %2 {
      %cst_94 = arith.constant 0.000000e+00 : f32
      %80 = vector.broadcast %cst_94 : f32 to vector<32x128xf32>
      %c0_95 = arith.constant 0 : index
      %c0_96 = arith.constant 0 : index
      %81 = vector.load %arg9[%c0_95, %c0_96] : memref<32x128xf32, #tpu.memory_space<vmem>>, vector<32x128xf32>
      tpu.vector_store %arg9[%c0_95, %c0_96], %80 {strides = array<i32>} : memref<32x128xf32, #tpu.memory_space<vmem>>, vector<32x128xf32>,
      %cst_97 = arith.constant 0.000000e+00 : f32
      %82 = vector.broadcast %cst_97 : f32 to vector<32x128xf32>
      %c0_98 = arith.constant 0 : index
      %c0_99 = arith.constant 0 : index
      %83 = vector.load %arg10[%c0_98, %c0_99] : memref<32x128xf32, #tpu.memory_space<vmem>>, vector<32x128xf32>
      tpu.vector_store %arg10[%c0_98, %c0_99], %82 {strides = array<i32>} : memref<32x128xf32, #tpu.memory_space<vmem>>, vector<32x128xf32>,
      %cst_100 = arith.constant 0.000000e+00 : f32
      %84 = vector.broadcast %cst_100 : f32 to vector<32x128xf32>
      %c0_101 = arith.constant 0 : index
      %c0_102 = arith.constant 0 : index
      %85 = vector.load %arg11[%c0_101, %c0_102] : memref<32x128xf32, #tpu.memory_space<vmem>>, vector<32x128xf32>
      tpu.vector_store %arg11[%c0_101, %c0_102], %84 {strides = array<i32>} : memref<32x128xf32, #tpu.memory_space<vmem>>, vector<32x128xf32>,
      %cst_103 = arith.constant 0.000000e+00 : f32
      %86 = vector.broadcast %cst_103 : f32 to vector<32x128xf32>
      %c0_104 = arith.constant 0 : index
      %c0_105 = arith.constant 0 : index
      %87 = vector.load %arg12[%c0_104, %c0_105] : memref<32x128xf32, #tpu.memory_space<vmem>>, vector<32x128xf32>
      tpu.vector_store %arg12[%c0_104, %c0_105], %86 {strides = array<i32>} : memref<32x128xf32, #tpu.memory_space<vmem>>, vector<32x128xf32>,
      %cst_106 = arith.constant 0.000000e+00 : bf16
      %88 = vector.broadcast %cst_106 : bf16 to vector<4x32x128xbf16>
      %c0_107 = arith.constant 0 : index
      %c0_108 = arith.constant 0 : index
      %c0_109 = arith.constant 0 : index
      %89 = vector.load %arg7[%c0_107, %c0_108, %c0_109] : memref<36x32x128xbf16, #tpu.memory_space<vmem>>, vector<4x32x128xbf16>
      tpu.vector_store %arg7[%c0_107, %c0_108, %c0_109], %88 {strides = array<i32>} : memref<36x32x128xbf16, #tpu.memory_space<vmem>>, vector<4x32x128xbf16>,
      %cst_110 = arith.constant 0.000000e+00 : bf16
      %90 = vector.broadcast %cst_110 : bf16 to vector<4x32x128xbf16>
      %c0_111 = arith.constant 0 : index
      %c0_112 = arith.constant 0 : index
      %c0_113 = arith.constant 0 : index
      %91 = vector.load %arg8[%c0_111, %c0_112, %c0_113] : memref<36x32x128xbf16, #tpu.memory_space<vmem>>, vector<4x32x128xbf16>
      tpu.vector_store %arg8[%c0_111, %c0_112, %c0_113], %90 {strides = array<i32>} : memref<36x32x128xbf16, #tpu.memory_space<vmem>>, vector<4x32x128xbf16>,
    } else {
    }
    %c0 = arith.constant 0 : index
    %c0_1 = arith.constant 0 : index
    %3 = vector.load %arg9[%c0, %c0_1] : memref<32x128xf32, #tpu.memory_space<vmem>>, vector<32x128xf32>
    %c0_2 = arith.constant 0 : index
    %c0_3 = arith.constant 0 : index
    %4 = vector.load %arg10[%c0_2, %c0_3] : memref<32x128xf32, #tpu.memory_space<vmem>>, vector<32x128xf32>
    %c0_i32_4 = arith.constant 0 : i32
    %c8_i32 = arith.constant 8 : i32
    %5 = arith.addi %c0_i32_4, %c8_i32 : i32
    %c1_i32 = arith.constant 1 : i32
    %6:2 = scf.for %arg13 = %c0_i32_4 to %5 step %c1_i32 iter_args(%arg14 = %3, %arg15 = %4) -> (vector<32x128xf32>, vector<32x128xf32>)  : i32 {
      %c4_i32 = arith.constant 4 : i32
      %80 = arith.muli %arg13, %c4_i32 : i32
      %81 = tpu.assume_multiple %80, 4 : i32
      %c0_i32_94 = arith.constant 0 : i32
      %82 = arith.addi %81, %c0_i32_94 : i32
      %cst_95 = arith.constant 7.500000e-01 : f32
      %83 = vector.broadcast %cst_95 : f32 to vector<32x128xf32>
      %84 = arith.mulf %83, %arg14 : vector<32x128xf32>
      %85 = arith.index_cast %82 : i32 to index
      %c0_96 = arith.constant 0 : index
      %c0_97 = arith.constant 0 : index
      %86 = vector.load %arg2[%85, %c0_96, %c0_97] : memref<32x32x128xf32, #tpu.memory_space<vmem>>, vector<1x32x128xf32>
      %87 = vector.shape_cast %86 : vector<1x32x128xf32> to vector<32x128xf32>
      %88 = arith.addf %84, %87 : vector<32x128xf32>
      %cst_98 = arith.constant 9.687500e-01 : f32
      %89 = vector.broadcast %cst_98 : f32 to vector<32x128xf32>
      %90 = arith.mulf %89, %arg15 : vector<32x128xf32>
      %91 = arith.addf %90, %88 : vector<32x128xf32>
      %cst_99 = arith.constant 6.400000e+02 : f32
      %92 = vector.broadcast %cst_99 : f32 to vector<32x128xf32>
      %93 = arith.cmpf oge, %91, %92 : vector<32x128xf32>
      %cst_100 = arith.constant 1.000000e+00 : f32
      %cst_101 = arith.constant 0.000000e+00 : f32
      %94 = vector.broadcast %cst_100 : f32 to vector<32x128xf32>
      %95 = vector.broadcast %cst_101 : f32 to vector<32x128xf32>
      %96 = arith.select %93, %94, %95 : vector<32x128xi1>, vector<32x128xf32>
      %97 = arith.truncf %96 : vector<32x128xf32> to vector<32x128xbf16>
      %c4_i32_102 = arith.constant 4 : i32
      %98 = arith.addi %82, %c4_i32_102 : i32
      %99 = arith.index_cast %98 : i32 to index
      %c0_103 = arith.constant 0 : index
      %c0_104 = arith.constant 0 : index
      %100 = vector.load %arg7[%99, %c0_103, %c0_104] : memref<36x32x128xbf16, #tpu.memory_space<vmem>>, vector<1x32x128xbf16>
      %101 = vector.shape_cast %100 : vector<1x32x128xbf16> to vector<32x128xbf16>
      %102 = vector.shape_cast %97 : vector<32x128xbf16> to vector<1x32x128xbf16>
      tpu.vector_store %arg7[%99, %c0_103, %c0_104], %102 {strides = array<i32>} : memref<36x32x128xbf16, #tpu.memory_space<vmem>>, vector<1x32x128xbf16>,
      %cst_105 = arith.constant 0.000000e+00 : f32
      %103 = vector.broadcast %cst_105 : f32 to vector<32x128xf32>
      %104 = arith.select %93, %103, %91 : vector<32x128xi1>, vector<32x128xf32>
      %c1_i32_106 = arith.constant 1 : i32
      %105 = arith.addi %81, %c1_i32_106 : i32
      %cst_107 = arith.constant 7.500000e-01 : f32
      %106 = vector.broadcast %cst_107 : f32 to vector<32x128xf32>
      %107 = arith.mulf %106, %88 : vector<32x128xf32>
      %108 = arith.index_cast %105 : i32 to index
      %c0_108 = arith.constant 0 : index
      %c0_109 = arith.constant 0 : index
      %109 = vector.load %arg2[%108, %c0_108, %c0_109] : memref<32x32x128xf32, #tpu.memory_space<vmem>>, vector<1x32x128xf32>
      %110 = vector.shape_cast %109 : vector<1x32x128xf32> to vector<32x128xf32>
      %111 = arith.addf %107, %110 : vector<32x128xf32>
      %cst_110 = arith.constant 9.687500e-01 : f32
      %112 = vector.broadcast %cst_110 : f32 to vector<32x128xf32>
      %113 = arith.mulf %112, %104 : vector<32x128xf32>
      %114 = arith.addf %113, %111 : vector<32x128xf32>
      %cst_111 = arith.constant 6.400000e+02 : f32
      %115 = vector.broadcast %cst_111 : f32 to vector<32x128xf32>
      %116 = arith.cmpf oge, %114, %115 : vector<32x128xf32>
      %cst_112 = arith.constant 1.000000e+00 : f32
      %cst_113 = arith.constant 0.000000e+00 : f32
      %117 = vector.broadcast %cst_112 : f32 to vector<32x128xf32>
      %118 = vector.broadcast %cst_113 : f32 to vector<32x128xf32>
      %119 = arith.select %116, %117, %118 : vector<32x128xi1>, vector<32x128xf32>
      %120 = arith.truncf %119 : vector<32x128xf32> to vector<32x128xbf16>
      %c4_i32_114 = arith.constant 4 : i32
      %121 = arith.addi %105, %c4_i32_114 : i32
      %122 = arith.index_cast %121 : i32 to index
      %c0_115 = arith.constant 0 : index
      %c0_116 = arith.constant 0 : index
      %123 = vector.load %arg7[%122, %c0_115, %c0_116] : memref<36x32x128xbf16, #tpu.memory_space<vmem>>, vector<1x32x128xbf16>
      %124 = vector.shape_cast %123 : vector<1x32x128xbf16> to vector<32x128xbf16>
      %125 = vector.shape_cast %120 : vector<32x128xbf16> to vector<1x32x128xbf16>
      tpu.vector_store %arg7[%122, %c0_115, %c0_116], %125 {strides = array<i32>} : memref<36x32x128xbf16, #tpu.memory_space<vmem>>, vector<1x32x128xbf16>,
      %cst_117 = arith.constant 0.000000e+00 : f32
      %126 = vector.broadcast %cst_117 : f32 to vector<32x128xf32>
      %127 = arith.select %116, %126, %114 : vector<32x128xi1>, vector<32x128xf32>
      %c2_i32 = arith.constant 2 : i32
      %128 = arith.addi %81, %c2_i32 : i32
      %cst_118 = arith.constant 7.500000e-01 : f32
      %129 = vector.broadcast %cst_118 : f32 to vector<32x128xf32>
      %130 = arith.mulf %129, %111 : vector<32x128xf32>
      %131 = arith.index_cast %128 : i32 to index
      %c0_119 = arith.constant 0 : index
      %c0_120 = arith.constant 0 : index
      %132 = vector.load %arg2[%131, %c0_119, %c0_120] : memref<32x32x128xf32, #tpu.memory_space<vmem>>, vector<1x32x128xf32>
      %133 = vector.shape_cast %132 : vector<1x32x128xf32> to vector<32x128xf32>
      %134 = arith.addf %130, %133 : vector<32x128xf32>
      %cst_121 = arith.constant 9.687500e-01 : f32
      %135 = vector.broadcast %cst_121 : f32 to vector<32x128xf32>
      %136 = arith.mulf %135, %127 : vector<32x128xf32>
      %137 = arith.addf %136, %134 : vector<32x128xf32>
      %cst_122 = arith.constant 6.400000e+02 : f32
      %138 = vector.broadcast %cst_122 : f32 to vector<32x128xf32>
      %139 = arith.cmpf oge, %137, %138 : vector<32x128xf32>
      %cst_123 = arith.constant 1.000000e+00 : f32
      %cst_124 = arith.constant 0.000000e+00 : f32
      %140 = vector.broadcast %cst_123 : f32 to vector<32x128xf32>
      %141 = vector.broadcast %cst_124 : f32 to vector<32x128xf32>
      %142 = arith.select %139, %140, %141 : vector<32x128xi1>, vector<32x128xf32>
      %143 = arith.truncf %142 : vector<32x128xf32> to vector<32x128xbf16>
      %c4_i32_125 = arith.constant 4 : i32
      %144 = arith.addi %128, %c4_i32_125 : i32
      %145 = arith.index_cast %144 : i32 to index
      %c0_126 = arith.constant 0 : index
      %c0_127 = arith.constant 0 : index
      %146 = vector.load %arg7[%145, %c0_126, %c0_127] : memref<36x32x128xbf16, #tpu.memory_space<vmem>>, vector<1x32x128xbf16>
      %147 = vector.shape_cast %146 : vector<1x32x128xbf16> to vector<32x128xbf16>
      %148 = vector.shape_cast %143 : vector<32x128xbf16> to vector<1x32x128xbf16>
      tpu.vector_store %arg7[%145, %c0_126, %c0_127], %148 {strides = array<i32>} : memref<36x32x128xbf16, #tpu.memory_space<vmem>>, vector<1x32x128xbf16>,
      %cst_128 = arith.constant 0.000000e+00 : f32
      %149 = vector.broadcast %cst_128 : f32 to vector<32x128xf32>
      %150 = arith.select %139, %149, %137 : vector<32x128xi1>, vector<32x128xf32>
      %c3_i32 = arith.constant 3 : i32
      %151 = arith.addi %81, %c3_i32 : i32
      %cst_129 = arith.constant 7.500000e-01 : f32
      %152 = vector.broadcast %cst_129 : f32 to vector<32x128xf32>
      %153 = arith.mulf %152, %134 : vector<32x128xf32>
      %154 = arith.index_cast %151 : i32 to index
      %c0_130 = arith.constant 0 : index
      %c0_131 = arith.constant 0 : index
      %155 = vector.load %arg2[%154, %c0_130, %c0_131] : memref<32x32x128xf32, #tpu.memory_space<vmem>>, vector<1x32x128xf32>
      %156 = vector.shape_cast %155 : vector<1x32x128xf32> to vector<32x128xf32>
      %157 = arith.addf %153, %156 : vector<32x128xf32>
      %cst_132 = arith.constant 9.687500e-01 : f32
      %158 = vector.broadcast %cst_132 : f32 to vector<32x128xf32>
      %159 = arith.mulf %158, %150 : vector<32x128xf32>
      %160 = arith.addf %159, %157 : vector<32x128xf32>
      %cst_133 = arith.constant 6.400000e+02 : f32
      %161 = vector.broadcast %cst_133 : f32 to vector<32x128xf32>
      %162 = arith.cmpf oge, %160, %161 : vector<32x128xf32>
      %cst_134 = arith.constant 1.000000e+00 : f32
      %cst_135 = arith.constant 0.000000e+00 : f32
      %163 = vector.broadcast %cst_134 : f32 to vector<32x128xf32>
      %164 = vector.broadcast %cst_135 : f32 to vector<32x128xf32>
      %165 = arith.select %162, %163, %164 : vector<32x128xi1>, vector<32x128xf32>
      %166 = arith.truncf %165 : vector<32x128xf32> to vector<32x128xbf16>
      %c4_i32_136 = arith.constant 4 : i32
      %167 = arith.addi %151, %c4_i32_136 : i32
      %168 = arith.index_cast %167 : i32 to index
      %c0_137 = arith.constant 0 : index
      %c0_138 = arith.constant 0 : index
      %169 = vector.load %arg7[%168, %c0_137, %c0_138] : memref<36x32x128xbf16, #tpu.memory_space<vmem>>, vector<1x32x128xbf16>
      %170 = vector.shape_cast %169 : vector<1x32x128xbf16> to vector<32x128xbf16>
      %171 = vector.shape_cast %166 : vector<32x128xbf16> to vector<1x32x128xbf16>
      tpu.vector_store %arg7[%168, %c0_137, %c0_138], %171 {strides = array<i32>} : memref<36x32x128xbf16, #tpu.memory_space<vmem>>, vector<1x32x128xbf16>,
      %cst_139 = arith.constant 0.000000e+00 : f32
      %172 = vector.broadcast %cst_139 : f32 to vector<32x128xf32>
      %173 = arith.select %162, %172, %160 : vector<32x128xi1>, vector<32x128xf32>
      scf.yield %157, %173 : vector<32x128xf32>, vector<32x128xf32>
    }
    %c8_i32_5 = arith.constant 8 : i32
    %c32_i32 = arith.constant 32 : i32
    %c0_i32_6 = arith.constant 0 : i32
    %7 = arith.addi %c32_i32, %c0_i32_6 : i32
    %c1_i32_7 = arith.constant 1 : i32
    %8:2 = scf.for %arg13 = %c32_i32 to %7 step %c1_i32_7 iter_args(%arg14 = %6#0, %arg15 = %6#1) -> (vector<32x128xf32>, vector<32x128xf32>)  : i32 {
      %cst_94 = arith.constant 7.500000e-01 : f32
      %80 = vector.broadcast %cst_94 : f32 to vector<32x128xf32>
      %81 = arith.mulf %80, %arg14 : vector<32x128xf32>
      %82 = arith.index_cast %arg13 : i32 to index
      %c0_95 = arith.constant 0 : index
      %c0_96 = arith.constant 0 : index
      %83 = vector.load %arg2[%82, %c0_95, %c0_96] : memref<32x32x128xf32, #tpu.memory_space<vmem>>, vector<1x32x128xf32>
      %84 = vector.shape_cast %83 : vector<1x32x128xf32> to vector<32x128xf32>
      %85 = arith.addf %81, %84 : vector<32x128xf32>
      %cst_97 = arith.constant 9.687500e-01 : f32
      %86 = vector.broadcast %cst_97 : f32 to vector<32x128xf32>
      %87 = arith.mulf %86, %arg15 : vector<32x128xf32>
      %88 = arith.addf %87, %85 : vector<32x128xf32>
      %cst_98 = arith.constant 6.400000e+02 : f32
      %89 = vector.broadcast %cst_98 : f32 to vector<32x128xf32>
      %90 = arith.cmpf oge, %88, %89 : vector<32x128xf32>
      %cst_99 = arith.constant 1.000000e+00 : f32
      %cst_100 = arith.constant 0.000000e+00 : f32
      %91 = vector.broadcast %cst_99 : f32 to vector<32x128xf32>
      %92 = vector.broadcast %cst_100 : f32 to vector<32x128xf32>
      %93 = arith.select %90, %91, %92 : vector<32x128xi1>, vector<32x128xf32>
      %94 = arith.truncf %93 : vector<32x128xf32> to vector<32x128xbf16>
      %c4_i32 = arith.constant 4 : i32
      %95 = arith.addi %arg13, %c4_i32 : i32
      %96 = arith.index_cast %95 : i32 to index
      %c0_101 = arith.constant 0 : index
      %c0_102 = arith.constant 0 : index
      %97 = vector.load %arg7[%96, %c0_101, %c0_102] : memref<36x32x128xbf16, #tpu.memory_space<vmem>>, vector<1x32x128xbf16>
      %98 = vector.shape_cast %97 : vector<1x32x128xbf16> to vector<32x128xbf16>
      %99 = vector.shape_cast %94 : vector<32x128xbf16> to vector<1x32x128xbf16>
      tpu.vector_store %arg7[%96, %c0_101, %c0_102], %99 {strides = array<i32>} : memref<36x32x128xbf16, #tpu.memory_space<vmem>>, vector<1x32x128xbf16>,
      %cst_103 = arith.constant 0.000000e+00 : f32
      %100 = vector.broadcast %cst_103 : f32 to vector<32x128xf32>
      %101 = arith.select %90, %100, %88 : vector<32x128xi1>, vector<32x128xf32>
      scf.yield %85, %101 : vector<32x128xf32>, vector<32x128xf32>
    }
    %c0_i32_8 = arith.constant 0 : i32
    %c0_9 = arith.constant 0 : index
    %c0_10 = arith.constant 0 : index
    %9 = vector.load %arg9[%c0_9, %c0_10] : memref<32x128xf32, #tpu.memory_space<vmem>>, vector<32x128xf32>
    tpu.vector_store %arg9[%c0_9, %c0_10], %8#0 {strides = array<i32>} : memref<32x128xf32, #tpu.memory_space<vmem>>, vector<32x128xf32>,
    %c0_11 = arith.constant 0 : index
    %c0_12 = arith.constant 0 : index
    %10 = vector.load %arg10[%c0_11, %c0_12] : memref<32x128xf32, #tpu.memory_space<vmem>>, vector<32x128xf32>
    tpu.vector_store %arg10[%c0_11, %c0_12], %8#1 {strides = array<i32>} : memref<32x128xf32, #tpu.memory_space<vmem>>, vector<32x128xf32>,
    %c3 = arith.constant 3 : index
    %c0_13 = arith.constant 0 : index
    %c0_14 = arith.constant 0 : index
    %11 = vector.load %arg7[%c3, %c0_13, %c0_14] : memref<36x32x128xbf16, #tpu.memory_space<vmem>>, vector<32x32x128xbf16>
    %12 = vector.shape_cast %11 : vector<32x32x128xbf16> to vector<1024x128xbf16>
    %c0_15 = arith.constant 0 : index
    %c0_16 = arith.constant 0 : index
    %c0_17 = arith.constant 0 : index
    %13 = vector.load %arg3[%c0_15, %c0_16, %c0_17] : memref<4x128x128xbf16, #tpu.memory_space<vmem>>, vector<1x128x128xbf16>
    %14 = vector.shape_cast %13 : vector<1x128x128xbf16> to vector<128x128xbf16>
    %cst = arith.constant dense<0.000000e+00> : vector<1024x128xf32>
    %15 = tpu.matmul %12, %14, %cst {dimension_numbers = #tpu.dot_dimension_numbers<[1], [0], [0], [1], [0, 0, 1, 1], [], []>} : vector<1024x128xbf16>, vector<128x128xbf16>, vector<1024x128xf32> -> vector<1024x128xf32>
    %c2 = arith.constant 2 : index
    %c0_18 = arith.constant 0 : index
    %c0_19 = arith.constant 0 : index
    %16 = vector.load %arg7[%c2, %c0_18, %c0_19] : memref<36x32x128xbf16, #tpu.memory_space<vmem>>, vector<32x32x128xbf16>
    %17 = vector.shape_cast %16 : vector<32x32x128xbf16> to vector<1024x128xbf16>
    %c1 = arith.constant 1 : index
    %c0_20 = arith.constant 0 : index
    %c0_21 = arith.constant 0 : index
    %18 = vector.load %arg3[%c1, %c0_20, %c0_21] : memref<4x128x128xbf16, #tpu.memory_space<vmem>>, vector<1x128x128xbf16>
    %19 = vector.shape_cast %18 : vector<1x128x128xbf16> to vector<128x128xbf16>
    %cst_22 = arith.constant dense<0.000000e+00> : vector<1024x128xf32>
    %20 = tpu.matmul %17, %19, %cst_22 {dimension_numbers = #tpu.dot_dimension_numbers<[1], [0], [0], [1], [0, 0, 1, 1], [], []>} : vector<1024x128xbf16>, vector<128x128xbf16>, vector<1024x128xf32> -> vector<1024x128xf32>
    %21 = arith.addf %15, %20 : vector<1024x128xf32>
    %c1_23 = arith.constant 1 : index
    %c0_24 = arith.constant 0 : index
    %c0_25 = arith.constant 0 : index
    %22 = vector.load %arg7[%c1_23, %c0_24, %c0_25] : memref<36x32x128xbf16, #tpu.memory_space<vmem>>, vector<32x32x128xbf16>
    %23 = vector.shape_cast %22 : vector<32x32x128xbf16> to vector<1024x128xbf16>
    %c2_26 = arith.constant 2 : index
    %c0_27 = arith.constant 0 : index
    %c0_28 = arith.constant 0 : index
    %24 = vector.load %arg3[%c2_26, %c0_27, %c0_28] : memref<4x128x128xbf16, #tpu.memory_space<vmem>>, vector<1x128x128xbf16>
    %25 = vector.shape_cast %24 : vector<1x128x128xbf16> to vector<128x128xbf16>
    %cst_29 = arith.constant dense<0.000000e+00> : vector<1024x128xf32>
    %26 = tpu.matmul %23, %25, %cst_29 {dimension_numbers = #tpu.dot_dimension_numbers<[1], [0], [0], [1], [0, 0, 1, 1], [], []>} : vector<1024x128xbf16>, vector<128x128xbf16>, vector<1024x128xf32> -> vector<1024x128xf32>
    %27 = arith.addf %21, %26 : vector<1024x128xf32>
    %c0_30 = arith.constant 0 : index
    %c0_31 = arith.constant 0 : index
    %c0_32 = arith.constant 0 : index
    %28 = vector.load %arg7[%c0_30, %c0_31, %c0_32] : memref<36x32x128xbf16, #tpu.memory_space<vmem>>, vector<32x32x128xbf16>
    %29 = vector.shape_cast %28 : vector<32x32x128xbf16> to vector<1024x128xbf16>
    %c3_33 = arith.constant 3 : index
    %c0_34 = arith.constant 0 : index
    %c0_35 = arith.constant 0 : index
    %30 = vector.load %arg3[%c3_33, %c0_34, %c0_35] : memref<4x128x128xbf16, #tpu.memory_space<vmem>>, vector<1x128x128xbf16>
    %31 = vector.shape_cast %30 : vector<1x128x128xbf16> to vector<128x128xbf16>
    %cst_36 = arith.constant dense<0.000000e+00> : vector<1024x128xf32>
    %32 = tpu.matmul %29, %31, %cst_36 {dimension_numbers = #tpu.dot_dimension_numbers<[1], [0], [0], [1], [0, 0, 1, 1], [], []>} : vector<1024x128xbf16>, vector<128x128xbf16>, vector<1024x128xf32> -> vector<1024x128xf32>
    %33 = arith.addf %27, %32 : vector<1024x128xf32>
    %34 = vector.shape_cast %33 : vector<1024x128xf32> to vector<32x32x128xf32>
    %c0_37 = arith.constant 0 : index
    %c0_38 = arith.constant 0 : index
    %c0_39 = arith.constant 0 : index
    %35 = vector.load %arg6[%c0_37, %c0_38, %c0_39] : memref<32x32x128xf32, #tpu.memory_space<vmem>>, vector<32x32x128xf32>
    tpu.vector_store %arg6[%c0_37, %c0_38, %c0_39], %34 {strides = array<i32>} : memref<32x32x128xf32, #tpu.memory_space<vmem>>, vector<32x32x128xf32>,
    %c0_40 = arith.constant 0 : index
    %c0_41 = arith.constant 0 : index
    %36 = vector.load %arg11[%c0_40, %c0_41] : memref<32x128xf32, #tpu.memory_space<vmem>>, vector<32x128xf32>
    %c0_42 = arith.constant 0 : index
    %c0_43 = arith.constant 0 : index
    %37 = vector.load %arg12[%c0_42, %c0_43] : memref<32x128xf32, #tpu.memory_space<vmem>>, vector<32x128xf32>
    %c0_i32_44 = arith.constant 0 : i32
    %c8_i32_45 = arith.constant 8 : i32
    %38 = arith.addi %c0_i32_44, %c8_i32_45 : i32
    %c1_i32_46 = arith.constant 1 : i32
    %39:2 = scf.for %arg13 = %c0_i32_44 to %38 step %c1_i32_46 iter_args(%arg14 = %36, %arg15 = %37) -> (vector<32x128xf32>, vector<32x128xf32>)  : i32 {
      %c4_i32 = arith.constant 4 : i32
      %80 = arith.muli %arg13, %c4_i32 : i32
      %81 = tpu.assume_multiple %80, 4 : i32
      %c0_i32_94 = arith.constant 0 : i32
      %82 = arith.addi %81, %c0_i32_94 : i32
      %cst_95 = arith.constant 7.500000e-01 : f32
      %83 = vector.broadcast %cst_95 : f32 to vector<32x128xf32>
      %84 = arith.mulf %83, %arg14 : vector<32x128xf32>
      %85 = arith.index_cast %82 : i32 to index
      %c0_96 = arith.constant 0 : index
      %c0_97 = arith.constant 0 : index
      %86 = vector.load %arg6[%85, %c0_96, %c0_97] : memref<32x32x128xf32, #tpu.memory_space<vmem>>, vector<1x32x128xf32>
      %87 = vector.shape_cast %86 : vector<1x32x128xf32> to vector<32x128xf32>
      %88 = arith.addf %84, %87 : vector<32x128xf32>
      %cst_98 = arith.constant 9.687500e-01 : f32
      %89 = vector.broadcast %cst_98 : f32 to vector<32x128xf32>
      %90 = arith.mulf %89, %arg15 : vector<32x128xf32>
      %91 = arith.addf %90, %88 : vector<32x128xf32>
      %cst_99 = arith.constant 6.400000e+02 : f32
      %92 = vector.broadcast %cst_99 : f32 to vector<32x128xf32>
      %93 = arith.cmpf oge, %91, %92 : vector<32x128xf32>
      %cst_100 = arith.constant 1.000000e+00 : f32
      %cst_101 = arith.constant 0.000000e+00 : f32
      %94 = vector.broadcast %cst_100 : f32 to vector<32x128xf32>
      %95 = vector.broadcast %cst_101 : f32 to vector<32x128xf32>
      %96 = arith.select %93, %94, %95 : vector<32x128xi1>, vector<32x128xf32>
      %97 = arith.truncf %96 : vector<32x128xf32> to vector<32x128xbf16>
      %c4_i32_102 = arith.constant 4 : i32
      %98 = arith.addi %82, %c4_i32_102 : i32
      %99 = arith.index_cast %98 : i32 to index
      %c0_103 = arith.constant 0 : index
      %c0_104 = arith.constant 0 : index
      %100 = vector.load %arg8[%99, %c0_103, %c0_104] : memref<36x32x128xbf16, #tpu.memory_space<vmem>>, vector<1x32x128xbf16>
      %101 = vector.shape_cast %100 : vector<1x32x128xbf16> to vector<32x128xbf16>
      %102 = vector.shape_cast %97 : vector<32x128xbf16> to vector<1x32x128xbf16>
      tpu.vector_store %arg8[%99, %c0_103, %c0_104], %102 {strides = array<i32>} : memref<36x32x128xbf16, #tpu.memory_space<vmem>>, vector<1x32x128xbf16>,
      %cst_105 = arith.constant 0.000000e+00 : f32
      %103 = vector.broadcast %cst_105 : f32 to vector<32x128xf32>
      %104 = arith.select %93, %103, %91 : vector<32x128xi1>, vector<32x128xf32>
      %c1_i32_106 = arith.constant 1 : i32
      %105 = arith.addi %81, %c1_i32_106 : i32
      %cst_107 = arith.constant 7.500000e-01 : f32
      %106 = vector.broadcast %cst_107 : f32 to vector<32x128xf32>
      %107 = arith.mulf %106, %88 : vector<32x128xf32>
      %108 = arith.index_cast %105 : i32 to index
      %c0_108 = arith.constant 0 : index
      %c0_109 = arith.constant 0 : index
      %109 = vector.load %arg6[%108, %c0_108, %c0_109] : memref<32x32x128xf32, #tpu.memory_space<vmem>>, vector<1x32x128xf32>
      %110 = vector.shape_cast %109 : vector<1x32x128xf32> to vector<32x128xf32>
      %111 = arith.addf %107, %110 : vector<32x128xf32>
      %cst_110 = arith.constant 9.687500e-01 : f32
      %112 = vector.broadcast %cst_110 : f32 to vector<32x128xf32>
      %113 = arith.mulf %112, %104 : vector<32x128xf32>
      %114 = arith.addf %113, %111 : vector<32x128xf32>
      %cst_111 = arith.constant 6.400000e+02 : f32
      %115 = vector.broadcast %cst_111 : f32 to vector<32x128xf32>
      %116 = arith.cmpf oge, %114, %115 : vector<32x128xf32>
      %cst_112 = arith.constant 1.000000e+00 : f32
      %cst_113 = arith.constant 0.000000e+00 : f32
      %117 = vector.broadcast %cst_112 : f32 to vector<32x128xf32>
      %118 = vector.broadcast %cst_113 : f32 to vector<32x128xf32>
      %119 = arith.select %116, %117, %118 : vector<32x128xi1>, vector<32x128xf32>
      %120 = arith.truncf %119 : vector<32x128xf32> to vector<32x128xbf16>
      %c4_i32_114 = arith.constant 4 : i32
      %121 = arith.addi %105, %c4_i32_114 : i32
      %122 = arith.index_cast %121 : i32 to index
      %c0_115 = arith.constant 0 : index
      %c0_116 = arith.constant 0 : index
      %123 = vector.load %arg8[%122, %c0_115, %c0_116] : memref<36x32x128xbf16, #tpu.memory_space<vmem>>, vector<1x32x128xbf16>
      %124 = vector.shape_cast %123 : vector<1x32x128xbf16> to vector<32x128xbf16>
      %125 = vector.shape_cast %120 : vector<32x128xbf16> to vector<1x32x128xbf16>
      tpu.vector_store %arg8[%122, %c0_115, %c0_116], %125 {strides = array<i32>} : memref<36x32x128xbf16, #tpu.memory_space<vmem>>, vector<1x32x128xbf16>,
      %cst_117 = arith.constant 0.000000e+00 : f32
      %126 = vector.broadcast %cst_117 : f32 to vector<32x128xf32>
      %127 = arith.select %116, %126, %114 : vector<32x128xi1>, vector<32x128xf32>
      %c2_i32 = arith.constant 2 : i32
      %128 = arith.addi %81, %c2_i32 : i32
      %cst_118 = arith.constant 7.500000e-01 : f32
      %129 = vector.broadcast %cst_118 : f32 to vector<32x128xf32>
      %130 = arith.mulf %129, %111 : vector<32x128xf32>
      %131 = arith.index_cast %128 : i32 to index
      %c0_119 = arith.constant 0 : index
      %c0_120 = arith.constant 0 : index
      %132 = vector.load %arg6[%131, %c0_119, %c0_120] : memref<32x32x128xf32, #tpu.memory_space<vmem>>, vector<1x32x128xf32>
      %133 = vector.shape_cast %132 : vector<1x32x128xf32> to vector<32x128xf32>
      %134 = arith.addf %130, %133 : vector<32x128xf32>
      %cst_121 = arith.constant 9.687500e-01 : f32
      %135 = vector.broadcast %cst_121 : f32 to vector<32x128xf32>
      %136 = arith.mulf %135, %127 : vector<32x128xf32>
      %137 = arith.addf %136, %134 : vector<32x128xf32>
      %cst_122 = arith.constant 6.400000e+02 : f32
      %138 = vector.broadcast %cst_122 : f32 to vector<32x128xf32>
      %139 = arith.cmpf oge, %137, %138 : vector<32x128xf32>
      %cst_123 = arith.constant 1.000000e+00 : f32
      %cst_124 = arith.constant 0.000000e+00 : f32
      %140 = vector.broadcast %cst_123 : f32 to vector<32x128xf32>
      %141 = vector.broadcast %cst_124 : f32 to vector<32x128xf32>
      %142 = arith.select %139, %140, %141 : vector<32x128xi1>, vector<32x128xf32>
      %143 = arith.truncf %142 : vector<32x128xf32> to vector<32x128xbf16>
      %c4_i32_125 = arith.constant 4 : i32
      %144 = arith.addi %128, %c4_i32_125 : i32
      %145 = arith.index_cast %144 : i32 to index
      %c0_126 = arith.constant 0 : index
      %c0_127 = arith.constant 0 : index
      %146 = vector.load %arg8[%145, %c0_126, %c0_127] : memref<36x32x128xbf16, #tpu.memory_space<vmem>>, vector<1x32x128xbf16>
      %147 = vector.shape_cast %146 : vector<1x32x128xbf16> to vector<32x128xbf16>
      %148 = vector.shape_cast %143 : vector<32x128xbf16> to vector<1x32x128xbf16>
      tpu.vector_store %arg8[%145, %c0_126, %c0_127], %148 {strides = array<i32>} : memref<36x32x128xbf16, #tpu.memory_space<vmem>>, vector<1x32x128xbf16>,
      %cst_128 = arith.constant 0.000000e+00 : f32
      %149 = vector.broadcast %cst_128 : f32 to vector<32x128xf32>
      %150 = arith.select %139, %149, %137 : vector<32x128xi1>, vector<32x128xf32>
      %c3_i32 = arith.constant 3 : i32
      %151 = arith.addi %81, %c3_i32 : i32
      %cst_129 = arith.constant 7.500000e-01 : f32
      %152 = vector.broadcast %cst_129 : f32 to vector<32x128xf32>
      %153 = arith.mulf %152, %134 : vector<32x128xf32>
      %154 = arith.index_cast %151 : i32 to index
      %c0_130 = arith.constant 0 : index
      %c0_131 = arith.constant 0 : index
      %155 = vector.load %arg6[%154, %c0_130, %c0_131] : memref<32x32x128xf32, #tpu.memory_space<vmem>>, vector<1x32x128xf32>
      %156 = vector.shape_cast %155 : vector<1x32x128xf32> to vector<32x128xf32>
      %157 = arith.addf %153, %156 : vector<32x128xf32>
      %cst_132 = arith.constant 9.687500e-01 : f32
      %158 = vector.broadcast %cst_132 : f32 to vector<32x128xf32>
      %159 = arith.mulf %158, %150 : vector<32x128xf32>
      %160 = arith.addf %159, %157 : vector<32x128xf32>
      %cst_133 = arith.constant 6.400000e+02 : f32
      %161 = vector.broadcast %cst_133 : f32 to vector<32x128xf32>
      %162 = arith.cmpf oge, %160, %161 : vector<32x128xf32>
      %cst_134 = arith.constant 1.000000e+00 : f32
      %cst_135 = arith.constant 0.000000e+00 : f32
      %163 = vector.broadcast %cst_134 : f32 to vector<32x128xf32>
      %164 = vector.broadcast %cst_135 : f32 to vector<32x128xf32>
      %165 = arith.select %162, %163, %164 : vector<32x128xi1>, vector<32x128xf32>
      %166 = arith.truncf %165 : vector<32x128xf32> to vector<32x128xbf16>
      %c4_i32_136 = arith.constant 4 : i32
      %167 = arith.addi %151, %c4_i32_136 : i32
      %168 = arith.index_cast %167 : i32 to index
      %c0_137 = arith.constant 0 : index
      %c0_138 = arith.constant 0 : index
      %169 = vector.load %arg8[%168, %c0_137, %c0_138] : memref<36x32x128xbf16, #tpu.memory_space<vmem>>, vector<1x32x128xbf16>
      %170 = vector.shape_cast %169 : vector<1x32x128xbf16> to vector<32x128xbf16>
      %171 = vector.shape_cast %166 : vector<32x128xbf16> to vector<1x32x128xbf16>
      tpu.vector_store %arg8[%168, %c0_137, %c0_138], %171 {strides = array<i32>} : memref<36x32x128xbf16, #tpu.memory_space<vmem>>, vector<1x32x128xbf16>,
      %cst_139 = arith.constant 0.000000e+00 : f32
      %172 = vector.broadcast %cst_139 : f32 to vector<32x128xf32>
      %173 = arith.select %162, %172, %160 : vector<32x128xi1>, vector<32x128xf32>
      scf.yield %157, %173 : vector<32x128xf32>, vector<32x128xf32>
    }
    %c8_i32_47 = arith.constant 8 : i32
    %c32_i32_48 = arith.constant 32 : i32
    %c0_i32_49 = arith.constant 0 : i32
    %40 = arith.addi %c32_i32_48, %c0_i32_49 : i32
    %c1_i32_50 = arith.constant 1 : i32
    %41:2 = scf.for %arg13 = %c32_i32_48 to %40 step %c1_i32_50 iter_args(%arg14 = %39#0, %arg15 = %39#1) -> (vector<32x128xf32>, vector<32x128xf32>)  : i32 {
      %cst_94 = arith.constant 7.500000e-01 : f32
      %80 = vector.broadcast %cst_94 : f32 to vector<32x128xf32>
      %81 = arith.mulf %80, %arg14 : vector<32x128xf32>
      %82 = arith.index_cast %arg13 : i32 to index
      %c0_95 = arith.constant 0 : index
      %c0_96 = arith.constant 0 : index
      %83 = vector.load %arg6[%82, %c0_95, %c0_96] : memref<32x32x128xf32, #tpu.memory_space<vmem>>, vector<1x32x128xf32>
      %84 = vector.shape_cast %83 : vector<1x32x128xf32> to vector<32x128xf32>
      %85 = arith.addf %81, %84 : vector<32x128xf32>
      %cst_97 = arith.constant 9.687500e-01 : f32
      %86 = vector.broadcast %cst_97 : f32 to vector<32x128xf32>
      %87 = arith.mulf %86, %arg15 : vector<32x128xf32>
      %88 = arith.addf %87, %85 : vector<32x128xf32>
      %cst_98 = arith.constant 6.400000e+02 : f32
      %89 = vector.broadcast %cst_98 : f32 to vector<32x128xf32>
      %90 = arith.cmpf oge, %88, %89 : vector<32x128xf32>
      %cst_99 = arith.constant 1.000000e+00 : f32
      %cst_100 = arith.constant 0.000000e+00 : f32
      %91 = vector.broadcast %cst_99 : f32 to vector<32x128xf32>
      %92 = vector.broadcast %cst_100 : f32 to vector<32x128xf32>
      %93 = arith.select %90, %91, %92 : vector<32x128xi1>, vector<32x128xf32>
      %94 = arith.truncf %93 : vector<32x128xf32> to vector<32x128xbf16>
      %c4_i32 = arith.constant 4 : i32
      %95 = arith.addi %arg13, %c4_i32 : i32
      %96 = arith.index_cast %95 : i32 to index
      %c0_101 = arith.constant 0 : index
      %c0_102 = arith.constant 0 : index
      %97 = vector.load %arg8[%96, %c0_101, %c0_102] : memref<36x32x128xbf16, #tpu.memory_space<vmem>>, vector<1x32x128xbf16>
      %98 = vector.shape_cast %97 : vector<1x32x128xbf16> to vector<32x128xbf16>
      %99 = vector.shape_cast %94 : vector<32x128xbf16> to vector<1x32x128xbf16>
      tpu.vector_store %arg8[%96, %c0_101, %c0_102], %99 {strides = array<i32>} : memref<36x32x128xbf16, #tpu.memory_space<vmem>>, vector<1x32x128xbf16>,
      %cst_103 = arith.constant 0.000000e+00 : f32
      %100 = vector.broadcast %cst_103 : f32 to vector<32x128xf32>
      %101 = arith.select %90, %100, %88 : vector<32x128xi1>, vector<32x128xf32>
      scf.yield %85, %101 : vector<32x128xf32>, vector<32x128xf32>
    }
    %c0_i32_51 = arith.constant 0 : i32
    %c0_52 = arith.constant 0 : index
    %c0_53 = arith.constant 0 : index
    %42 = vector.load %arg11[%c0_52, %c0_53] : memref<32x128xf32, #tpu.memory_space<vmem>>, vector<32x128xf32>
    tpu.vector_store %arg11[%c0_52, %c0_53], %41#0 {strides = array<i32>} : memref<32x128xf32, #tpu.memory_space<vmem>>, vector<32x128xf32>,
    %c0_54 = arith.constant 0 : index
    %c0_55 = arith.constant 0 : index
    %43 = vector.load %arg12[%c0_54, %c0_55] : memref<32x128xf32, #tpu.memory_space<vmem>>, vector<32x128xf32>
    tpu.vector_store %arg12[%c0_54, %c0_55], %41#1 {strides = array<i32>} : memref<32x128xf32, #tpu.memory_space<vmem>>, vector<32x128xf32>,
    %c0_56 = arith.constant 0 : index
    %c0_57 = arith.constant 0 : index
    %c0_58 = arith.constant 0 : index
    %44 = vector.load %arg4[%c0_56, %c0_57, %c0_58] : memref<4x1x128xf32, #tpu.memory_space<vmem>>, vector<1x1x128xf32>
    %45 = vector.shape_cast %44 : vector<1x1x128xf32> to vector<1x128xf32>
    %c3_59 = arith.constant 3 : index
    %c0_60 = arith.constant 0 : index
    %c0_61 = arith.constant 0 : index
    %46 = vector.load %arg8[%c3_59, %c0_60, %c0_61] : memref<36x32x128xbf16, #tpu.memory_space<vmem>>, vector<32x32x128xbf16>
    %47 = arith.extf %46 : vector<32x32x128xbf16> to vector<32x32x128xf32>
    %48 = vector.shape_cast %45 : vector<1x128xf32> to vector<1x1x128xf32>
    %49 = vector.broadcast %48 : vector<1x1x128xf32> to vector<32x32x128xf32>
    %50 = arith.mulf %49, %47 : vector<32x32x128xf32>
    %c1_62 = arith.constant 1 : index
    %c0_63 = arith.constant 0 : index
    %c0_64 = arith.constant 0 : index
    %51 = vector.load %arg4[%c1_62, %c0_63, %c0_64] : memref<4x1x128xf32, #tpu.memory_space<vmem>>, vector<1x1x128xf32>
    %52 = vector.shape_cast %51 : vector<1x1x128xf32> to vector<1x128xf32>
    %c2_65 = arith.constant 2 : index
    %c0_66 = arith.constant 0 : index
    %c0_67 = arith.constant 0 : index
    %53 = vector.load %arg8[%c2_65, %c0_66, %c0_67] : memref<36x32x128xbf16, #tpu.memory_space<vmem>>, vector<32x32x128xbf16>
    %54 = arith.extf %53 : vector<32x32x128xbf16> to vector<32x32x128xf32>
    %55 = vector.shape_cast %52 : vector<1x128xf32> to vector<1x1x128xf32>
    %56 = vector.broadcast %55 : vector<1x1x128xf32> to vector<32x32x128xf32>
    %57 = arith.mulf %56, %54 : vector<32x32x128xf32>
    %58 = arith.addf %50, %57 : vector<32x32x128xf32>
    %c2_68 = arith.constant 2 : index
    %c0_69 = arith.constant 0 : index
    %c0_70 = arith.constant 0 : index
    %59 = vector.load %arg4[%c2_68, %c0_69, %c0_70] : memref<4x1x128xf32, #tpu.memory_space<vmem>>, vector<1x1x128xf32>
    %60 = vector.shape_cast %59 : vector<1x1x128xf32> to vector<1x128xf32>
    %c1_71 = arith.constant 1 : index
    %c0_72 = arith.constant 0 : index
    %c0_73 = arith.constant 0 : index
    %61 = vector.load %arg8[%c1_71, %c0_72, %c0_73] : memref<36x32x128xbf16, #tpu.memory_space<vmem>>, vector<32x32x128xbf16>
    %62 = arith.extf %61 : vector<32x32x128xbf16> to vector<32x32x128xf32>
    %63 = vector.shape_cast %60 : vector<1x128xf32> to vector<1x1x128xf32>
    %64 = vector.broadcast %63 : vector<1x1x128xf32> to vector<32x32x128xf32>
    %65 = arith.mulf %64, %62 : vector<32x32x128xf32>
    %66 = arith.addf %58, %65 : vector<32x32x128xf32>
    %c3_74 = arith.constant 3 : index
    %c0_75 = arith.constant 0 : index
    %c0_76 = arith.constant 0 : index
    %67 = vector.load %arg4[%c3_74, %c0_75, %c0_76] : memref<4x1x128xf32, #tpu.memory_space<vmem>>, vector<1x1x128xf32>
    %68 = vector.shape_cast %67 : vector<1x1x128xf32> to vector<1x128xf32>
    %c0_77 = arith.constant 0 : index
    %c0_78 = arith.constant 0 : index
    %c0_79 = arith.constant 0 : index
    %69 = vector.load %arg8[%c0_77, %c0_78, %c0_79] : memref<36x32x128xbf16, #tpu.memory_space<vmem>>, vector<32x32x128xbf16>
    %70 = arith.extf %69 : vector<32x32x128xbf16> to vector<32x32x128xf32>
    %71 = vector.shape_cast %68 : vector<1x128xf32> to vector<1x1x128xf32>
    %72 = vector.broadcast %71 : vector<1x1x128xf32> to vector<32x32x128xf32>
    %73 = arith.mulf %72, %70 : vector<32x32x128xf32>
    %74 = arith.addf %66, %73 : vector<32x32x128xf32>
    %c0_80 = arith.constant 0 : index
    %c0_81 = arith.constant 0 : index
    %c0_82 = arith.constant 0 : index
    %75 = vector.load %arg5[%c0_80, %c0_81, %c0_82] : memref<32x32x128xf32, #tpu.memory_space<vmem>>, vector<32x32x128xf32>
    tpu.vector_store %arg5[%c0_80, %c0_81, %c0_82], %74 {strides = array<i32>} : memref<32x32x128xf32, #tpu.memory_space<vmem>>, vector<32x32x128xf32>,
    %c32 = arith.constant 32 : index
    %c0_83 = arith.constant 0 : index
    %c0_84 = arith.constant 0 : index
    %76 = vector.load %arg7[%c32, %c0_83, %c0_84] : memref<36x32x128xbf16, #tpu.memory_space<vmem>>, vector<4x32x128xbf16>
    %c0_85 = arith.constant 0 : index
    %c0_86 = arith.constant 0 : index
    %c0_87 = arith.constant 0 : index
    %77 = vector.load %arg7[%c0_85, %c0_86, %c0_87] : memref<36x32x128xbf16, #tpu.memory_space<vmem>>, vector<4x32x128xbf16>
    tpu.vector_store %arg7[%c0_85, %c0_86, %c0_87], %76 {strides = array<i32>} : memref<36x32x128xbf16, #tpu.memory_space<vmem>>, vector<4x32x128xbf16>,
    %c32_88 = arith.constant 32 : index
    %c0_89 = arith.constant 0 : index
    %c0_90 = arith.constant 0 : index
    %78 = vector.load %arg8[%c32_88, %c0_89, %c0_90] : memref<36x32x128xbf16, #tpu.memory_space<vmem>>, vector<4x32x128xbf16>
    %c0_91 = arith.constant 0 : index
    %c0_92 = arith.constant 0 : index
    %c0_93 = arith.constant 0 : index
    %79 = vector.load %arg8[%c0_91, %c0_92, %c0_93] : memref<36x32x128xbf16, #tpu.memory_space<vmem>>, vector<4x32x128xbf16>
    tpu.vector_store %arg8[%c0_91, %c0_92, %c0_93], %78 {strides = array<i32>} : memref<36x32x128xbf16, #tpu.memory_space<vmem>>, vector<4x32x128xbf16>,
    return
  }
  func.func @transform_0(%arg0: i32, %arg1: i32) -> (i32, i32, i32) {
    %c0_i32 = arith.constant 0 : i32
    %c0_i32_0 = arith.constant 0 : i32
    return %arg1, %arg0, %c0_i32 : i32, i32, i32
  }
  func.func @transform_1(%arg0: i32, %arg1: i32) -> (i32, i32, i32) {
    %c0_i32 = arith.constant 0 : i32
    %c0_i32_0 = arith.constant 0 : i32
    %c0_i32_1 = arith.constant 0 : i32
    %c0_i32_2 = arith.constant 0 : i32
    return %c0_i32, %c0_i32_0, %c0_i32_1 : i32, i32, i32
  }
  func.func @transform_2(%arg0: i32, %arg1: i32) -> (i32, i32, i32) {
    %c0_i32 = arith.constant 0 : i32
    %c0_i32_0 = arith.constant 0 : i32
    %c0_i32_1 = arith.constant 0 : i32
    %c0_i32_2 = arith.constant 0 : i32
    return %c0_i32, %c0_i32_0, %c0_i32_1 : i32, i32, i32
  }
  func.func @transform_3(%arg0: i32, %arg1: i32) -> (i32, i32, i32) {
    %c0_i32 = arith.constant 0 : i32
    %c0_i32_0 = arith.constant 0 : i32
    return %arg1, %arg0, %c0_i32 : i32, i32, i32
  }
}

</mosaic_0001>

<bundles_post_ra>
// kernel: tpu_custom_call.1
= control target key start
LH: loop header
LB: loop body
LE: loop exit
PB: predicated region body
PF: predicated region fallthrough
CT: control target
= control target key end

     0   :  { %8 = vsyncpa [#allocation10], 0  ;;  %s11667_s0 = inlined_call_operand.hbm [shape: f32[32,32,128], index: 0, kind: input, shape index: {}]   ;;  %s11668_s1 = inlined_call_operand.hbm [shape: bf16[4,128,128], index: 1, kind: input, shape index: {}]   ;;  %s11669_s2 = inlined_call_operand.hbm [shape: f32[4,1,128], index: 2, kind: input, shape index: {}]   ;;  %s11670_s3 = inlined_call_operand.hbm [shape: f32[32,32,128], index: 3, kind: output, shape index: {}]  }
   0x1   :  { %9 = vsyncpa [#allocation13], 0  ;;  %s28_s14 = sshll.u32 %s11668_s1, 4  ;;  %s29_s14 = int_to_ptr.hbm [resolvable:$true] %s28_s14 }
   0x2   :  { %10 = vsyncpa [#allocation11], 0  ;;  %s10135_s15 = smov [#allocation12]   ;;  %s15_s19 = sshll.u32 %s11667_s0, 4  ;;  %s16_s19 = int_to_ptr.hbm [resolvable:$true] %s15_s19 }
   0x3   :  { %s30_s16 = sshll.u32 %s10135_s15, 4  ;;  %s10136_s20 = smov 64   ;;  %s31_s16 = int_to_ptr.vmem [resolvable:$true] %s30_s16 }
   0x4   :  { %s10137_s21 = smov 4   ;;  %s10138_s22 = smov [#allocation9]  }
   0x5   :  { %36 = dma.hbm_to_vmem [thread:$0]  %s29_s14, 4096, %s31_s16, [#allocation13], %s10136_s20, %s10136_s20, %s10137_s21  }
   0x6   :  { %s17_s23 = sshll.u32 %s10138_s22, 4  ;;  %s10139_s24 = smov 128   ;;  %s18_s23 = int_to_ptr.vmem [resolvable:$true] %s17_s23 }
   0x7   :  { %s10140_s25 = smov 8   ;;  %s41_s27 = sshll.u32 %s11669_s2, 4  ;;  %s42_s27 = int_to_ptr.hbm [resolvable:$true] %s41_s27 }
   0x8   :  { %23 = dma.hbm_to_vmem [thread:$0]  %s16_s19, 16384, %s18_s23, [#allocation10], %s10139_s24, %s10139_s24, %s10140_s25  }
   0x9   :  { %s10141_s28 = smov [#allocation14]   ;;  %s10142_s29 = smov 16  }
   0xa   :  { %s43_s0 = sshll.u32 %s10141_s28, 4  ;;  %s10143_s30 = smov 1   ;;  %s44_s0 = int_to_ptr.vmem [resolvable:$true] %s43_s0 }
   0xb   :  { %49 = dma.hbm_to_vmem [thread:$0]  %s42_s27, 64, %s44_s0, [#allocation13], %s10142_s29, %s10142_s29, %s10143_s30  }
   0xc   :  { %10057 = dma.done.wait [#allocation10], 16384  }
   0xd   :  { %10058 = vsyncadd [#allocation10], 4294950912 }
   0xe   :  { %10059 = dma.done.wait [#allocation13], 4160  }
   0xf   :  { %10060 = vsyncadd [#allocation13], 4294963136  ;;  %v10144_v0 = vmov 0.0   ;;  %v10145_v1 = vmov 0   ;;  %v10181_v2 = vmov 0.0   ;;  %v10183_v3 = vmov 0.0  }
  0x10   :  { %75 = vst [vmem:[#allocation7] sm:$0xff] %v10144_v0  ;;  %v10185_v4 = vmov 0.0   ;;  %v10187_v5 = vmov 0.0   ;;  %v10189_v6 = vmov 0.0   ;;  %v10191_v7 = vmov 0.0   ;;  %s10197_s2 = smov 0  }
  0x11   :  { %76 = vst [vmem:[#allocation7 + $0x8] sm:$0xff] %v10144_v0  ;;  %v10193_v8 = vmov 0.0   ;;  %v10195_v9 = vmov 0.0  }
  0x12   :  { %77 = vst [vmem:[#allocation7 + $0x10] sm:$0xff] %v10144_v0 }
  0x13   :  { %78 = vst [vmem:[#allocation7 + $0x18] sm:$0xff] %v10144_v0 }
  0x14   :  { %79 = vst [vmem:[#allocation8] sm:$0xff] %v10144_v0 }
  0x15   :  { %80 = vst [vmem:[#allocation8 + $0x10] sm:$0xff] %v10144_v0 }
  0x16   :  { %81 = vst [vmem:[#allocation8 + $0x18] sm:$0xff] %v10144_v0 }
  0x17   :  { %82 = vst [vmem:[#allocation8 + $0x8] sm:$0xff] %v10144_v0 }
  0x18   :  { %83 = vst [vmem:[#allocation3] sm:$0xf] %v10145_v1 }
  0x19   :  { %84 = vst [vmem:[#allocation3 + $0x4] sm:$0xf] %v10145_v1 }
  0x1a   :  { %85 = vst [vmem:[#allocation3 + $0x8] sm:$0xf] %v10145_v1 }
  0x1b   :  { %86 = vst [vmem:[#allocation3 + $0xc] sm:$0xf] %v10145_v1 }
  0x1c   :  { %87 = vst [vmem:[#allocation3 + $0x10] sm:$0xf] %v10145_v1 }
  0x1d   :  { %88 = vst [vmem:[#allocation3 + $0x14] sm:$0xf] %v10145_v1 }
  0x1e   :  { %89 = vst [vmem:[#allocation3 + $0x18] sm:$0xf] %v10145_v1 }
  0x1f   :  { %90 = vst [vmem:[#allocation3 + $0x1c] sm:$0xf] %v10145_v1 }
  0x20   :  { %91 = vst [vmem:[#allocation3 + $0x20] sm:$0xf] %v10145_v1 }
  0x21   :  { %92 = vst [vmem:[#allocation3 + $0x24] sm:$0xf] %v10145_v1 }
  0x22   :  { %93 = vst [vmem:[#allocation3 + $0x28] sm:$0xf] %v10145_v1 }
  0x23   :  { %94 = vst [vmem:[#allocation3 + $0x2c] sm:$0xf] %v10145_v1 }
  0x24   :  { %95 = vst [vmem:[#allocation3 + $0x30] sm:$0xf] %v10145_v1 }
  0x25   :  { %96 = vst [vmem:[#allocation3 + $0x34] sm:$0xf] %v10145_v1 }
  0x26   :  { %97 = vst [vmem:[#allocation3 + $0x38] sm:$0xf] %v10145_v1 }
  0x27   :  { %98 = vst [vmem:[#allocation3 + $0x3c] sm:$0xf] %v10145_v1 }
  0x28   :  { %99 = vst [vmem:[#allocation4] sm:$0xf] %v10145_v1 }
  0x29   :  { %100 = vst [vmem:[#allocation4 + $0x4] sm:$0xf] %v10145_v1 }
  0x2a   :  { %101 = vst [vmem:[#allocation4 + $0x8] sm:$0xf] %v10145_v1 }
  0x2b   :  { %102 = vst [vmem:[#allocation4 + $0xc] sm:$0xf] %v10145_v1 }
  0x2c   :  { %103 = vst [vmem:[#allocation4 + $0x10] sm:$0xf] %v10145_v1 }
  0x2d   :  { %104 = vst [vmem:[#allocation4 + $0x14] sm:$0xf] %v10145_v1 }
  0x2e   :  { %105 = vst [vmem:[#allocation4 + $0x18] sm:$0xf] %v10145_v1 }
  0x2f   :  { %106 = vst [vmem:[#allocation4 + $0x1c] sm:$0xf] %v10145_v1 }
  0x30   :  { %107 = vst [vmem:[#allocation4 + $0x20] sm:$0xf] %v10145_v1 }
  0x31   :  { %108 = vst [vmem:[#allocation4 + $0x24] sm:$0xf] %v10145_v1 }
  0x32   :  { %109 = vst [vmem:[#allocation4 + $0x28] sm:$0xf] %v10145_v1 }
  0x33   :  { %110 = vst [vmem:[#allocation4 + $0x2c] sm:$0xf] %v10145_v1 }
  0x34   :  { %111 = vst [vmem:[#allocation4 + $0x30] sm:$0xf] %v10145_v1 }
  0x35   :  { %112 = vst [vmem:[#allocation4 + $0x34] sm:$0xf] %v10145_v1 }
  0x36   :  { %113 = vst [vmem:[#allocation4 + $0x38] sm:$0xf] %v10145_v1 }
  0x37   :  { %114 = vst [vmem:[#allocation4 + $0x3c] sm:$0xf] %v10145_v1 }
  0x38 LB: > { %v138_v10 = vmul.f32 0.75, %v10093_v9  ;;  %v139_v11 = vmul.f32 0.75, %v10089_v8  ;;  %s8075_s4 = sshll.u32 %s10097_s2, 7  ;;  %v152_v12 = vmul.f32 0.96875, %v10077_v5  ;;  %v153_v13 = vmul.f32 0.96875, %v10073_v4  ;;  %s8076_s6 = sshll.u32 %s10097_s2, 6  ;;  %s10097_s2 = sphi %s10197_s2, %s128_s2   ;;  %v10093_v9 = vphi %v10195_v9, %v289_v9   ;;  %v10089_v8 = vphi %v10193_v8, %v290_v8   ;;  %v10085_v7 = vphi %v10191_v7, %v291_v7   ;;  %v10081_v6 = vphi %v10189_v6, %v292_v6   ;;  %v10077_v5 = vphi %v10187_v5, %v321_v5   ;;  %v10073_v4 = vphi %v10185_v4, %v322_v4   ;;  %v10069_v3 = vphi %v10183_v3, %v323_v3   ;;  %v10065_v2 = vphi %v10181_v2, %v324_v2  }
  0x39   : > { %s10211_s5 = scalar_lea.vmem [#allocation9], %s8075_s4  ;;  %v141_v18 = vmul.f32 0.75, %v10081_v6  ;;  %v140_v21 = vmul.f32 0.75, %v10085_v7  ;;  %v154_v22 = vmul.f32 0.96875, %v10069_v3  ;;  %v155_v23 = vmul.f32 0.96875, %v10065_v2  ;;  %s10223_s7 = scalar_lea.vmem [#allocation3], %s8076_s6 }
  0x3a   : > { %v144_v14 = vld [vmem:[%s10211_s5] sm:$0xff]  ;;  %v145_v15 = vld [vmem:[%s10211_s5 + $0x8] sm:$0xff]  ;;  %v146_v19 = vld [vmem:[%s10211_s5 + $0x10] sm:$0xff]  ;;  %v10146_v34 = vmov 0.0   ;;  %s128_s2 = sadd.s32 1, %s10097_s2  }
  0x3b   : > { %v148_v16 = vadd.f32 %v144_v14, %v138_v10  ;;  %v149_v17 = vadd.f32 %v145_v15, %v139_v11  ;;  %v147_v20 = vld [vmem:[%s10211_s5 + $0x18] sm:$0xff]  ;;  %v6845_v24 = vld [vmem:[%s10211_s5 + $0x20] sm:$0xff]  ;;  %v150_v29 = vadd.f32 %v146_v19, %v140_v21  ;;  %v6846_v32 = vld [vmem:[%s10211_s5 + $0x28] sm:$0xff]  ;;  %p125_p0 = scmp.ge.s32.totalorder %s128_s2, 8  }
  0x3c   : > { %v151_v27 = vadd.f32 %v147_v20, %v141_v18  ;;  %v6847_v46 = vld [vmem:[%s10211_s5 + $0x30] sm:$0xff]  ;;  %v6848_v50 = vld [vmem:[%s10211_s5 + $0x38] sm:$0xff]  ;;  %v6857_v1 = vld [vmem:[%s10211_s5 + $0x40] sm:$0xff]  ;;  %s10291_s8 = smov (%p125_p0), 0  }
  0x3d   : > { %v156_v25 = vadd.f32 %v152_v12, %v148_v16  ;;  %v157_v26 = vadd.f32 %v153_v13, %v149_v17  ;;  %v185_v28 = vmul.f32 0.75, %v148_v16  ;;  %v186_v30 = vmul.f32 0.75, %v149_v17  ;;  %v6858_v6 = vld [vmem:[%s10211_s5 + $0x48] sm:$0xff]  ;;  %v6859_v10 = vld [vmem:[%s10211_s5 + $0x50] sm:$0xff]  ;;  %v6860_v14 = vld [vmem:[%s10211_s5 + $0x58] sm:$0xff] }
  0x3e   : > { %v159_v31 = vadd.f32 %v155_v23, %v151_v27  ;;  %v158_v42 = vadd.f32 %v154_v22, %v150_v29  ;;  %v187_v44 = vmul.f32 0.75, %v150_v29  ;;  %v188_v45 = vmul.f32 0.75, %v151_v27 }
  0x3f   : > { %vm160_vm0 = vcmp.ge.f32.partialorder %v156_v25, 640.0  ;;  %vm161_vm1 = vcmp.ge.f32.partialorder %v157_v26, 640.0  ;;  %v195_v33 = vadd.f32 %v6845_v24, %v185_v28  ;;  %v196_v43 = vadd.f32 %v6846_v32, %v186_v30  ;;  %v6869_v32 = vld [vmem:[%s10211_s5 + $0x60] sm:$0xff] }
  0x40   : > { %v164_v35 = vsel %vm160_vm0, 1.0, %v10146_v34  ;;  %v165_v36 = vsel %vm161_vm1, 1.0, %v10146_v34  ;;  %v180_v37 = vsel %vm160_vm0, 0.0, %v156_v25  ;;  %v181_v38 = vsel %vm161_vm1, 0.0, %v157_v26 }
  0x41   : > { %v8380_v39 = vpack.c.bf16 %v165_v36, %v164_v35  ;;  %v199_v40 = vmul.f32 0.96875, %v180_v37  ;;  %v200_v41 = vmul.f32 0.96875, %v181_v38  ;;  %vm163_vm2 = vcmp.ge.f32.partialorder %v159_v31, 640.0  ;;  %v6870_v37 = vld [vmem:[%s10211_s5 + $0x68] sm:$0xff] }
  0x42   : > { %vm162_vm3 = vcmp.ge.f32.partialorder %v158_v42, 640.0  ;;  %v167_v47 = vsel %vm163_vm2, 1.0, %v10146_v34  ;;  %v183_v48 = vsel %vm163_vm2, 0.0, %v159_v31  ;;  %v197_v57 = vadd.f32 %v6847_v46, %v187_v44 }
  0x43   : > { %9451 = vst [vmem:[%s10223_s7 + $0x40] sm:$0xff] %v8380_v39   ;;  %v203_v49 = vadd.f32 %v199_v40, %v195_v33  ;;  %v166_v51 = vsel %vm162_vm3, 1.0, %v10146_v34  ;;  %v182_v52 = vsel %vm162_vm3, 0.0, %v158_v42  ;;  %v202_v53 = vmul.f32 0.96875, %v183_v48 }
  0x44   : > { %v204_v54 = vadd.f32 %v200_v41, %v196_v43  ;;  %v8383_v55 = vpack.c.bf16 %v167_v47, %v166_v51  ;;  %v201_v56 = vmul.f32 0.96875, %v182_v52  ;;  %v198_v60 = vadd.f32 %v6848_v50, %v188_v45  ;;  %v6871_v41 = vld [vmem:[%s10211_s5 + $0x70] sm:$0xff]  ;;  %v6872_v47 = vld [vmem:[%s10211_s5 + $0x78] sm:$0xff] }
  0x45   : > { %vm207_vm4 = vcmp.ge.f32.partialorder %v203_v49, 640.0  ;;  %v232_v5 = vmul.f32 0.75, %v195_v33  ;;  %v233_v7 = vmul.f32 0.75, %v196_v43  ;;  %v234_v8 = vmul.f32 0.75, %v197_v57 }
  0x46   : > { %vm208_vm5 = vcmp.ge.f32.partialorder %v204_v54, 640.0  ;;  %v211_v58 = vsel %vm207_vm4, 1.0, %v10146_v34  ;;  %v227_v59 = vsel %vm207_vm4, 0.0, %v203_v49  ;;  %9452 = vst [vmem:[%s10223_s7 + $0x48] sm:$0xff] %v8383_v55   ;;  %v205_v0 = vadd.f32 %v201_v56, %v197_v57 }
  0x47   : > { %v212_v61 = vsel %vm208_vm5, 1.0, %v10146_v34  ;;  %v228_v62 = vsel %vm208_vm5, 0.0, %v204_v54  ;;  %v246_v63 = vmul.f32 0.96875, %v227_v59  ;;  %v206_v4 = vadd.f32 %v202_v53, %v198_v60 }
  0x48   : > { %v8386_v2 = vpack.c.bf16 %v212_v61, %v211_v58  ;;  %v247_v3 = vmul.f32 0.96875, %v228_v62  ;;  %vm209_vm6 = vcmp.ge.f32.partialorder %v205_v0, 640.0  ;;  %v235_v9 = vmul.f32 0.75, %v198_v60  ;;  %v8154_v60 = vld [vmem:[#allocation12 + $0x38] sm:$0xff] (%p125_p0) }
  0x49   : > { %vm210_vm7 = vcmp.ge.f32.partialorder %v206_v4, 640.0  ;;  %v213_v11 = vsel %vm209_vm6, 1.0, %v10146_v34  ;;  %v229_v12 = vsel %vm209_vm6, 0.0, %v205_v0  ;;  %v242_v13 = vadd.f32 %v6857_v1, %v232_v5  ;;  %v8298_v61 = vld [vmem:[#allocation12 + $0xb8] sm:$0xff] (%p125_p0)  ;;  %1817 = vmatpush.bf16.msra.mxu1 (%p125_p0), %v8154_v60  ;;  %v8153_v0 = vld [vmem:[#allocation12 + $0x30] sm:$0xff] (%p125_p0) }
  0x4a   : > { %9453 = vst [vmem:[%s10223_s7 + $0x50] sm:$0xff] %v8386_v2   ;;  %v214_v15 = vsel %vm210_vm7, 1.0, %v10146_v34  ;;  %v230_v16 = vsel %vm210_vm7, 0.0, %v206_v4  ;;  %v248_v17 = vmul.f32 0.96875, %v229_v12  ;;  %v243_v18 = vadd.f32 %v6858_v6, %v233_v7  ;;  %v8370_v62 = vld [vmem:[#allocation12 + $0xf8] sm:$0xff] (%p125_p0)  ;;  %2724 = vmatpush.bf16.msra.mxu2 (%p125_p0), %v8298_v61  ;;  %v8297_v1 = vld [vmem:[#allocation12 + $0xb0] sm:$0xff] (%p125_p0) }
  0x4b   : > { %v8389_v19 = vpack.c.bf16 %v214_v15, %v213_v11  ;;  %v249_v20 = vmul.f32 0.96875, %v230_v16  ;;  %v250_v21 = vadd.f32 %v246_v63, %v242_v13  ;;  %v244_v22 = vadd.f32 %v6859_v10, %v234_v8  ;;  %v8225_v63 = vld [vmem:[#allocation12 + $0x70] sm:$0xff] (%p125_p0)  ;;  %3758 = vmatpush.bf16.msra.mxu3 (%p125_p0), %v8370_v62  ;;  %v8224_v11 = vld [vmem:[#allocation12 + $0x68] sm:$0xff] (%p125_p0) }
  0x4c   : > { %v251_v23 = vadd.f32 %v247_v3, %v243_v18  ;;  %v245_v24 = vadd.f32 %v6860_v14, %v235_v9  ;;  %v279_v25 = vmul.f32 0.75, %v242_v13  ;;  %v280_v27 = vmul.f32 0.75, %v243_v18  ;;  %v8369_v10 = vld [vmem:[#allocation12 + $0xf0] sm:$0xff] (%p125_p0)  ;;  %v8152_v12 = vld [vmem:[#allocation12 + $0x28] sm:$0xff] (%p125_p0)  ;;  %v8366_v14 = vld [vmem:[#allocation12 + $0xd8] sm:$0xff] (%p125_p0) }
  0x4d   : > { %9454 = vst [vmem:[%s10223_s7 + $0x58] sm:$0xff] %v8389_v19   ;;  %vm254_vm8 = vcmp.ge.f32.partialorder %v250_v21, 640.0  ;;  %v252_v26 = vadd.f32 %v248_v17, %v244_v22  ;;  %v281_v28 = vmul.f32 0.75, %v244_v22  ;;  %1818 = vmatpush.bf16.msra.mxu1 (%p125_p0), %v8153_v0  ;;  %v8368_v13 = vld [vmem:[#allocation12 + $0xe8] sm:$0xff] (%p125_p0)  ;;  %v8221_v15 = vld [vmem:[#allocation12 + $0x50] sm:$0xff] (%p125_p0) }
  0x4e   : > { %vm255_vm9 = vcmp.ge.f32.partialorder %v251_v23, 640.0  ;;  %v258_v29 = vsel %vm254_vm8, 1.0, %v10146_v34  ;;  %v274_v30 = vsel %vm254_vm8, 0.0, %v250_v21  ;;  %v253_v31 = vadd.f32 %v249_v20, %v245_v24  ;;  %2725 = vmatpush.bf16.msra.mxu2 (%p125_p0), %v8297_v1  ;;  %v8149_v16 = vld [vmem:[#allocation12 + $0x10] sm:$0xff] (%p125_p0)  ;;  %v8220_v19 = vld [vmem:[#allocation12 + $0x48] sm:$0xff] (%p125_p0) }
  0x4f   : > { %v259_v33 = vsel %vm255_vm9, 1.0, %v10146_v34  ;;  %v275_v35 = vsel %vm255_vm9, 0.0, %v251_v23  ;;  %v293_v36 = vmul.f32 0.96875, %v274_v30  ;;  %vm256_vm10 = vcmp.ge.f32.partialorder %v252_v26, 640.0  ;;  %3759 = vmatpush.bf16.msra.mxu3 (%p125_p0), %v8369_v10  ;;  %v8293_v17 = vld [vmem:[#allocation12 + $0x90] sm:$0xff] (%p125_p0)  ;;  %v8148_v20 = vld [vmem:[#allocation12 + $0x8] sm:$0xff] (%p125_p0) }
  0x50   : > { %v8392_v38 = vpack.c.bf16 %v259_v33, %v258_v29  ;;  %v294_v39 = vmul.f32 0.96875, %v275_v35  ;;  %vm257_vm11 = vcmp.ge.f32.partialorder %v253_v31, 640.0  ;;  %v260_v40 = vsel %vm256_vm10, 1.0, %v10146_v34  ;;  %v8365_v18 = vld [vmem:[#allocation12 + $0xd0] sm:$0xff] (%p125_p0)  ;;  %v8292_v21 = vld [vmem:[#allocation12 + $0x88] sm:$0xff] (%p125_p0)  ;;  %v8219_v23 = vld [vmem:[#allocation12 + $0x40] sm:$0xff] (%p125_p0) }
  0x51   : > { %v261_v42 = vsel %vm257_vm11, 1.0, %v10146_v34  ;;  %v276_v43 = vsel %vm256_vm10, 0.0, %v252_v26  ;;  %v277_v44 = vsel %vm257_vm11, 0.0, %v253_v31  ;;  %v289_v9 = vadd.f32 %v6869_v32, %v279_v25   ;;  %1819 = vmatpush.bf16.msra.mxu1 (%p125_p0), %v8152_v12  ;;  %v8364_v22 = vld [vmem:[#allocation12 + $0xc8] sm:$0xff] (%p125_p0)  ;;  %v8291_v25 = vld [vmem:[#allocation12 + $0x80] sm:$0xff] (%p125_p0) }
  0x52   : > { %9455 = vst [vmem:[%s10223_s7 + $0x60] sm:$0xff] %v8392_v38   ;;  %v8395_v45 = vpack.c.bf16 %v261_v42, %v260_v40  ;;  %v295_v46 = vmul.f32 0.96875, %v276_v43  ;;  %v290_v8 = vadd.f32 %v6870_v37, %v280_v27   ;;  %v296_v48 = vmul.f32 0.96875, %v277_v44  ;;  %v8363_v26 = vld [vmem:[#allocation12 + $0xc0] sm:$0xff] (%p125_p0) }
  0x53   : > { %v297_v49 = vadd.f32 %v293_v36, %v289_v9  ;;  %v282_v50 = vmul.f32 0.75, %v245_v24  ;;  %v291_v7 = vadd.f32 %v6871_v41, %v281_v28   ;;  %v8296_v9 = vld [vmem:[#allocation12 + $0xa8] sm:$0xff] (%p125_p0)  ;;  %3760 = vmatpush.bf16.msra.mxu3 (%p125_p0), %v8368_v13  ;;  %v8147_v24 = vld [vmem:[#allocation12] sm:$0xff] (%p125_p0) }
  0x54   : > { %9456 = vst [vmem:[%s10223_s7 + $0x68] sm:$0xff] %v8395_v45   ;;  %v298_v51 = vadd.f32 %v294_v39, %v290_v8  ;;  %2726 = vmatpush.bf16.msra.mxu2 (%p125_p0), %v8296_v9  ;;  %v8294_v8 = vld [vmem:[#allocation12 + $0x98] sm:$0xff] (%p125_p0) }
  0x55   : > { %vm301_vm12 = vcmp.ge.f32.partialorder %v297_v49, 640.0  ;;  %v292_v6 = vadd.f32 %v6872_v47, %v282_v50   ;;  %v299_v52 = vadd.f32 %v295_v46, %v291_v7  ;;  %v8150_v7 = vld [vmem:[#allocation12 + $0x18] sm:$0xff] (%p125_p0) }
  0x56   : > { %vm302_vm13 = vcmp.ge.f32.partialorder %v298_v51, 640.0  ;;  %v305_v53 = vsel %vm301_vm12, 1.0, %v10146_v34  ;;  %v321_v5 = vsel %vm301_vm12, 0.0, %v297_v49  }
  0x57   : > { %v306_v54 = vsel %vm302_vm13, 1.0, %v10146_v34  ;;  %v322_v4 = vsel %vm302_vm13, 0.0, %v298_v51   ;;  %v300_v55 = vadd.f32 %v296_v48, %v292_v6  ;;  %vm303_vm14 = vcmp.ge.f32.partialorder %v299_v52, 640.0  ;;  %v8367_v5 = vld [vmem:[#allocation12 + $0xe0] sm:$0xff] (%p125_p0)  ;;  %v8222_v6 = vld [vmem:[#allocation12 + $0x58] sm:$0xff] (%p125_p0) }
  0x58   : > { %v8398_v56 = vpack.c.bf16 %v306_v54, %v305_v53  ;;  %v307_v57 = vsel %vm303_vm14, 1.0, %v10146_v34  ;;  %v323_v3 = vsel %vm303_vm14, 0.0, %v299_v52   ;;  %v8295_v4 = vld [vmem:[#allocation12 + $0xa0] sm:$0xff] (%p125_p0)  ;;  %3761 = vmatpush.bf16.msra.mxu3 (%p125_p0), %v8367_v5 }
  0x59   : > { %vm304_vm15 = vcmp.ge.f32.partialorder %v300_v55, 640.0  ;;  %127 = sbr.rel (!%p125_p0) target bundleno = 56 (0x38), region = 92  ;;  %v8151_v3 = vld [vmem:[#allocation12 + $0x20] sm:$0xff] (%p125_p0)  ;;  %2727 = vmatpush.bf16.msra.mxu2 (%p125_p0), %v8295_v4 }
  0x5a   : > { %9457 = vst [vmem:[%s10223_s7 + $0x70] sm:$0xff] %v8398_v56   ;;  %v308_v58 = vsel %vm304_vm15, 1.0, %v10146_v34  ;;  %v324_v2 = vsel %vm304_vm15, 0.0, %v300_v55   ;;  %v8226_v34 = vld [vmem:[#allocation12 + $0x78] sm:$0xff] (%p125_p0)  ;;  %1820 = vmatpush.bf16.msra.mxu1 (%p125_p0), %v8151_v3 }
  0x5b   : > { %v8401_v59 = vpack.c.bf16 %v308_v58, %v307_v57  ;;  %1056 = vmatpush.bf16.msra.mxu0 (%p125_p0), %v8226_v34  ;;  %v8223_v2 = vld [vmem:[#allocation12 + $0x60] sm:$0xff] (%p125_p0) }
  0x5c   :  { %3762 = vmatpush.bf16.msra.mxu3 (%p125_p0), %v8366_v14 }
  0x5d   : > { %9458 = vst [vmem:[%s10223_s7 + $0x78] sm:$0xff] %v8401_v59   ;;  %2728 = vmatpush.bf16.msra.mxu2 (%p125_p0), %v8294_v8 }
  0x5e   :  { %1821 = vmatpush.bf16.msra.mxu1 %v8150_v7 }
  0x5f   :  { %1057 = vmatpush.bf16.msra.mxu0 %v8225_v63 }
  0x60   :  { %3763 = vmatpush.bf16.msra.mxu3 %v8365_v18 }
  0x61   :  { %2729 = vmatpush.bf16.msra.mxu2 %v8293_v17 }
  0x62   :  { %1822 = vmatpush.bf16.msra.mxu1 %v8149_v16 }
  0x63   :  { %1058 = vmatpush.bf16.msra.mxu0 %v8224_v11 }
  0x64   :  { %3764 = vmatpush.bf16.msra.mxu3 %v8364_v22  ;;  %v8155_v27 = vld [vmem:[#allocation3 + $0x20] sm:$0xff]  ;;  %v8083_v28 = vld [vmem:[#allocation3 + $0x30] sm:$0xff]  ;;  %v8156_v31 = vld [vmem:[#allocation3 + $0x28] sm:$0xff] }
  0x65   :  { %2730 = vmatpush.bf16.msra.mxu2 %v8292_v21  ;;  %v8227_v29 = vld [vmem:[#allocation3 + $0x10] sm:$0xff]  ;;  %v8299_v30 = vld [vmem:[#allocation3] sm:$0xff]  ;;  %v8084_v32 = vld [vmem:[#allocation3 + $0x38] sm:$0xff] }
  0x66   :  { %1823 = vmatpush.bf16.msra.mxu1 %v8148_v20  ;;  %v8228_v33 = vld [vmem:[#allocation3 + $0x18] sm:$0xff]  ;;  %v8300_v35 = vld [vmem:[#allocation3 + $0x8] sm:$0xff]  ;;  %v8157_v36 = vld [vmem:[#allocation3 + $0x30] sm:$0xff] }
  0x67   :  { %1059 = vmatpush.bf16.msra.mxu0 %v8223_v2  ;;  %v8085_v37 = vld [vmem:[#allocation3 + $0x40] sm:$0xff]  ;;  %v8301_v39 = vld [vmem:[#allocation3 + $0x10] sm:$0xff]  ;;  %v8158_v40 = vld [vmem:[#allocation3 + $0x38] sm:$0xff] }
  0x68   :  { %3765 = vmatpush.bf16.msra.mxu3 %v8363_v26  ;;  %v8229_v38 = vld [vmem:[#allocation3 + $0x20] sm:$0xff]  ;;  %v8086_v41 = vld [vmem:[#allocation3 + $0x48] sm:$0xff]  ;;  %v8302_v43 = vld [vmem:[#allocation3 + $0x18] sm:$0xff] }
  0x69   :  { %2731 = vmatpush.bf16.msra.mxu2 %v8291_v25  ;;  %v8230_v42 = vld [vmem:[#allocation3 + $0x28] sm:$0xff]  ;;  %v8159_v44 = vld [vmem:[#allocation3 + $0x40] sm:$0xff]  ;;  %v8087_v45 = vld [vmem:[#allocation3 + $0x50] sm:$0xff] }
  0x6a   :  { %1824 = vmatpush.bf16.msra.mxu1 %v8147_v24  ;;  %v8231_v46 = vld [vmem:[#allocation3 + $0x30] sm:$0xff]  ;;  %v8303_v47 = vld [vmem:[#allocation3 + $0x20] sm:$0xff]  ;;  %v8160_v48 = vld [vmem:[#allocation3 + $0x48] sm:$0xff] }
  0x6b   :  { %1060 = vmatpush.bf16.msra.mxu0 %v8222_v6  ;;  %3766 = vmatmul.bf16.vlgmr.msra.gmra.mxu3 %v8299_v30  ;;  %v8088_v49 = vld [vmem:[#allocation3 + $0x58] sm:$0xff]  ;;  %v8304_v51 = vld [vmem:[#allocation3 + $0x28] sm:$0xff]  ;;  %v8161_v52 = vld [vmem:[#allocation3 + $0x50] sm:$0xff] }
  0x6c   :  { %2732 = vmatmul.bf16.vlgmr.msra.gmra.mxu2 %v8227_v29  ;;  %v8232_v50 = vld [vmem:[#allocation3 + $0x38] sm:$0xff]  ;;  %v8089_v53 = vld [vmem:[#allocation3 + $0x60] sm:$0xff]  ;;  %v8305_v55 = vld [vmem:[#allocation3 + $0x30] sm:$0xff] }
  0x6d   :  { %1825 = vmatmul.bf16.vlgmr.msra.gmra.mxu1 %v8083_v28  ;;  %v8233_v54 = vld [vmem:[#allocation3 + $0x40] sm:$0xff]  ;;  %v8162_v56 = vld [vmem:[#allocation3 + $0x58] sm:$0xff]  ;;  %v8090_v57 = vld [vmem:[#allocation3 + $0x68] sm:$0xff] }
  0x6e   :  { %v8234_v58 = vld [vmem:[#allocation3 + $0x48] sm:$0xff]  ;;  %v8306_v59 = vld [vmem:[#allocation3 + $0x38] sm:$0xff]  ;;  %v8163_v34 = vld [vmem:[#allocation3 + $0x60] sm:$0xff] }
  0x6f   :  { %1061 = vmatpush.bf16.msra.mxu0 %v8221_v15  ;;  %v8091_v60 = vld [vmem:[#allocation3 + $0x70] sm:$0xff]  ;;  %v8307_v0 = vld [vmem:[#allocation3 + $0x40] sm:$0xff]  ;;  %v8164_v6 = vld [vmem:[#allocation3 + $0x68] sm:$0xff] }
  0x70   :  { %v8235_v63 = vld [vmem:[#allocation3 + $0x50] sm:$0xff]  ;;  %v8092_v7 = vld [vmem:[#allocation3 + $0x78] sm:$0xff]  ;;  %v8308_v17 = vld [vmem:[#allocation3 + $0x48] sm:$0xff] }
  0x71   :  { %v8236_v16 = vld [vmem:[#allocation3 + $0x58] sm:$0xff]  ;;  %v8165_v29 = vld [vmem:[#allocation3 + $0x70] sm:$0xff]  ;;  %v8093_v30 = vld [vmem:[#allocation3 + $0x80] sm:$0xff] }
  0x73   :  { %1062 = vmatpush.bf16.msra.mxu0 %v8220_v19 }
  0x77   :  { %1063 = vmatpush.bf16.msra.mxu0 %v8219_v23 }
  0x7a   :  { %1064 = vmatmul.bf16.vlgmr.msra.gmra.mxu0 %v8155_v27 }
  0x7b   :  { %3771 = vmatmul.bf16.gmra.mxu3 %v8300_v35  ;;  %v8237_v35 = vld [vmem:[#allocation3 + $0x60] sm:$0xff] }
  0x7c   :  { %2737 = vmatmul.bf16.gmra.mxu2 %v8228_v33 }
  0x7d   :  { %1830 = vmatmul.bf16.gmra.mxu1 %v8084_v32 }
  0x8a   :  { %1069 = vmatmul.bf16.gmra.mxu0 %v8156_v31 }
  0x8b   :  { %3776 = vmatmul.bf16.gmra.mxu3 %v8301_v39 }
  0x8c   :  { %2742 = vmatmul.bf16.gmra.mxu2 %v8229_v38 }
  0x8d   :  { %1835 = vmatmul.bf16.gmra.mxu1 %v8085_v37 }
  0x9a   :  { %1074 = vmatmul.bf16.gmra.mxu0 %v8157_v36  ;;  %v8309_v36 = vld [vmem:[#allocation3 + $0x50] sm:$0xff] }
  0x9b   :  { %3781 = vmatmul.bf16.gmra.mxu3 %v8302_v43 }
  0x9c   :  { %2747 = vmatmul.bf16.gmra.mxu2 %v8230_v42 }
  0x9d   :  { %1840 = vmatmul.bf16.gmra.mxu1 %v8086_v41 }
  0xaa   :  { %1079 = vmatmul.bf16.gmra.mxu0 %v8158_v40 }
  0xab   :  { %3786 = vmatmul.bf16.gmra.mxu3 %v8303_v47 }
  0xac   :  { %2752 = vmatmul.bf16.gmra.mxu2 %v8231_v46 }
  0xad   :  { %1845 = vmatmul.bf16.gmra.mxu1 %v8087_v45 }
  0xba   :  { %1084 = vmatmul.bf16.gmra.mxu0 %v8159_v44 }
  0xbb   :  { %3791 = vmatmul.bf16.gmra.mxu3 %v8304_v51 }
  0xbc   :  { %2757 = vmatmul.bf16.gmra.mxu2 %v8232_v50 }
  0xbd   :  { %1850 = vmatmul.bf16.gmra.mxu1 %v8088_v49  ;;  %v8094_v49 = vld [vmem:[#allocation3 + $0x88] sm:$0xff] }
  0xca   :  { %1089 = vmatmul.bf16.gmra.mxu0 %v8160_v48  ;;  %v8166_v48 = vld [vmem:[#allocation3 + $0x78] sm:$0xff] }
  0xcb   :  { %3796 = vmatmul.bf16.gmra.mxu3 %v8305_v55 }
  0xcc   :  { %2762 = vmatmul.bf16.gmra.mxu2 %v8233_v54  ;;  %v8310_v54 = vld [vmem:[#allocation3 + $0x58] sm:$0xff] }
  0xcd   :  { %1855 = vmatmul.bf16.gmra.mxu1 %v8089_v53  ;;  %v8238_v53 = vld [vmem:[#allocation3 + $0x68] sm:$0xff] }
  0xda   :  { %1094 = vmatmul.bf16.gmra.mxu0 %v8161_v52 }
  0xdb   :  { %3801 = vmatmul.bf16.gmra.mxu3 %v8306_v59 }
  0xdc   :  { %2767 = vmatmul.bf16.gmra.mxu2 %v8234_v58 }
  0xdd   :  { %1860 = vmatmul.bf16.gmra.mxu1 %v8090_v57 }
  0xea   :  { %1099 = vmatmul.bf16.gmra.mxu0 %v8162_v56  ;;  %v1826_v62 = vpop.f32.mrf.mxu1 }
  0xeb   :  { %3806 = vmatmul.bf16.gmra.mxu3 %v8307_v0 }
  0xec   :  { %2772 = vmatmul.bf16.gmra.mxu2 %v8235_v63 }
  0xed   :  { %1865 = vmatmul.bf16.gmra.mxu1 %v8091_v60 }
  0xee   :  { %v3767_v11 = vpop.f32.mrf.mxu3 }
  0xef   :  { %v2733_v10 = vpop.f32.mrf.mxu2 }
  0xf2   :  { %v1828_v13 = vpop.f32.mrf.mxu1 }
  0xf6   :  { %v3769_v5 = vpop.f32.mrf.mxu3 }
  0xf7   :  { %v1065_v61 = vpop.f32.mrf.mxu0  ;;  %v2735_v4 = vpop.f32.mrf.mxu2 }
  0xf8   :  { %v1827_v1 = vadd.f32 %v1826_v62, %v1065_v61 }
  0xfa   :  { %1104 = vmatmul.bf16.gmra.mxu0 %v8163_v34  ;;  %v3053_v12 = vadd.f32 %v2733_v10, %v1827_v1  ;;  %v1831_v15 = vpop.f32.mrf.mxu1  ;;  %v8167_v1 = vld [vmem:[#allocation3 + $0x80] sm:$0xff]  ;;  %v8095_v10 = vld [vmem:[#allocation3 + $0x90] sm:$0xff] }
  0xfb   :  { %3811 = vmatmul.bf16.gmra.mxu3 %v8308_v17 }
  0xfc   :  { %v4087_v2 = vadd.f32 %v3767_v11, %v3053_v12  ;;  %2777 = vmatmul.bf16.gmra.mxu2 %v8236_v16 }
  0xfd   :  { %1870 = vmatmul.bf16.gmra.mxu1 %v8092_v7 }
  0xfe   :  { %4215 = vst [vmem:[#allocation2] sm:$0xff] %v4087_v2  ;;  %v3772_v21 = vpop.f32.mrf.mxu3  ;;  %v8311_v2 = vld [vmem:[#allocation3 + $0x60] sm:$0xff] }
  0xff   :  { %v1067_v9 = vpop.f32.mrf.mxu0  ;;  %v2738_v20 = vpop.f32.mrf.mxu2 }
 0x100   :  { %v1829_v3 = vadd.f32 %v1828_v13, %v1067_v9  ;;  %v8239_v13 = vld [vmem:[#allocation3 + $0x70] sm:$0xff] }
 0x102   :  { %v3054_v8 = vadd.f32 %v2735_v4, %v1829_v3  ;;  %v1833_v24 = vpop.f32.mrf.mxu1 }
 0x104   :  { %v4088_v18 = vadd.f32 %v3769_v5, %v3054_v8 }
 0x106   :  { %4216 = vst [vmem:[#allocation2 + $0x8] sm:$0xff] %v4088_v18  ;;  %v3774_v28 = vpop.f32.mrf.mxu3 }
 0x107   :  { %v1070_v14 = vpop.f32.mrf.mxu0  ;;  %v2740_v27 = vpop.f32.mrf.mxu2 }
 0x108   :  { %v1832_v19 = vadd.f32 %v1831_v15, %v1070_v14 }
 0x10a   :  { %1109 = vmatmul.bf16.gmra.mxu0 %v8164_v6  ;;  %v3055_v22 = vadd.f32 %v2738_v20, %v1832_v19  ;;  %v1836_v33 = vpop.f32.mrf.mxu1  ;;  %v8168_v19 = vld [vmem:[#allocation3 + $0x88] sm:$0xff]  ;;  %v8096_v20 = vld [vmem:[#allocation3 + $0x98] sm:$0xff] }
 0x10b   :  { %3816 = vmatmul.bf16.gmra.mxu3 %v8309_v36 }
 0x10c   :  { %v4089_v25 = vadd.f32 %v3772_v21, %v3055_v22  ;;  %2782 = vmatmul.bf16.gmra.mxu2 %v8237_v35 }
 0x10d   :  { %1875 = vmatmul.bf16.gmra.mxu1 %v8093_v30 }
 0x10e   :  { %4217 = vst [vmem:[#allocation2 + $0x10] sm:$0xff] %v4089_v25  ;;  %v3777_v40 = vpop.f32.mrf.mxu3  ;;  %v8312_v25 = vld [vmem:[#allocation3 + $0x68] sm:$0xff] }
 0x10f   :  { %v1072_v23 = vpop.f32.mrf.mxu0  ;;  %v2743_v39 = vpop.f32.mrf.mxu2 }
 0x110   :  { %v1834_v26 = vadd.f32 %v1833_v24, %v1072_v23  ;;  %v8240_v24 = vld [vmem:[#allocation3 + $0x78] sm:$0xff] }
 0x112   :  { %v3056_v31 = vadd.f32 %v2740_v27, %v1834_v26  ;;  %v1838_v43 = vpop.f32.mrf.mxu1 }
 0x114   :  { %v4090_v37 = vadd.f32 %v3774_v28, %v3056_v31 }
 0x116   :  { %4218 = vst [vmem:[#allocation2 + $0x18] sm:$0xff] %v4090_v37  ;;  %v3779_v47 = vpop.f32.mrf.mxu3 }
 0x117   :  { %v1075_v32 = vpop.f32.mrf.mxu0  ;;  %v2745_v46 = vpop.f32.mrf.mxu2 }
 0x118   :  { %v1837_v38 = vadd.f32 %v1836_v33, %v1075_v32 }
 0x11a   :  { %1114 = vmatmul.bf16.gmra.mxu0 %v8165_v29  ;;  %v3057_v41 = vadd.f32 %v2743_v39, %v1837_v38  ;;  %v1841_v52 = vpop.f32.mrf.mxu1  ;;  %v8169_v38 = vld [vmem:[#allocation3 + $0x90] sm:$0xff]  ;;  %v8097_v39 = vld [vmem:[#allocation3 + $0xa0] sm:$0xff] }
 0x11b   :  { %3821 = vmatmul.bf16.gmra.mxu3 %v8310_v54 }
 0x11c   :  { %v4091_v44 = vadd.f32 %v3777_v40, %v3057_v41  ;;  %2787 = vmatmul.bf16.gmra.mxu2 %v8238_v53 }
 0x11d   :  { %1880 = vmatmul.bf16.gmra.mxu1 %v8094_v49 }
 0x11e   :  { %4219 = vst [vmem:[#allocation2 + $0x20] sm:$0xff] %v4091_v44  ;;  %v3782_v58 = vpop.f32.mrf.mxu3  ;;  %v8313_v44 = vld [vmem:[#allocation3 + $0x70] sm:$0xff] }
 0x11f   :  { %v1077_v42 = vpop.f32.mrf.mxu0  ;;  %v2748_v57 = vpop.f32.mrf.mxu2 }
 0x120   :  { %v1839_v45 = vadd.f32 %v1838_v43, %v1077_v42  ;;  %v8241_v43 = vld [vmem:[#allocation3 + $0x80] sm:$0xff] }
 0x122   :  { %v3058_v50 = vadd.f32 %v2745_v46, %v1839_v45  ;;  %v1843_v60 = vpop.f32.mrf.mxu1 }
 0x124   :  { %v4092_v55 = vadd.f32 %v3779_v47, %v3058_v50 }
 0x126   :  { %4220 = vst [vmem:[#allocation2 + $0x28] sm:$0xff] %v4092_v55  ;;  %v3784_v0 = vpop.f32.mrf.mxu3 }
 0x127   :  { %v1080_v51 = vpop.f32.mrf.mxu0  ;;  %v2750_v63 = vpop.f32.mrf.mxu2 }
 0x128   :  { %v1842_v56 = vadd.f32 %v1841_v52, %v1080_v51 }
 0x12a   :  { %1119 = vmatmul.bf16.gmra.mxu0 %v8166_v48  ;;  %v3059_v59 = vadd.f32 %v2748_v57, %v1842_v56  ;;  %v1846_v9 = vpop.f32.mrf.mxu1  ;;  %v8170_v56 = vld [vmem:[#allocation3 + $0x98] sm:$0xff]  ;;  %v8098_v57 = vld [vmem:[#allocation3 + $0xa8] sm:$0xff] }
 0x12b   :  { %3826 = vmatmul.bf16.gmra.mxu3 %v8311_v2 }
 0x12c   :  { %v4093_v61 = vadd.f32 %v3782_v58, %v3059_v59  ;;  %2792 = vmatmul.bf16.gmra.mxu2 %v8239_v13 }
 0x12d   :  { %1885 = vmatmul.bf16.gmra.mxu1 %v8095_v10 }
 0x12e   :  { %4221 = vst [vmem:[#allocation2 + $0x30] sm:$0xff] %v4093_v61  ;;  %v3787_v6 = vpop.f32.mrf.mxu3  ;;  %v8314_v61 = vld [vmem:[#allocation3 + $0x78] sm:$0xff] }
 0x12f   :  { %v1082_v34 = vpop.f32.mrf.mxu0  ;;  %v2753_v5 = vpop.f32.mrf.mxu2 }
 0x130   :  { %v1844_v62 = vadd.f32 %v1843_v60, %v1082_v34  ;;  %v8242_v60 = vld [vmem:[#allocation3 + $0x88] sm:$0xff] }
 0x132   :  { %v3060_v11 = vadd.f32 %v2750_v63, %v1844_v62  ;;  %v1848_v14 = vpop.f32.mrf.mxu1 }
 0x134   :  { %v4094_v3 = vadd.f32 %v3784_v0, %v3060_v11 }
 0x136   :  { %4222 = vst [vmem:[#allocation2 + $0x38] sm:$0xff] %v4094_v3  ;;  %v3789_v18 = vpop.f32.mrf.mxu3 }
 0x137   :  { %v1085_v12 = vpop.f32.mrf.mxu0  ;;  %v2755_v17 = vpop.f32.mrf.mxu2 }
 0x138   :  { %v1847_v4 = vadd.f32 %v1846_v9, %v1085_v12 }
 0x13a   :  { %1124 = vmatmul.bf16.gmra.mxu0 %v8167_v1  ;;  %v3061_v7 = vadd.f32 %v2753_v5, %v1847_v4  ;;  %v1851_v23 = vpop.f32.mrf.mxu1  ;;  %v8171_v4 = vld [vmem:[#allocation3 + $0xa0] sm:$0xff]  ;;  %v8099_v5 = vld [vmem:[#allocation3 + $0xb0] sm:$0xff] }
 0x13b   :  { %3831 = vmatmul.bf16.gmra.mxu3 %v8312_v25 }
 0x13c   :  { %v4095_v15 = vadd.f32 %v3787_v6, %v3061_v7  ;;  %2797 = vmatmul.bf16.gmra.mxu2 %v8240_v24 }
 0x13d   :  { %1890 = vmatmul.bf16.gmra.mxu1 %v8096_v20 }
 0x13e   :  { %4223 = vst [vmem:[#allocation2 + $0x40] sm:$0xff] %v4095_v15  ;;  %v3792_v29 = vpop.f32.mrf.mxu3  ;;  %v8315_v15 = vld [vmem:[#allocation3 + $0x80] sm:$0xff] }
 0x13f   :  { %v1087_v8 = vpop.f32.mrf.mxu0  ;;  %v2758_v28 = vpop.f32.mrf.mxu2 }
 0x140   :  { %v1849_v16 = vadd.f32 %v1848_v14, %v1087_v8  ;;  %v8243_v14 = vld [vmem:[#allocation3 + $0x90] sm:$0xff] }
 0x142   :  { %v3062_v21 = vadd.f32 %v2755_v17, %v1849_v16  ;;  %v1853_v32 = vpop.f32.mrf.mxu1 }
 0x144   :  { %v4096_v26 = vadd.f32 %v3789_v18, %v3062_v21 }
 0x146   :  { %4224 = vst [vmem:[#allocation2 + $0x48] sm:$0xff] %v4096_v26  ;;  %v3794_v37 = vpop.f32.mrf.mxu3 }
 0x147   :  { %v1090_v22 = vpop.f32.mrf.mxu0  ;;  %v2760_v36 = vpop.f32.mrf.mxu2 }
 0x148   :  { %v1852_v27 = vadd.f32 %v1851_v23, %v1090_v22 }
 0x14a   :  { %1129 = vmatmul.bf16.gmra.mxu0 %v8168_v19  ;;  %v3063_v30 = vadd.f32 %v2758_v28, %v1852_v27  ;;  %v1856_v42 = vpop.f32.mrf.mxu1  ;;  %v8172_v27 = vld [vmem:[#allocation3 + $0xa8] sm:$0xff]  ;;  %v8100_v28 = vld [vmem:[#allocation3 + $0xb8] sm:$0xff] }
 0x14b   :  { %3836 = vmatmul.bf16.gmra.mxu3 %v8313_v44 }
 0x14c   :  { %v4097_v33 = vadd.f32 %v3792_v29, %v3063_v30  ;;  %2802 = vmatmul.bf16.gmra.mxu2 %v8241_v43 }
 0x14d   :  { %1895 = vmatmul.bf16.gmra.mxu1 %v8097_v39 }
 0x14e   :  { %4225 = vst [vmem:[#allocation2 + $0x50] sm:$0xff] %v4097_v33  ;;  %v3797_v48 = vpop.f32.mrf.mxu3  ;;  %v8316_v33 = vld [vmem:[#allocation3 + $0x88] sm:$0xff] }
 0x14f   :  { %v1092_v31 = vpop.f32.mrf.mxu0  ;;  %v2763_v47 = vpop.f32.mrf.mxu2 }
 0x150   :  { %v1854_v35 = vadd.f32 %v1853_v32, %v1092_v31  ;;  %v8244_v32 = vld [vmem:[#allocation3 + $0x98] sm:$0xff] }
 0x152   :  { %v3064_v40 = vadd.f32 %v2760_v36, %v1854_v35  ;;  %v1858_v51 = vpop.f32.mrf.mxu1 }
 0x154   :  { %v4098_v45 = vadd.f32 %v3794_v37, %v3064_v40 }
 0x156   :  { %4226 = vst [vmem:[#allocation2 + $0x58] sm:$0xff] %v4098_v45  ;;  %v3799_v55 = vpop.f32.mrf.mxu3 }
 0x157   :  { %v1095_v41 = vpop.f32.mrf.mxu0  ;;  %v2765_v54 = vpop.f32.mrf.mxu2 }
 0x158   :  { %v1857_v46 = vadd.f32 %v1856_v42, %v1095_v41 }
 0x15a   :  { %1134 = vmatmul.bf16.gmra.mxu0 %v8169_v38  ;;  %v3065_v49 = vadd.f32 %v2763_v47, %v1857_v46  ;;  %v1861_v34 = vpop.f32.mrf.mxu1  ;;  %v8173_v46 = vld [vmem:[#allocation3 + $0xb0] sm:$0xff]  ;;  %v8101_v47 = vld [vmem:[#allocation3 + $0xc0] sm:$0xff] }
 0x15b   :  { %3841 = vmatmul.bf16.gmra.mxu3 %v8314_v61 }
 0x15c   :  { %v4099_v52 = vadd.f32 %v3797_v48, %v3065_v49  ;;  %2807 = vmatmul.bf16.gmra.mxu2 %v8242_v60 }
 0x15d   :  { %1900 = vmatmul.bf16.gmra.mxu1 %v8098_v57 }
 0x15e   :  { %4227 = vst [vmem:[#allocation2 + $0x60] sm:$0xff] %v4099_v52  ;;  %v3802_v1 = vpop.f32.mrf.mxu3  ;;  %v8317_v52 = vld [vmem:[#allocation3 + $0x90] sm:$0xff] }
 0x15f   :  { %v1097_v50 = vpop.f32.mrf.mxu0  ;;  %v2768_v0 = vpop.f32.mrf.mxu2 }
 0x160   :  { %v1859_v53 = vadd.f32 %v1858_v51, %v1097_v50  ;;  %v8245_v51 = vld [vmem:[#allocation3 + $0xa0] sm:$0xff] }
 0x162   :  { %v3066_v58 = vadd.f32 %v2765_v54, %v1859_v53  ;;  %v1863_v12 = vpop.f32.mrf.mxu1 }
 0x164   :  { %v4100_v62 = vadd.f32 %v3799_v55, %v3066_v58 }
 0x166   :  { %4228 = vst [vmem:[#allocation2 + $0x68] sm:$0xff] %v4100_v62  ;;  %v3804_v3 = vpop.f32.mrf.mxu3 }
 0x167   :  { %v1100_v59 = vpop.f32.mrf.mxu0  ;;  %v2770_v2 = vpop.f32.mrf.mxu2 }
 0x168   :  { %v1862_v63 = vadd.f32 %v1861_v34, %v1100_v59 }
 0x16a   :  { %1139 = vmatmul.bf16.gmra.mxu0 %v8170_v56  ;;  %v3067_v10 = vadd.f32 %v2768_v0, %v1862_v63  ;;  %v1866_v8 = vpop.f32.mrf.mxu1  ;;  %v8174_v63 = vld [vmem:[#allocation3 + $0xb8] sm:$0xff]  ;;  %v8102_v0 = vld [vmem:[#allocation3 + $0xc8] sm:$0xff] }
 0x16b   :  { %3846 = vmatmul.bf16.gmra.mxu3 %v8315_v15 }
 0x16c   :  { %v4101_v9 = vadd.f32 %v3802_v1, %v3067_v10  ;;  %2812 = vmatmul.bf16.gmra.mxu2 %v8243_v14 }
 0x16d   :  { %1905 = vmatmul.bf16.gmra.mxu1 %v8099_v5 }
 0x16e   :  { %4229 = vst [vmem:[#allocation2 + $0x70] sm:$0xff] %v4101_v9  ;;  %v3807_v19 = vpop.f32.mrf.mxu3  ;;  %v8318_v9 = vld [vmem:[#allocation3 + $0x98] sm:$0xff] }
 0x16f   :  { %v1102_v11 = vpop.f32.mrf.mxu0  ;;  %v2773_v18 = vpop.f32.mrf.mxu2 }
 0x170   :  { %v1864_v13 = vadd.f32 %v1863_v12, %v1102_v11  ;;  %v8246_v12 = vld [vmem:[#allocation3 + $0xa8] sm:$0xff] }
 0x172   :  { %v3068_v6 = vadd.f32 %v2770_v2, %v1864_v13  ;;  %v1868_v22 = vpop.f32.mrf.mxu1 }
 0x174   :  { %v4102_v16 = vadd.f32 %v3804_v3, %v3068_v6 }
 0x176   :  { %4230 = vst [vmem:[#allocation2 + $0x78] sm:$0xff] %v4102_v16  ;;  %v3809_v26 = vpop.f32.mrf.mxu3 }
 0x177   :  { %v1105_v7 = vpop.f32.mrf.mxu0  ;;  %v2775_v25 = vpop.f32.mrf.mxu2 }
 0x178   :  { %v1867_v17 = vadd.f32 %v1866_v8, %v1105_v7 }
 0x17a   :  { %1144 = vmatmul.bf16.gmra.mxu0 %v8171_v4  ;;  %v3069_v20 = vadd.f32 %v2773_v18, %v1867_v17  ;;  %v1871_v31 = vpop.f32.mrf.mxu1  ;;  %v8175_v17 = vld [vmem:[#allocation3 + $0xc0] sm:$0xff]  ;;  %v8103_v18 = vld [vmem:[#allocation3 + $0xd0] sm:$0xff] }
 0x17b   :  { %3851 = vmatmul.bf16.gmra.mxu3 %v8316_v33 }
 0x17c   :  { %v4103_v23 = vadd.f32 %v3807_v19, %v3069_v20  ;;  %2817 = vmatmul.bf16.gmra.mxu2 %v8244_v32 }
 0x17d   :  { %1910 = vmatmul.bf16.gmra.mxu1 %v8100_v28 }
 0x17e   :  { %4231 = vst [vmem:[#allocation2 + $0x80] sm:$0xff] %v4103_v23  ;;  %v3812_v38 = vpop.f32.mrf.mxu3  ;;  %v8319_v23 = vld [vmem:[#allocation3 + $0xa0] sm:$0xff] }
 0x17f   :  { %v1107_v21 = vpop.f32.mrf.mxu0  ;;  %v2778_v37 = vpop.f32.mrf.mxu2 }
 0x180   :  { %v1869_v24 = vadd.f32 %v1868_v22, %v1107_v21  ;;  %v8247_v22 = vld [vmem:[#allocation3 + $0xb0] sm:$0xff] }
 0x182   :  { %v3070_v29 = vadd.f32 %v2775_v25, %v1869_v24  ;;  %v1873_v41 = vpop.f32.mrf.mxu1 }
 0x184   :  { %v4104_v35 = vadd.f32 %v3809_v26, %v3070_v29 }
 0x186   :  { %4232 = vst [vmem:[#allocation2 + $0x88] sm:$0xff] %v4104_v35  ;;  %v3814_v45 = vpop.f32.mrf.mxu3 }
 0x187   :  { %v1110_v30 = vpop.f32.mrf.mxu0  ;;  %v2780_v44 = vpop.f32.mrf.mxu2 }
 0x188   :  { %v1872_v36 = vadd.f32 %v1871_v31, %v1110_v30 }
 0x18a   :  { %1149 = vmatmul.bf16.gmra.mxu0 %v8172_v27  ;;  %v3071_v39 = vadd.f32 %v2778_v37, %v1872_v36  ;;  %v1876_v50 = vpop.f32.mrf.mxu1  ;;  %v8176_v36 = vld [vmem:[#allocation3 + $0xc8] sm:$0xff]  ;;  %v8104_v37 = vld [vmem:[#allocation3 + $0xd8] sm:$0xff] }
 0x18b   :  { %3856 = vmatmul.bf16.gmra.mxu3 %v8317_v52 }
 0x18c   :  { %v4105_v42 = vadd.f32 %v3812_v38, %v3071_v39  ;;  %2822 = vmatmul.bf16.gmra.mxu2 %v8245_v51 }
 0x18d   :  { %1915 = vmatmul.bf16.gmra.mxu1 %v8101_v47 }
 0x18e   :  { %4233 = vst [vmem:[#allocation2 + $0x90] sm:$0xff] %v4105_v42  ;;  %v3817_v56 = vpop.f32.mrf.mxu3  ;;  %v8320_v42 = vld [vmem:[#allocation3 + $0xa8] sm:$0xff] }
 0x18f   :  { %v1112_v40 = vpop.f32.mrf.mxu0  ;;  %v2783_v55 = vpop.f32.mrf.mxu2 }
 0x190   :  { %v1874_v43 = vadd.f32 %v1873_v41, %v1112_v40  ;;  %v8248_v41 = vld [vmem:[#allocation3 + $0xb8] sm:$0xff] }
 0x192   :  { %v3072_v48 = vadd.f32 %v2780_v44, %v1874_v43  ;;  %v1878_v59 = vpop.f32.mrf.mxu1 }
 0x194   :  { %v4106_v53 = vadd.f32 %v3814_v45, %v3072_v48 }
 0x196   :  { %4234 = vst [vmem:[#allocation2 + $0x98] sm:$0xff] %v4106_v53  ;;  %v3819_v62 = vpop.f32.mrf.mxu3 }
 0x197   :  { %v1115_v49 = vpop.f32.mrf.mxu0  ;;  %v2785_v61 = vpop.f32.mrf.mxu2 }
 0x198   :  { %v1877_v54 = vadd.f32 %v1876_v50, %v1115_v49 }
 0x19a   :  { %1154 = vmatmul.bf16.gmra.mxu0 %v8173_v46  ;;  %v3073_v57 = vadd.f32 %v2783_v55, %v1877_v54  ;;  %v1881_v11 = vpop.f32.mrf.mxu1  ;;  %v8177_v54 = vld [vmem:[#allocation3 + $0xd0] sm:$0xff]  ;;  %v8105_v55 = vld [vmem:[#allocation3 + $0xe0] sm:$0xff] }
 0x19b   :  { %3861 = vmatmul.bf16.gmra.mxu3 %v8318_v9 }
 0x19c   :  { %v4107_v34 = vadd.f32 %v3817_v56, %v3073_v57  ;;  %2827 = vmatmul.bf16.gmra.mxu2 %v8246_v12 }
 0x19d   :  { %1920 = vmatmul.bf16.gmra.mxu1 %v8102_v0 }
 0x19e   :  { %4235 = vst [vmem:[#allocation2 + $0xa0] sm:$0xff] %v4107_v34  ;;  %v3822_v4 = vpop.f32.mrf.mxu3  ;;  %v8321_v34 = vld [vmem:[#allocation3 + $0xb0] sm:$0xff] }
 0x19f   :  { %v1117_v58 = vpop.f32.mrf.mxu0  ;;  %v2788_v3 = vpop.f32.mrf.mxu2 }
 0x1a0   :  { %v1879_v60 = vadd.f32 %v1878_v59, %v1117_v58  ;;  %v8249_v59 = vld [vmem:[#allocation3 + $0xc0] sm:$0xff] }
 0x1a2   :  { %v3074_v1 = vadd.f32 %v2785_v61, %v1879_v60  ;;  %v1883_v7 = vpop.f32.mrf.mxu1 }
 0x1a4   :  { %v4108_v13 = vadd.f32 %v3819_v62, %v3074_v1 }
 0x1a6   :  { %4236 = vst [vmem:[#allocation2 + $0xa8] sm:$0xff] %v4108_v13  ;;  %v3824_v16 = vpop.f32.mrf.mxu3 }
 0x1a7   :  { %v1120_v10 = vpop.f32.mrf.mxu0  ;;  %v2790_v15 = vpop.f32.mrf.mxu2 }
 0x1a8   :  { %v1882_v2 = vadd.f32 %v1881_v11, %v1120_v10 }
 0x1aa   :  { %1159 = vmatmul.bf16.gmra.mxu0 %v8174_v63  ;;  %v3075_v5 = vadd.f32 %v2788_v3, %v1882_v2  ;;  %v1886_v21 = vpop.f32.mrf.mxu1  ;;  %v8178_v2 = vld [vmem:[#allocation3 + $0xd8] sm:$0xff]  ;;  %v8106_v3 = vld [vmem:[#allocation3 + $0xe8] sm:$0xff] }
 0x1ab   :  { %3866 = vmatmul.bf16.gmra.mxu3 %v8319_v23 }
 0x1ac   :  { %v4109_v8 = vadd.f32 %v3822_v4, %v3075_v5  ;;  %2832 = vmatmul.bf16.gmra.mxu2 %v8247_v22 }
 0x1ad   :  { %1925 = vmatmul.bf16.gmra.mxu1 %v8103_v18 }
 0x1ae   :  { %4237 = vst [vmem:[#allocation2 + $0xb0] sm:$0xff] %v4109_v8  ;;  %v3827_v27 = vpop.f32.mrf.mxu3  ;;  %v8322_v8 = vld [vmem:[#allocation3 + $0xb8] sm:$0xff] }
 0x1af   :  { %v1122_v6 = vpop.f32.mrf.mxu0  ;;  %v2793_v26 = vpop.f32.mrf.mxu2 }
 0x1b0   :  { %v1884_v14 = vadd.f32 %v1883_v7, %v1122_v6  ;;  %v8250_v7 = vld [vmem:[#allocation3 + $0xc8] sm:$0xff] }
 0x1b2   :  { %v3076_v19 = vadd.f32 %v2790_v15, %v1884_v14  ;;  %v1888_v30 = vpop.f32.mrf.mxu1 }
 0x1b4   :  { %v4110_v24 = vadd.f32 %v3824_v16, %v3076_v19 }
 0x1b6   :  { %4238 = vst [vmem:[#allocation2 + $0xb8] sm:$0xff] %v4110_v24  ;;  %v3829_v35 = vpop.f32.mrf.mxu3 }
 0x1b7   :  { %v1125_v20 = vpop.f32.mrf.mxu0  ;;  %v2795_v33 = vpop.f32.mrf.mxu2 }
 0x1b8   :  { %v1887_v25 = vadd.f32 %v1886_v21, %v1125_v20 }
 0x1ba   :  { %1164 = vmatmul.bf16.gmra.mxu0 %v8175_v17  ;;  %v3077_v28 = vadd.f32 %v2793_v26, %v1887_v25  ;;  %v1891_v40 = vpop.f32.mrf.mxu1  ;;  %v8179_v25 = vld [vmem:[#allocation3 + $0xe0] sm:$0xff]  ;;  %v8107_v26 = vld [vmem:[#allocation3 + $0xf0] sm:$0xff] }
 0x1bb   :  { %3871 = vmatmul.bf16.gmra.mxu3 %v8320_v42 }
 0x1bc   :  { %v4111_v31 = vadd.f32 %v3827_v27, %v3077_v28  ;;  %2837 = vmatmul.bf16.gmra.mxu2 %v8248_v41 }
 0x1bd   :  { %1930 = vmatmul.bf16.gmra.mxu1 %v8104_v37 }
 0x1be   :  { %4239 = vst [vmem:[#allocation2 + $0xc0] sm:$0xff] %v4111_v31  ;;  %v3832_v46 = vpop.f32.mrf.mxu3  ;;  %v8323_v31 = vld [vmem:[#allocation3 + $0xc0] sm:$0xff] }
 0x1bf   :  { %v1127_v29 = vpop.f32.mrf.mxu0  ;;  %v2798_v45 = vpop.f32.mrf.mxu2 }
 0x1c0   :  { %v1889_v32 = vadd.f32 %v1888_v30, %v1127_v29  ;;  %v8251_v30 = vld [vmem:[#allocation3 + $0xd0] sm:$0xff] }
 0x1c2   :  { %v3078_v38 = vadd.f32 %v2795_v33, %v1889_v32  ;;  %v1893_v49 = vpop.f32.mrf.mxu1 }
 0x1c4   :  { %v4112_v43 = vadd.f32 %v3829_v35, %v3078_v38 }
 0x1c6   :  { %4240 = vst [vmem:[#allocation2 + $0xc8] sm:$0xff] %v4112_v43  ;;  %v3834_v53 = vpop.f32.mrf.mxu3 }
 0x1c7   :  { %v1130_v39 = vpop.f32.mrf.mxu0  ;;  %v2800_v52 = vpop.f32.mrf.mxu2 }
 0x1c8   :  { %v1892_v44 = vadd.f32 %v1891_v40, %v1130_v39 }
 0x1ca   :  { %1169 = vmatmul.bf16.gmra.mxu0 %v8176_v36  ;;  %v3079_v47 = vadd.f32 %v2798_v45, %v1892_v44  ;;  %v1896_v58 = vpop.f32.mrf.mxu1  ;;  %v8180_v44 = vld [vmem:[#allocation3 + $0xe8] sm:$0xff]  ;;  %v8108_v45 = vld [vmem:[#allocation3 + $0xf8] sm:$0xff] }
 0x1cb   :  { %3876 = vmatmul.bf16.gmra.mxu3 %v8321_v34 }
 0x1cc   :  { %v4113_v50 = vadd.f32 %v3832_v46, %v3079_v47  ;;  %2842 = vmatmul.bf16.gmra.mxu2 %v8249_v59 }
 0x1cd   :  { %1935 = vmatmul.bf16.gmra.mxu1 %v8105_v55 }
 0x1ce   :  { %4241 = vst [vmem:[#allocation2 + $0xd0] sm:$0xff] %v4113_v50  ;;  %v3837_v63 = vpop.f32.mrf.mxu3  ;;  %v8324_v50 = vld [vmem:[#allocation3 + $0xc8] sm:$0xff] }
 0x1cf   :  { %v1132_v48 = vpop.f32.mrf.mxu0  ;;  %v2803_v62 = vpop.f32.mrf.mxu2 }
 0x1d0   :  { %v1894_v51 = vadd.f32 %v1893_v49, %v1132_v48  ;;  %v8252_v49 = vld [vmem:[#allocation3 + $0xd8] sm:$0xff] }
 0x1d2   :  { %v3080_v56 = vadd.f32 %v2800_v52, %v1894_v51  ;;  %v1898_v10 = vpop.f32.mrf.mxu1 }
 0x1d4   :  { %v4114_v60 = vadd.f32 %v3834_v53, %v3080_v56 }
 0x1d6   :  { %4242 = vst [vmem:[#allocation2 + $0xd8] sm:$0xff] %v4114_v60  ;;  %v3839_v13 = vpop.f32.mrf.mxu3 }
 0x1d7   :  { %v1135_v57 = vpop.f32.mrf.mxu0  ;;  %v2805_v9 = vpop.f32.mrf.mxu2 }
 0x1d8   :  { %v1897_v61 = vadd.f32 %v1896_v58, %v1135_v57 }
 0x1da   :  { %1174 = vmatmul.bf16.gmra.mxu0 %v8177_v54  ;;  %v3081_v0 = vadd.f32 %v2803_v62, %v1897_v61  ;;  %v1901_v6 = vpop.f32.mrf.mxu1  ;;  %v8181_v61 = vld [vmem:[#allocation3 + $0xf0] sm:$0xff]  ;;  %v8109_v62 = vld [vmem:[#allocation3 + $0x100] sm:$0xff] }
 0x1db   :  { %3881 = vmatmul.bf16.gmra.mxu3 %v8322_v8 }
 0x1dc   :  { %v4115_v11 = vadd.f32 %v3837_v63, %v3081_v0  ;;  %2847 = vmatmul.bf16.gmra.mxu2 %v8250_v7 }
 0x1dd   :  { %1940 = vmatmul.bf16.gmra.mxu1 %v8106_v3 }
 0x1de   :  { %4243 = vst [vmem:[#allocation2 + $0xe0] sm:$0xff] %v4115_v11  ;;  %v3842_v17 = vpop.f32.mrf.mxu3  ;;  %v8325_v11 = vld [vmem:[#allocation3 + $0xd0] sm:$0xff] }
 0x1df   :  { %v1137_v1 = vpop.f32.mrf.mxu0  ;;  %v2808_v16 = vpop.f32.mrf.mxu2 }
 0x1e0   :  { %v1899_v12 = vadd.f32 %v1898_v10, %v1137_v1  ;;  %v8253_v10 = vld [vmem:[#allocation3 + $0xe0] sm:$0xff] }
 0x1e2   :  { %v3082_v4 = vadd.f32 %v2805_v9, %v1899_v12  ;;  %v1903_v20 = vpop.f32.mrf.mxu1 }
 0x1e4   :  { %v4116_v14 = vadd.f32 %v3839_v13, %v3082_v4 }
 0x1e6   :  { %4244 = vst [vmem:[#allocation2 + $0xe8] sm:$0xff] %v4116_v14  ;;  %v3844_v24 = vpop.f32.mrf.mxu3 }
 0x1e7   :  { %v1140_v5 = vpop.f32.mrf.mxu0  ;;  %v2810_v23 = vpop.f32.mrf.mxu2 }
 0x1e8   :  { %v1902_v15 = vadd.f32 %v1901_v6, %v1140_v5 }
 0x1ea   :  { %1179 = vmatmul.bf16.gmra.mxu0 %v8178_v2  ;;  %v3083_v18 = vadd.f32 %v2808_v16, %v1902_v15  ;;  %v1906_v29 = vpop.f32.mrf.mxu1  ;;  %v8182_v15 = vld [vmem:[#allocation3 + $0xf8] sm:$0xff]  ;;  %v8110_v16 = vld [vmem:[#allocation3 + $0x108] sm:$0xff] }
 0x1eb   :  { %3886 = vmatmul.bf16.gmra.mxu3 %v8323_v31 }
 0x1ec   :  { %v4117_v21 = vadd.f32 %v3842_v17, %v3083_v18  ;;  %2852 = vmatmul.bf16.gmra.mxu2 %v8251_v30 }
 0x1ed   :  { %1945 = vmatmul.bf16.gmra.mxu1 %v8107_v26 }
 0x1ee   :  { %4245 = vst [vmem:[#allocation2 + $0xf0] sm:$0xff] %v4117_v21  ;;  %v3847_v36 = vpop.f32.mrf.mxu3  ;;  %v8326_v21 = vld [vmem:[#allocation3 + $0xd8] sm:$0xff] }
 0x1ef   :  { %v1142_v19 = vpop.f32.mrf.mxu0  ;;  %v2813_v35 = vpop.f32.mrf.mxu2 }
 0x1f0   :  { %v1904_v22 = vadd.f32 %v1903_v20, %v1142_v19  ;;  %v8254_v20 = vld [vmem:[#allocation3 + $0xe8] sm:$0xff] }
 0x1f2   :  { %v3084_v27 = vadd.f32 %v2810_v23, %v1904_v22  ;;  %v1908_v39 = vpop.f32.mrf.mxu1 }
 0x1f4   :  { %v4118_v32 = vadd.f32 %v3844_v24, %v3084_v27 }
 0x1f6   :  { %4246 = vst [vmem:[#allocation2 + $0xf8] sm:$0xff] %v4118_v32  ;;  %v3849_v43 = vpop.f32.mrf.mxu3 }
 0x1f7   :  { %v1145_v28 = vpop.f32.mrf.mxu0  ;;  %v2815_v42 = vpop.f32.mrf.mxu2 }
 0x1f8   :  { %v1907_v33 = vadd.f32 %v1906_v29, %v1145_v28 }
 0x1fa   :  { %1184 = vmatmul.bf16.gmra.mxu0 %v8179_v25  ;;  %v3085_v37 = vadd.f32 %v2813_v35, %v1907_v33  ;;  %v1911_v48 = vpop.f32.mrf.mxu1  ;;  %v8183_v33 = vld [vmem:[#allocation3 + $0x100] sm:$0xff]  ;;  %v8111_v35 = vld [vmem:[#allocation3 + $0x110] sm:$0xff] }
 0x1fb   :  { %3891 = vmatmul.bf16.gmra.mxu3 %v8324_v50 }
 0x1fc   :  { %v4119_v40 = vadd.f32 %v3847_v36, %v3085_v37  ;;  %2857 = vmatmul.bf16.gmra.mxu2 %v8252_v49 }
 0x1fd   :  { %1950 = vmatmul.bf16.gmra.mxu1 %v8108_v45 }
 0x1fe   :  { %4247 = vst [vmem:[#allocation2 + $0x100] sm:$0xff] %v4119_v40  ;;  %v3852_v54 = vpop.f32.mrf.mxu3  ;;  %v8327_v40 = vld [vmem:[#allocation3 + $0xe0] sm:$0xff] }
 0x1ff   :  { %v1147_v38 = vpop.f32.mrf.mxu0  ;;  %v2818_v53 = vpop.f32.mrf.mxu2 }
 0x200   :  { %v1909_v41 = vadd.f32 %v1908_v39, %v1147_v38  ;;  %v8255_v39 = vld [vmem:[#allocation3 + $0xf0] sm:$0xff] }
 0x202   :  { %v3086_v46 = vadd.f32 %v2815_v42, %v1909_v41  ;;  %v1913_v57 = vpop.f32.mrf.mxu1 }
 0x204   :  { %v4120_v51 = vadd.f32 %v3849_v43, %v3086_v46 }
 0x206   :  { %4248 = vst [vmem:[#allocation2 + $0x108] sm:$0xff] %v4120_v51  ;;  %v3854_v60 = vpop.f32.mrf.mxu3 }
 0x207   :  { %v1150_v47 = vpop.f32.mrf.mxu0  ;;  %v2820_v34 = vpop.f32.mrf.mxu2 }
 0x208   :  { %v1912_v52 = vadd.f32 %v1911_v48, %v1150_v47 }
 0x20a   :  { %1189 = vmatmul.bf16.gmra.mxu0 %v8180_v44  ;;  %v3087_v55 = vadd.f32 %v2818_v53, %v1912_v52  ;;  %v1916_v1 = vpop.f32.mrf.mxu1  ;;  %v8184_v52 = vld [vmem:[#allocation3 + $0x108] sm:$0xff]  ;;  %v8112_v53 = vld [vmem:[#allocation3 + $0x118] sm:$0xff] }
 0x20b   :  { %3896 = vmatmul.bf16.gmra.mxu3 %v8325_v11 }
 0x20c   :  { %v4121_v58 = vadd.f32 %v3852_v54, %v3087_v55  ;;  %2862 = vmatmul.bf16.gmra.mxu2 %v8253_v10 }
 0x20d   :  { %1955 = vmatmul.bf16.gmra.mxu1 %v8109_v62 }
 0x20e   :  { %4249 = vst [vmem:[#allocation2 + $0x110] sm:$0xff] %v4121_v58  ;;  %v3857_v2 = vpop.f32.mrf.mxu3  ;;  %v8328_v58 = vld [vmem:[#allocation3 + $0xe8] sm:$0xff] }
 0x20f   :  { %v1152_v56 = vpop.f32.mrf.mxu0  ;;  %v2823_v13 = vpop.f32.mrf.mxu2 }
 0x210   :  { %v1914_v59 = vadd.f32 %v1913_v57, %v1152_v56  ;;  %v8256_v57 = vld [vmem:[#allocation3 + $0xf8] sm:$0xff] }
 0x212   :  { %v3088_v63 = vadd.f32 %v2820_v34, %v1914_v59  ;;  %v1918_v5 = vpop.f32.mrf.mxu1 }
 0x214   :  { %v4122_v12 = vadd.f32 %v3854_v60, %v3088_v63 }
 0x216   :  { %4250 = vst [vmem:[#allocation2 + $0x118] sm:$0xff] %v4122_v12  ;;  %v3859_v14 = vpop.f32.mrf.mxu3 }
 0x217   :  { %v1155_v0 = vpop.f32.mrf.mxu0  ;;  %v2825_v8 = vpop.f32.mrf.mxu2 }
 0x218   :  { %v1917_v9 = vadd.f32 %v1916_v1, %v1155_v0 }
 0x21a   :  { %1194 = vmatmul.bf16.gmra.mxu0 %v8181_v61  ;;  %v3089_v3 = vadd.f32 %v2823_v13, %v1917_v9  ;;  %v1921_v19 = vpop.f32.mrf.mxu1  ;;  %v8185_v9 = vld [vmem:[#allocation3 + $0x110] sm:$0xff]  ;;  %v8113_v13 = vld [vmem:[#allocation3 + $0x120] sm:$0xff] }
 0x21b   :  { %3901 = vmatmul.bf16.gmra.mxu3 %v8326_v21 }
 0x21c   :  { %v4123_v6 = vadd.f32 %v3857_v2, %v3089_v3  ;;  %2867 = vmatmul.bf16.gmra.mxu2 %v8254_v20 }
 0x21d   :  { %1960 = vmatmul.bf16.gmra.mxu1 %v8110_v16 }
 0x21e   :  { %4251 = vst [vmem:[#allocation2 + $0x120] sm:$0xff] %v4123_v6  ;;  %v3862_v25 = vpop.f32.mrf.mxu3  ;;  %v8329_v6 = vld [vmem:[#allocation3 + $0xf0] sm:$0xff] }
 0x21f   :  { %v1157_v4 = vpop.f32.mrf.mxu0  ;;  %v2828_v24 = vpop.f32.mrf.mxu2 }
 0x220   :  { %v1919_v7 = vadd.f32 %v1918_v5, %v1157_v4  ;;  %v8257_v5 = vld [vmem:[#allocation3 + $0x100] sm:$0xff] }
 0x222   :  { %v3090_v17 = vadd.f32 %v2825_v8, %v1919_v7  ;;  %v1923_v28 = vpop.f32.mrf.mxu1 }
 0x224   :  { %v4124_v22 = vadd.f32 %v3859_v14, %v3090_v17 }
 0x226   :  { %4252 = vst [vmem:[#allocation2 + $0x128] sm:$0xff] %v4124_v22  ;;  %v3864_v32 = vpop.f32.mrf.mxu3 }
 0x227   :  { %v1160_v18 = vpop.f32.mrf.mxu0  ;;  %v2830_v31 = vpop.f32.mrf.mxu2 }
 0x228   :  { %v1922_v23 = vadd.f32 %v1921_v19, %v1160_v18 }
 0x22a   :  { %1199 = vmatmul.bf16.gmra.mxu0 %v8182_v15  ;;  %v3091_v26 = vadd.f32 %v2828_v24, %v1922_v23  ;;  %v1926_v38 = vpop.f32.mrf.mxu1  ;;  %v8186_v23 = vld [vmem:[#allocation3 + $0x118] sm:$0xff]  ;;  %v8114_v24 = vld [vmem:[#allocation3 + $0x128] sm:$0xff] }
 0x22b   :  { %3906 = vmatmul.bf16.gmra.mxu3 %v8327_v40 }
 0x22c   :  { %v4125_v29 = vadd.f32 %v3862_v25, %v3091_v26  ;;  %2872 = vmatmul.bf16.gmra.mxu2 %v8255_v39 }
 0x22d   :  { %1965 = vmatmul.bf16.gmra.mxu1 %v8111_v35 }
 0x22e   :  { %4253 = vst [vmem:[#allocation2 + $0x130] sm:$0xff] %v4125_v29  ;;  %v3867_v44 = vpop.f32.mrf.mxu3  ;;  %v8330_v29 = vld [vmem:[#allocation3 + $0xf8] sm:$0xff] }
 0x22f   :  { %v1162_v27 = vpop.f32.mrf.mxu0  ;;  %v2833_v43 = vpop.f32.mrf.mxu2 }
 0x230   :  { %v1924_v30 = vadd.f32 %v1923_v28, %v1162_v27  ;;  %v8258_v28 = vld [vmem:[#allocation3 + $0x108] sm:$0xff] }
 0x232   :  { %v3092_v36 = vadd.f32 %v2830_v31, %v1924_v30  ;;  %v1928_v47 = vpop.f32.mrf.mxu1 }
 0x234   :  { %v4126_v41 = vadd.f32 %v3864_v32, %v3092_v36 }
 0x236   :  { %4254 = vst [vmem:[#allocation2 + $0x138] sm:$0xff] %v4126_v41  ;;  %v3869_v51 = vpop.f32.mrf.mxu3 }
 0x237   :  { %v1165_v37 = vpop.f32.mrf.mxu0  ;;  %v2835_v50 = vpop.f32.mrf.mxu2 }
 0x238   :  { %v1927_v42 = vadd.f32 %v1926_v38, %v1165_v37 }
 0x23a   :  { %1204 = vmatmul.bf16.gmra.mxu0 %v8183_v33  ;;  %v3093_v45 = vadd.f32 %v2833_v43, %v1927_v42  ;;  %v1931_v56 = vpop.f32.mrf.mxu1  ;;  %v8187_v42 = vld [vmem:[#allocation3 + $0x120] sm:$0xff]  ;;  %v8115_v43 = vld [vmem:[#allocation3 + $0x130] sm:$0xff] }
 0x23b   :  { %3911 = vmatmul.bf16.gmra.mxu3 %v8328_v58 }
 0x23c   :  { %v4127_v48 = vadd.f32 %v3867_v44, %v3093_v45  ;;  %2877 = vmatmul.bf16.gmra.mxu2 %v8256_v57 }
 0x23d   :  { %1970 = vmatmul.bf16.gmra.mxu1 %v8112_v53 }
 0x23e   :  { %4255 = vst [vmem:[#allocation2 + $0x140] sm:$0xff] %v4127_v48  ;;  %v3872_v61 = vpop.f32.mrf.mxu3  ;;  %v8331_v48 = vld [vmem:[#allocation3 + $0x100] sm:$0xff] }
 0x23f   :  { %v1167_v46 = vpop.f32.mrf.mxu0  ;;  %v2838_v60 = vpop.f32.mrf.mxu2 }
 0x240   :  { %v1929_v49 = vadd.f32 %v1928_v47, %v1167_v46  ;;  %v8259_v47 = vld [vmem:[#allocation3 + $0x110] sm:$0xff] }
 0x242   :  { %v3094_v54 = vadd.f32 %v2835_v50, %v1929_v49  ;;  %v1933_v0 = vpop.f32.mrf.mxu1 }
 0x244   :  { %v4128_v59 = vadd.f32 %v3869_v51, %v3094_v54 }
 0x246   :  { %4256 = vst [vmem:[#allocation2 + $0x148] sm:$0xff] %v4128_v59  ;;  %v3874_v12 = vpop.f32.mrf.mxu3 }
 0x247   :  { %v1170_v55 = vpop.f32.mrf.mxu0  ;;  %v2840_v11 = vpop.f32.mrf.mxu2 }
 0x248   :  { %v1932_v34 = vadd.f32 %v1931_v56, %v1170_v55 }
 0x24a   :  { %1209 = vmatmul.bf16.gmra.mxu0 %v8184_v52  ;;  %v3095_v62 = vadd.f32 %v2838_v60, %v1932_v34  ;;  %v1936_v4 = vpop.f32.mrf.mxu1  ;;  %v8188_v34 = vld [vmem:[#allocation3 + $0x128] sm:$0xff]  ;;  %v8116_v60 = vld [vmem:[#allocation3 + $0x138] sm:$0xff] }
 0x24b   :  { %3916 = vmatmul.bf16.gmra.mxu3 %v8329_v6 }
 0x24c   :  { %v4129_v1 = vadd.f32 %v3872_v61, %v3095_v62  ;;  %2882 = vmatmul.bf16.gmra.mxu2 %v8257_v5 }
 0x24d   :  { %1975 = vmatmul.bf16.gmra.mxu1 %v8113_v13 }
 0x24e   :  { %4257 = vst [vmem:[#allocation2 + $0x150] sm:$0xff] %v4129_v1  ;;  %v3877_v15 = vpop.f32.mrf.mxu3  ;;  %v8332_v1 = vld [vmem:[#allocation3 + $0x108] sm:$0xff] }
 0x24f   :  { %v1172_v63 = vpop.f32.mrf.mxu0  ;;  %v2843_v14 = vpop.f32.mrf.mxu2 }
 0x250   :  { %v1934_v10 = vadd.f32 %v1933_v0, %v1172_v63  ;;  %v8260_v0 = vld [vmem:[#allocation3 + $0x118] sm:$0xff] }
 0x252   :  { %v3096_v2 = vadd.f32 %v2840_v11, %v1934_v10  ;;  %v1938_v18 = vpop.f32.mrf.mxu1 }
 0x254   :  { %v4130_v7 = vadd.f32 %v3874_v12, %v3096_v2 }
 0x256   :  { %4258 = vst [vmem:[#allocation2 + $0x158] sm:$0xff] %v4130_v7  ;;  %v3879_v22 = vpop.f32.mrf.mxu3 }
 0x257   :  { %v1175_v3 = vpop.f32.mrf.mxu0  ;;  %v2845_v21 = vpop.f32.mrf.mxu2 }
 0x258   :  { %v1937_v8 = vadd.f32 %v1936_v4, %v1175_v3 }
 0x25a   :  { %1214 = vmatmul.bf16.gmra.mxu0 %v8185_v9  ;;  %v3097_v16 = vadd.f32 %v2843_v14, %v1937_v8  ;;  %v1941_v27 = vpop.f32.mrf.mxu1  ;;  %v8189_v8 = vld [vmem:[#allocation3 + $0x130] sm:$0xff]  ;;  %v8117_v14 = vld [vmem:[#allocation3 + $0x140] sm:$0xff] }
 0x25b   :  { %3921 = vmatmul.bf16.gmra.mxu3 %v8330_v29 }
 0x25c   :  { %v4131_v19 = vadd.f32 %v3877_v15, %v3097_v16  ;;  %2887 = vmatmul.bf16.gmra.mxu2 %v8258_v28 }
 0x25d   :  { %1980 = vmatmul.bf16.gmra.mxu1 %v8114_v24 }
 0x25e   :  { %4259 = vst [vmem:[#allocation2 + $0x160] sm:$0xff] %v4131_v19  ;;  %v3882_v33 = vpop.f32.mrf.mxu3  ;;  %v8333_v19 = vld [vmem:[#allocation3 + $0x110] sm:$0xff] }
 0x25f   :  { %v1177_v17 = vpop.f32.mrf.mxu0  ;;  %v2848_v32 = vpop.f32.mrf.mxu2 }
 0x260   :  { %v1939_v20 = vadd.f32 %v1938_v18, %v1177_v17  ;;  %v8261_v18 = vld [vmem:[#allocation3 + $0x120] sm:$0xff] }
 0x262   :  { %v3098_v25 = vadd.f32 %v2845_v21, %v1939_v20  ;;  %v1943_v37 = vpop.f32.mrf.mxu1 }
 0x264   :  { %v4132_v30 = vadd.f32 %v3879_v22, %v3098_v25 }
 0x266   :  { %4260 = vst [vmem:[#allocation2 + $0x168] sm:$0xff] %v4132_v30  ;;  %v3884_v41 = vpop.f32.mrf.mxu3 }
 0x267   :  { %v1180_v26 = vpop.f32.mrf.mxu0  ;;  %v2850_v40 = vpop.f32.mrf.mxu2 }
 0x268   :  { %v1942_v31 = vadd.f32 %v1941_v27, %v1180_v26 }
 0x26a   :  { %1219 = vmatmul.bf16.gmra.mxu0 %v8186_v23  ;;  %v3099_v35 = vadd.f32 %v2848_v32, %v1942_v31  ;;  %v1946_v46 = vpop.f32.mrf.mxu1  ;;  %v8190_v31 = vld [vmem:[#allocation3 + $0x138] sm:$0xff]  ;;  %v8118_v32 = vld [vmem:[#allocation3 + $0x148] sm:$0xff] }
 0x26b   :  { %3926 = vmatmul.bf16.gmra.mxu3 %v8331_v48 }
 0x26c   :  { %v4133_v38 = vadd.f32 %v3882_v33, %v3099_v35  ;;  %2892 = vmatmul.bf16.gmra.mxu2 %v8259_v47 }
 0x26d   :  { %1985 = vmatmul.bf16.gmra.mxu1 %v8115_v43 }
 0x26e   :  { %4261 = vst [vmem:[#allocation2 + $0x170] sm:$0xff] %v4133_v38  ;;  %v3887_v52 = vpop.f32.mrf.mxu3  ;;  %v8334_v38 = vld [vmem:[#allocation3 + $0x118] sm:$0xff] }
 0x26f   :  { %v1182_v36 = vpop.f32.mrf.mxu0  ;;  %v2853_v51 = vpop.f32.mrf.mxu2 }
 0x270   :  { %v1944_v39 = vadd.f32 %v1943_v37, %v1182_v36  ;;  %v8262_v37 = vld [vmem:[#allocation3 + $0x128] sm:$0xff] }
 0x272   :  { %v3100_v44 = vadd.f32 %v2850_v40, %v1944_v39  ;;  %v1948_v55 = vpop.f32.mrf.mxu1 }
 0x274   :  { %v4134_v49 = vadd.f32 %v3884_v41, %v3100_v44 }
 0x276   :  { %4262 = vst [vmem:[#allocation2 + $0x178] sm:$0xff] %v4134_v49  ;;  %v3889_v59 = vpop.f32.mrf.mxu3 }
 0x277   :  { %v1185_v45 = vpop.f32.mrf.mxu0  ;;  %v2855_v58 = vpop.f32.mrf.mxu2 }
 0x278   :  { %v1947_v50 = vadd.f32 %v1946_v46, %v1185_v45 }
 0x27a   :  { %1224 = vmatmul.bf16.gmra.mxu0 %v8187_v42  ;;  %v3101_v53 = vadd.f32 %v2853_v51, %v1947_v50  ;;  %v1951_v63 = vpop.f32.mrf.mxu1  ;;  %v8191_v50 = vld [vmem:[#allocation3 + $0x140] sm:$0xff]  ;;  %v8119_v51 = vld [vmem:[#allocation3 + $0x150] sm:$0xff] }
 0x27b   :  { %3931 = vmatmul.bf16.gmra.mxu3 %v8332_v1 }
 0x27c   :  { %v4135_v56 = vadd.f32 %v3887_v52, %v3101_v53  ;;  %2897 = vmatmul.bf16.gmra.mxu2 %v8260_v0 }
 0x27d   :  { %1990 = vmatmul.bf16.gmra.mxu1 %v8116_v60 }
 0x27e   :  { %4263 = vst [vmem:[#allocation2 + $0x180] sm:$0xff] %v4135_v56  ;;  %v3892_v9 = vpop.f32.mrf.mxu3  ;;  %v8335_v56 = vld [vmem:[#allocation3 + $0x120] sm:$0xff] }
 0x27f   :  { %v1187_v54 = vpop.f32.mrf.mxu0  ;;  %v2858_v12 = vpop.f32.mrf.mxu2 }
 0x280   :  { %v1949_v57 = vadd.f32 %v1948_v55, %v1187_v54  ;;  %v8263_v55 = vld [vmem:[#allocation3 + $0x130] sm:$0xff] }
 0x282   :  { %v3102_v61 = vadd.f32 %v2855_v58, %v1949_v57  ;;  %v1953_v3 = vpop.f32.mrf.mxu1 }
 0x284   :  { %v4136_v10 = vadd.f32 %v3889_v59, %v3102_v61 }
 0x286   :  { %4264 = vst [vmem:[#allocation2 + $0x188] sm:$0xff] %v4136_v10  ;;  %v3894_v7 = vpop.f32.mrf.mxu3 }
 0x287   :  { %v1190_v62 = vpop.f32.mrf.mxu0  ;;  %v2860_v6 = vpop.f32.mrf.mxu2 }
 0x288   :  { %v1952_v11 = vadd.f32 %v1951_v63, %v1190_v62 }
 0x28a   :  { %1229 = vmatmul.bf16.gmra.mxu0 %v8188_v34  ;;  %v3103_v13 = vadd.f32 %v2858_v12, %v1952_v11  ;;  %v1956_v17 = vpop.f32.mrf.mxu1  ;;  %v8192_v11 = vld [vmem:[#allocation3 + $0x148] sm:$0xff]  ;;  %v8120_v12 = vld [vmem:[#allocation3 + $0x158] sm:$0xff] }
 0x28b   :  { %3936 = vmatmul.bf16.gmra.mxu3 %v8333_v19 }
 0x28c   :  { %v4137_v4 = vadd.f32 %v3892_v9, %v3103_v13  ;;  %2902 = vmatmul.bf16.gmra.mxu2 %v8261_v18 }
 0x28d   :  { %1995 = vmatmul.bf16.gmra.mxu1 %v8117_v14 }
 0x28e   :  { %4265 = vst [vmem:[#allocation2 + $0x190] sm:$0xff] %v4137_v4  ;;  %v3897_v23 = vpop.f32.mrf.mxu3  ;;  %v8336_v4 = vld [vmem:[#allocation3 + $0x128] sm:$0xff] }
 0x28f   :  { %v1192_v2 = vpop.f32.mrf.mxu0  ;;  %v2863_v22 = vpop.f32.mrf.mxu2 }
 0x290   :  { %v1954_v5 = vadd.f32 %v1953_v3, %v1192_v2  ;;  %v8264_v3 = vld [vmem:[#allocation3 + $0x138] sm:$0xff] }
 0x292   :  { %v3104_v15 = vadd.f32 %v2860_v6, %v1954_v5  ;;  %v1958_v26 = vpop.f32.mrf.mxu1 }
 0x294   :  { %v4138_v20 = vadd.f32 %v3894_v7, %v3104_v15 }
 0x296   :  { %4266 = vst [vmem:[#allocation2 + $0x198] sm:$0xff] %v4138_v20  ;;  %v3899_v30 = vpop.f32.mrf.mxu3 }
 0x297   :  { %v1195_v16 = vpop.f32.mrf.mxu0  ;;  %v2865_v29 = vpop.f32.mrf.mxu2 }
 0x298   :  { %v1957_v21 = vadd.f32 %v1956_v17, %v1195_v16 }
 0x29a   :  { %1234 = vmatmul.bf16.gmra.mxu0 %v8189_v8  ;;  %v3105_v24 = vadd.f32 %v2863_v22, %v1957_v21  ;;  %v1961_v36 = vpop.f32.mrf.mxu1  ;;  %v8193_v21 = vld [vmem:[#allocation3 + $0x150] sm:$0xff]  ;;  %v8121_v22 = vld [vmem:[#allocation3 + $0x160] sm:$0xff] }
 0x29b   :  { %3941 = vmatmul.bf16.gmra.mxu3 %v8334_v38 }
 0x29c   :  { %v4139_v27 = vadd.f32 %v3897_v23, %v3105_v24  ;;  %2907 = vmatmul.bf16.gmra.mxu2 %v8262_v37 }
 0x29d   :  { %2000 = vmatmul.bf16.gmra.mxu1 %v8118_v32 }
 0x29e   :  { %4267 = vst [vmem:[#allocation2 + $0x1a0] sm:$0xff] %v4139_v27  ;;  %v3902_v42 = vpop.f32.mrf.mxu3  ;;  %v8337_v27 = vld [vmem:[#allocation3 + $0x130] sm:$0xff] }
 0x29f   :  { %v1197_v25 = vpop.f32.mrf.mxu0  ;;  %v2868_v41 = vpop.f32.mrf.mxu2 }
 0x2a0   :  { %v1959_v28 = vadd.f32 %v1958_v26, %v1197_v25  ;;  %v8265_v26 = vld [vmem:[#allocation3 + $0x140] sm:$0xff] }
 0x2a2   :  { %v3106_v33 = vadd.f32 %v2865_v29, %v1959_v28  ;;  %v1963_v45 = vpop.f32.mrf.mxu1 }
 0x2a4   :  { %v4140_v39 = vadd.f32 %v3899_v30, %v3106_v33 }
 0x2a6   :  { %4268 = vst [vmem:[#allocation2 + $0x1a8] sm:$0xff] %v4140_v39  ;;  %v3904_v49 = vpop.f32.mrf.mxu3 }
 0x2a7   :  { %v1200_v35 = vpop.f32.mrf.mxu0  ;;  %v2870_v48 = vpop.f32.mrf.mxu2 }
 0x2a8   :  { %v1962_v40 = vadd.f32 %v1961_v36, %v1200_v35 }
 0x2aa   :  { %1239 = vmatmul.bf16.gmra.mxu0 %v8190_v31  ;;  %v3107_v43 = vadd.f32 %v2868_v41, %v1962_v40  ;;  %v1966_v54 = vpop.f32.mrf.mxu1  ;;  %v8194_v40 = vld [vmem:[#allocation3 + $0x158] sm:$0xff]  ;;  %v8122_v41 = vld [vmem:[#allocation3 + $0x168] sm:$0xff] }
 0x2ab   :  { %3946 = vmatmul.bf16.gmra.mxu3 %v8335_v56 }
 0x2ac   :  { %v4141_v46 = vadd.f32 %v3902_v42, %v3107_v43  ;;  %2912 = vmatmul.bf16.gmra.mxu2 %v8263_v55 }
 0x2ad   :  { %2005 = vmatmul.bf16.gmra.mxu1 %v8119_v51 }
 0x2ae   :  { %4269 = vst [vmem:[#allocation2 + $0x1b0] sm:$0xff] %v4141_v46  ;;  %v3907_v34 = vpop.f32.mrf.mxu3  ;;  %v8338_v46 = vld [vmem:[#allocation3 + $0x138] sm:$0xff] }
 0x2af   :  { %v1202_v44 = vpop.f32.mrf.mxu0  ;;  %v2873_v59 = vpop.f32.mrf.mxu2 }
 0x2b0   :  { %v1964_v47 = vadd.f32 %v1963_v45, %v1202_v44  ;;  %v8266_v45 = vld [vmem:[#allocation3 + $0x148] sm:$0xff] }
 0x2b2   :  { %v3108_v52 = vadd.f32 %v2870_v48, %v1964_v47  ;;  %v1968_v62 = vpop.f32.mrf.mxu1 }
 0x2b4   :  { %v4142_v57 = vadd.f32 %v3904_v49, %v3108_v52 }
 0x2b6   :  { %4270 = vst [vmem:[#allocation2 + $0x1b8] sm:$0xff] %v4142_v57  ;;  %v3909_v10 = vpop.f32.mrf.mxu3 }
 0x2b7   :  { %v1205_v53 = vpop.f32.mrf.mxu0  ;;  %v2875_v1 = vpop.f32.mrf.mxu2 }
 0x2b8   :  { %v1967_v58 = vadd.f32 %v1966_v54, %v1205_v53 }
 0x2ba   :  { %1244 = vmatmul.bf16.gmra.mxu0 %v8191_v50  ;;  %v3109_v60 = vadd.f32 %v2873_v59, %v1967_v58  ;;  %v1971_v2 = vpop.f32.mrf.mxu1  ;;  %v8195_v58 = vld [vmem:[#allocation3 + $0x160] sm:$0xff]  ;;  %v8123_v59 = vld [vmem:[#allocation3 + $0x170] sm:$0xff] }
 0x2bb   :  { %3951 = vmatmul.bf16.gmra.mxu3 %v8336_v4 }
 0x2bc   :  { %v4143_v63 = vadd.f32 %v3907_v34, %v3109_v60  ;;  %2917 = vmatmul.bf16.gmra.mxu2 %v8264_v3 }
 0x2bd   :  { %2010 = vmatmul.bf16.gmra.mxu1 %v8120_v12 }
 0x2be   :  { %4271 = vst [vmem:[#allocation2 + $0x1c0] sm:$0xff] %v4143_v63  ;;  %v3912_v8 = vpop.f32.mrf.mxu3  ;;  %v8339_v63 = vld [vmem:[#allocation3 + $0x140] sm:$0xff] }
 0x2bf   :  { %v1207_v61 = vpop.f32.mrf.mxu0  ;;  %v2878_v7 = vpop.f32.mrf.mxu2 }
 0x2c0   :  { %v1969_v0 = vadd.f32 %v1968_v62, %v1207_v61  ;;  %v8267_v62 = vld [vmem:[#allocation3 + $0x150] sm:$0xff] }
 0x2c2   :  { %v3110_v9 = vadd.f32 %v2875_v1, %v1969_v0  ;;  %v1973_v16 = vpop.f32.mrf.mxu1 }
 0x2c4   :  { %v4144_v5 = vadd.f32 %v3909_v10, %v3110_v9 }
 0x2c6   :  { %4272 = vst [vmem:[#allocation2 + $0x1c8] sm:$0xff] %v4144_v5  ;;  %v3914_v20 = vpop.f32.mrf.mxu3 }
 0x2c7   :  { %v1210_v13 = vpop.f32.mrf.mxu0  ;;  %v2880_v19 = vpop.f32.mrf.mxu2 }
 0x2c8   :  { %v1972_v6 = vadd.f32 %v1971_v2, %v1210_v13 }
 0x2ca   :  { %1249 = vmatmul.bf16.gmra.mxu0 %v8192_v11  ;;  %v3111_v14 = vadd.f32 %v2878_v7, %v1972_v6  ;;  %v1976_v25 = vpop.f32.mrf.mxu1  ;;  %v8196_v6 = vld [vmem:[#allocation3 + $0x168] sm:$0xff]  ;;  %v8124_v7 = vld [vmem:[#allocation3 + $0x178] sm:$0xff] }
 0x2cb   :  { %3956 = vmatmul.bf16.gmra.mxu3 %v8337_v27 }
 0x2cc   :  { %v4145_v17 = vadd.f32 %v3912_v8, %v3111_v14  ;;  %2922 = vmatmul.bf16.gmra.mxu2 %v8265_v26 }
 0x2cd   :  { %2015 = vmatmul.bf16.gmra.mxu1 %v8121_v22 }
 0x2ce   :  { %4273 = vst [vmem:[#allocation2 + $0x1d0] sm:$0xff] %v4145_v17  ;;  %v3917_v31 = vpop.f32.mrf.mxu3  ;;  %v8340_v17 = vld [vmem:[#allocation3 + $0x148] sm:$0xff] }
 0x2cf   :  { %v1212_v15 = vpop.f32.mrf.mxu0  ;;  %v2883_v30 = vpop.f32.mrf.mxu2 }
 0x2d0   :  { %v1974_v18 = vadd.f32 %v1973_v16, %v1212_v15  ;;  %v8268_v16 = vld [vmem:[#allocation3 + $0x158] sm:$0xff] }
 0x2d2   :  { %v3112_v23 = vadd.f32 %v2880_v19, %v1974_v18  ;;  %v1978_v35 = vpop.f32.mrf.mxu1 }
 0x2d4   :  { %v4146_v28 = vadd.f32 %v3914_v20, %v3112_v23 }
 0x2d6   :  { %4274 = vst [vmem:[#allocation2 + $0x1d8] sm:$0xff] %v4146_v28  ;;  %v3919_v39 = vpop.f32.mrf.mxu3 }
 0x2d7   :  { %v1215_v24 = vpop.f32.mrf.mxu0  ;;  %v2885_v38 = vpop.f32.mrf.mxu2 }
 0x2d8   :  { %v1977_v29 = vadd.f32 %v1976_v25, %v1215_v24 }
 0x2da   :  { %1254 = vmatmul.bf16.gmra.mxu0 %v8193_v21  ;;  %v3113_v32 = vadd.f32 %v2883_v30, %v1977_v29  ;;  %v1981_v44 = vpop.f32.mrf.mxu1  ;;  %v8197_v29 = vld [vmem:[#allocation3 + $0x170] sm:$0xff]  ;;  %v8125_v30 = vld [vmem:[#allocation3 + $0x180] sm:$0xff] }
 0x2db   :  { %3961 = vmatmul.bf16.gmra.mxu3 %v8338_v46 }
 0x2dc   :  { %v4147_v36 = vadd.f32 %v3917_v31, %v3113_v32  ;;  %2927 = vmatmul.bf16.gmra.mxu2 %v8266_v45 }
 0x2dd   :  { %2020 = vmatmul.bf16.gmra.mxu1 %v8122_v41 }
 0x2de   :  { %4275 = vst [vmem:[#allocation2 + $0x1e0] sm:$0xff] %v4147_v36  ;;  %v3922_v50 = vpop.f32.mrf.mxu3  ;;  %v8341_v36 = vld [vmem:[#allocation3 + $0x150] sm:$0xff] }
 0x2df   :  { %v1217_v33 = vpop.f32.mrf.mxu0  ;;  %v2888_v49 = vpop.f32.mrf.mxu2 }
 0x2e0   :  { %v1979_v37 = vadd.f32 %v1978_v35, %v1217_v33  ;;  %v8269_v35 = vld [vmem:[#allocation3 + $0x160] sm:$0xff] }
 0x2e2   :  { %v3114_v42 = vadd.f32 %v2885_v38, %v1979_v37  ;;  %v1983_v53 = vpop.f32.mrf.mxu1 }
 0x2e4   :  { %v4148_v47 = vadd.f32 %v3919_v39, %v3114_v42 }
 0x2e6   :  { %4276 = vst [vmem:[#allocation2 + $0x1e8] sm:$0xff] %v4148_v47  ;;  %v3924_v57 = vpop.f32.mrf.mxu3 }
 0x2e7   :  { %v1220_v43 = vpop.f32.mrf.mxu0  ;;  %v2890_v56 = vpop.f32.mrf.mxu2 }
 0x2e8   :  { %v1982_v48 = vadd.f32 %v1981_v44, %v1220_v43 }
 0x2ea   :  { %1259 = vmatmul.bf16.gmra.mxu0 %v8194_v40  ;;  %v3115_v51 = vadd.f32 %v2888_v49, %v1982_v48  ;;  %v1986_v61 = vpop.f32.mrf.mxu1  ;;  %v8198_v48 = vld [vmem:[#allocation3 + $0x178] sm:$0xff]  ;;  %v8126_v49 = vld [vmem:[#allocation3 + $0x188] sm:$0xff] }
 0x2eb   :  { %3966 = vmatmul.bf16.gmra.mxu3 %v8339_v63 }
 0x2ec   :  { %v4149_v54 = vadd.f32 %v3922_v50, %v3115_v51  ;;  %2932 = vmatmul.bf16.gmra.mxu2 %v8267_v62 }
 0x2ed   :  { %2025 = vmatmul.bf16.gmra.mxu1 %v8123_v59 }
 0x2ee   :  { %4277 = vst [vmem:[#allocation2 + $0x1f0] sm:$0xff] %v4149_v54  ;;  %v3927_v11 = vpop.f32.mrf.mxu3  ;;  %v8342_v54 = vld [vmem:[#allocation3 + $0x158] sm:$0xff] }
 0x2ef   :  { %v1222_v52 = vpop.f32.mrf.mxu0  ;;  %v2893_v10 = vpop.f32.mrf.mxu2 }
 0x2f0   :  { %v1984_v55 = vadd.f32 %v1983_v53, %v1222_v52  ;;  %v8270_v53 = vld [vmem:[#allocation3 + $0x168] sm:$0xff] }
 0x2f2   :  { %v3116_v34 = vadd.f32 %v2890_v56, %v1984_v55  ;;  %v1988_v13 = vpop.f32.mrf.mxu1 }
 0x2f4   :  { %v4150_v0 = vadd.f32 %v3924_v57, %v3116_v34 }
 0x2f6   :  { %4278 = vst [vmem:[#allocation2 + $0x1f8] sm:$0xff] %v4150_v0  ;;  %v3929_v5 = vpop.f32.mrf.mxu3 }
 0x2f7   :  { %v1225_v60 = vpop.f32.mrf.mxu0  ;;  %v2895_v4 = vpop.f32.mrf.mxu2 }
 0x2f8   :  { %v1987_v1 = vadd.f32 %v1986_v61, %v1225_v60 }
 0x2fa   :  { %1264 = vmatmul.bf16.gmra.mxu0 %v8195_v58  ;;  %v3117_v12 = vadd.f32 %v2893_v10, %v1987_v1  ;;  %v1991_v15 = vpop.f32.mrf.mxu1  ;;  %v8199_v1 = vld [vmem:[#allocation3 + $0x180] sm:$0xff]  ;;  %v8127_v10 = vld [vmem:[#allocation3 + $0x190] sm:$0xff] }
 0x2fb   :  { %3971 = vmatmul.bf16.gmra.mxu3 %v8340_v17 }
 0x2fc   :  { %v4151_v2 = vadd.f32 %v3927_v11, %v3117_v12  ;;  %2937 = vmatmul.bf16.gmra.mxu2 %v8268_v16 }
 0x2fd   :  { %2030 = vmatmul.bf16.gmra.mxu1 %v8124_v7 }
 0x2fe   :  { %4279 = vst [vmem:[#allocation2 + $0x200] sm:$0xff] %v4151_v2  ;;  %v3932_v21 = vpop.f32.mrf.mxu3  ;;  %v8343_v2 = vld [vmem:[#allocation3 + $0x160] sm:$0xff] }
 0x2ff   :  { %v1227_v9 = vpop.f32.mrf.mxu0  ;;  %v2898_v20 = vpop.f32.mrf.mxu2 }
 0x300   :  { %v1989_v3 = vadd.f32 %v1988_v13, %v1227_v9  ;;  %v8271_v13 = vld [vmem:[#allocation3 + $0x170] sm:$0xff] }
 0x302   :  { %v3118_v8 = vadd.f32 %v2895_v4, %v1989_v3  ;;  %v1993_v24 = vpop.f32.mrf.mxu1 }
 0x304   :  { %v4152_v18 = vadd.f32 %v3929_v5, %v3118_v8 }
 0x306   :  { %4280 = vst [vmem:[#allocation2 + $0x208] sm:$0xff] %v4152_v18  ;;  %v3934_v28 = vpop.f32.mrf.mxu3 }
 0x307   :  { %v1230_v14 = vpop.f32.mrf.mxu0  ;;  %v2900_v27 = vpop.f32.mrf.mxu2 }
 0x308   :  { %v1992_v19 = vadd.f32 %v1991_v15, %v1230_v14 }
 0x30a   :  { %1269 = vmatmul.bf16.gmra.mxu0 %v8196_v6  ;;  %v3119_v22 = vadd.f32 %v2898_v20, %v1992_v19  ;;  %v1996_v33 = vpop.f32.mrf.mxu1  ;;  %v8200_v19 = vld [vmem:[#allocation3 + $0x188] sm:$0xff]  ;;  %v8128_v20 = vld [vmem:[#allocation3 + $0x198] sm:$0xff] }
 0x30b   :  { %3976 = vmatmul.bf16.gmra.mxu3 %v8341_v36 }
 0x30c   :  { %v4153_v25 = vadd.f32 %v3932_v21, %v3119_v22  ;;  %2942 = vmatmul.bf16.gmra.mxu2 %v8269_v35 }
 0x30d   :  { %2035 = vmatmul.bf16.gmra.mxu1 %v8125_v30 }
 0x30e   :  { %4281 = vst [vmem:[#allocation2 + $0x210] sm:$0xff] %v4153_v25  ;;  %v3937_v40 = vpop.f32.mrf.mxu3  ;;  %v8344_v25 = vld [vmem:[#allocation3 + $0x168] sm:$0xff] }
 0x30f   :  { %v1232_v23 = vpop.f32.mrf.mxu0  ;;  %v2903_v39 = vpop.f32.mrf.mxu2 }
 0x310   :  { %v1994_v26 = vadd.f32 %v1993_v24, %v1232_v23  ;;  %v8272_v24 = vld [vmem:[#allocation3 + $0x178] sm:$0xff] }
 0x312   :  { %v3120_v31 = vadd.f32 %v2900_v27, %v1994_v26  ;;  %v1998_v43 = vpop.f32.mrf.mxu1 }
 0x314   :  { %v4154_v37 = vadd.f32 %v3934_v28, %v3120_v31 }
 0x316   :  { %4282 = vst [vmem:[#allocation2 + $0x218] sm:$0xff] %v4154_v37  ;;  %v3939_v47 = vpop.f32.mrf.mxu3 }
 0x317   :  { %v1235_v32 = vpop.f32.mrf.mxu0  ;;  %v2905_v46 = vpop.f32.mrf.mxu2 }
 0x318   :  { %v1997_v38 = vadd.f32 %v1996_v33, %v1235_v32 }
 0x31a   :  { %1274 = vmatmul.bf16.gmra.mxu0 %v8197_v29  ;;  %v3121_v41 = vadd.f32 %v2903_v39, %v1997_v38  ;;  %v2001_v52 = vpop.f32.mrf.mxu1  ;;  %v8201_v38 = vld [vmem:[#allocation3 + $0x190] sm:$0xff]  ;;  %v8129_v39 = vld [vmem:[#allocation3 + $0x1a0] sm:$0xff] }
 0x31b   :  { %3981 = vmatmul.bf16.gmra.mxu3 %v8342_v54 }
 0x31c   :  { %v4155_v44 = vadd.f32 %v3937_v40, %v3121_v41  ;;  %2947 = vmatmul.bf16.gmra.mxu2 %v8270_v53 }
 0x31d   :  { %2040 = vmatmul.bf16.gmra.mxu1 %v8126_v49 }
 0x31e   :  { %4283 = vst [vmem:[#allocation2 + $0x220] sm:$0xff] %v4155_v44  ;;  %v3942_v58 = vpop.f32.mrf.mxu3  ;;  %v8345_v44 = vld [vmem:[#allocation3 + $0x170] sm:$0xff] }
 0x31f   :  { %v1237_v42 = vpop.f32.mrf.mxu0  ;;  %v2908_v57 = vpop.f32.mrf.mxu2 }
 0x320   :  { %v1999_v45 = vadd.f32 %v1998_v43, %v1237_v42  ;;  %v8273_v43 = vld [vmem:[#allocation3 + $0x180] sm:$0xff] }
 0x322   :  { %v3122_v50 = vadd.f32 %v2905_v46, %v1999_v45  ;;  %v2003_v60 = vpop.f32.mrf.mxu1 }
 0x324   :  { %v4156_v55 = vadd.f32 %v3939_v47, %v3122_v50 }
 0x326   :  { %4284 = vst [vmem:[#allocation2 + $0x228] sm:$0xff] %v4156_v55  ;;  %v3944_v0 = vpop.f32.mrf.mxu3 }
 0x327   :  { %v1240_v51 = vpop.f32.mrf.mxu0  ;;  %v2910_v63 = vpop.f32.mrf.mxu2 }
 0x328   :  { %v2002_v56 = vadd.f32 %v2001_v52, %v1240_v51 }
 0x32a   :  { %1279 = vmatmul.bf16.gmra.mxu0 %v8198_v48  ;;  %v3123_v59 = vadd.f32 %v2908_v57, %v2002_v56  ;;  %v2006_v9 = vpop.f32.mrf.mxu1  ;;  %v8202_v56 = vld [vmem:[#allocation3 + $0x198] sm:$0xff]  ;;  %v8130_v57 = vld [vmem:[#allocation3 + $0x1a8] sm:$0xff] }
 0x32b   :  { %3986 = vmatmul.bf16.gmra.mxu3 %v8343_v2 }
 0x32c   :  { %v4157_v61 = vadd.f32 %v3942_v58, %v3123_v59  ;;  %2952 = vmatmul.bf16.gmra.mxu2 %v8271_v13 }
 0x32d   :  { %2045 = vmatmul.bf16.gmra.mxu1 %v8127_v10 }
 0x32e   :  { %4285 = vst [vmem:[#allocation2 + $0x230] sm:$0xff] %v4157_v61  ;;  %v3947_v6 = vpop.f32.mrf.mxu3  ;;  %v8346_v61 = vld [vmem:[#allocation3 + $0x178] sm:$0xff] }
 0x32f   :  { %v1242_v34 = vpop.f32.mrf.mxu0  ;;  %v2913_v5 = vpop.f32.mrf.mxu2 }
 0x330   :  { %v2004_v62 = vadd.f32 %v2003_v60, %v1242_v34  ;;  %v8274_v60 = vld [vmem:[#allocation3 + $0x188] sm:$0xff] }
 0x332   :  { %v3124_v11 = vadd.f32 %v2910_v63, %v2004_v62  ;;  %v2008_v14 = vpop.f32.mrf.mxu1 }
 0x334   :  { %v4158_v3 = vadd.f32 %v3944_v0, %v3124_v11 }
 0x336   :  { %4286 = vst [vmem:[#allocation2 + $0x238] sm:$0xff] %v4158_v3  ;;  %v3949_v18 = vpop.f32.mrf.mxu3 }
 0x337   :  { %v1245_v12 = vpop.f32.mrf.mxu0  ;;  %v2915_v17 = vpop.f32.mrf.mxu2 }
 0x338   :  { %v2007_v4 = vadd.f32 %v2006_v9, %v1245_v12 }
 0x33a   :  { %1284 = vmatmul.bf16.gmra.mxu0 %v8199_v1  ;;  %v3125_v7 = vadd.f32 %v2913_v5, %v2007_v4  ;;  %v2011_v23 = vpop.f32.mrf.mxu1  ;;  %v8203_v4 = vld [vmem:[#allocation3 + $0x1a0] sm:$0xff]  ;;  %v8131_v5 = vld [vmem:[#allocation3 + $0x1b0] sm:$0xff] }
 0x33b   :  { %3991 = vmatmul.bf16.gmra.mxu3 %v8344_v25 }
 0x33c   :  { %v4159_v15 = vadd.f32 %v3947_v6, %v3125_v7  ;;  %2957 = vmatmul.bf16.gmra.mxu2 %v8272_v24 }
 0x33d   :  { %2050 = vmatmul.bf16.gmra.mxu1 %v8128_v20 }
 0x33e   :  { %4287 = vst [vmem:[#allocation2 + $0x240] sm:$0xff] %v4159_v15  ;;  %v3952_v29 = vpop.f32.mrf.mxu3  ;;  %v8347_v15 = vld [vmem:[#allocation3 + $0x180] sm:$0xff] }
 0x33f   :  { %v1247_v8 = vpop.f32.mrf.mxu0  ;;  %v2918_v28 = vpop.f32.mrf.mxu2 }
 0x340   :  { %v2009_v16 = vadd.f32 %v2008_v14, %v1247_v8  ;;  %v8275_v14 = vld [vmem:[#allocation3 + $0x190] sm:$0xff] }
 0x342   :  { %v3126_v21 = vadd.f32 %v2915_v17, %v2009_v16  ;;  %v2013_v32 = vpop.f32.mrf.mxu1 }
 0x344   :  { %v4160_v26 = vadd.f32 %v3949_v18, %v3126_v21 }
 0x346   :  { %4288 = vst [vmem:[#allocation2 + $0x248] sm:$0xff] %v4160_v26  ;;  %v3954_v37 = vpop.f32.mrf.mxu3 }
 0x347   :  { %v1250_v22 = vpop.f32.mrf.mxu0  ;;  %v2920_v36 = vpop.f32.mrf.mxu2 }
 0x348   :  { %v2012_v27 = vadd.f32 %v2011_v23, %v1250_v22 }
 0x34a   :  { %1289 = vmatmul.bf16.gmra.mxu0 %v8200_v19  ;;  %v3127_v30 = vadd.f32 %v2918_v28, %v2012_v27  ;;  %v2016_v42 = vpop.f32.mrf.mxu1  ;;  %v8204_v27 = vld [vmem:[#allocation3 + $0x1a8] sm:$0xff]  ;;  %v8132_v28 = vld [vmem:[#allocation3 + $0x1b8] sm:$0xff] }
 0x34b   :  { %3996 = vmatmul.bf16.gmra.mxu3 %v8345_v44 }
 0x34c   :  { %v4161_v33 = vadd.f32 %v3952_v29, %v3127_v30  ;;  %2962 = vmatmul.bf16.gmra.mxu2 %v8273_v43 }
 0x34d   :  { %2055 = vmatmul.bf16.gmra.mxu1 %v8129_v39 }
 0x34e   :  { %4289 = vst [vmem:[#allocation2 + $0x250] sm:$0xff] %v4161_v33  ;;  %v3957_v48 = vpop.f32.mrf.mxu3  ;;  %v8348_v33 = vld [vmem:[#allocation3 + $0x188] sm:$0xff] }
 0x34f   :  { %v1252_v31 = vpop.f32.mrf.mxu0  ;;  %v2923_v47 = vpop.f32.mrf.mxu2 }
 0x350   :  { %v2014_v35 = vadd.f32 %v2013_v32, %v1252_v31  ;;  %v8276_v32 = vld [vmem:[#allocation3 + $0x198] sm:$0xff] }
 0x352   :  { %v3128_v40 = vadd.f32 %v2920_v36, %v2014_v35  ;;  %v2018_v51 = vpop.f32.mrf.mxu1 }
 0x354   :  { %v4162_v45 = vadd.f32 %v3954_v37, %v3128_v40 }
 0x356   :  { %4290 = vst [vmem:[#allocation2 + $0x258] sm:$0xff] %v4162_v45  ;;  %v3959_v55 = vpop.f32.mrf.mxu3 }
 0x357   :  { %v1255_v41 = vpop.f32.mrf.mxu0  ;;  %v2925_v54 = vpop.f32.mrf.mxu2 }
 0x358   :  { %v2017_v46 = vadd.f32 %v2016_v42, %v1255_v41 }
 0x35a   :  { %1294 = vmatmul.bf16.gmra.mxu0 %v8201_v38  ;;  %v3129_v49 = vadd.f32 %v2923_v47, %v2017_v46  ;;  %v2021_v34 = vpop.f32.mrf.mxu1  ;;  %v8205_v46 = vld [vmem:[#allocation3 + $0x1b0] sm:$0xff]  ;;  %v8133_v47 = vld [vmem:[#allocation3 + $0x1c0] sm:$0xff] }
 0x35b   :  { %4001 = vmatmul.bf16.gmra.mxu3 %v8346_v61 }
 0x35c   :  { %v4163_v52 = vadd.f32 %v3957_v48, %v3129_v49  ;;  %2967 = vmatmul.bf16.gmra.mxu2 %v8274_v60 }
 0x35d   :  { %2060 = vmatmul.bf16.gmra.mxu1 %v8130_v57 }
 0x35e   :  { %4291 = vst [vmem:[#allocation2 + $0x260] sm:$0xff] %v4163_v52  ;;  %v3962_v1 = vpop.f32.mrf.mxu3  ;;  %v8349_v52 = vld [vmem:[#allocation3 + $0x190] sm:$0xff] }
 0x35f   :  { %v1257_v50 = vpop.f32.mrf.mxu0  ;;  %v2928_v0 = vpop.f32.mrf.mxu2 }
 0x360   :  { %v2019_v53 = vadd.f32 %v2018_v51, %v1257_v50  ;;  %v8277_v51 = vld [vmem:[#allocation3 + $0x1a0] sm:$0xff] }
 0x362   :  { %v3130_v58 = vadd.f32 %v2925_v54, %v2019_v53  ;;  %v2023_v12 = vpop.f32.mrf.mxu1 }
 0x364   :  { %v4164_v62 = vadd.f32 %v3959_v55, %v3130_v58 }
 0x366   :  { %4292 = vst [vmem:[#allocation2 + $0x268] sm:$0xff] %v4164_v62  ;;  %v3964_v3 = vpop.f32.mrf.mxu3 }
 0x367   :  { %v1260_v59 = vpop.f32.mrf.mxu0  ;;  %v2930_v2 = vpop.f32.mrf.mxu2 }
 0x368   :  { %v2022_v63 = vadd.f32 %v2021_v34, %v1260_v59 }
 0x36a   :  { %1299 = vmatmul.bf16.gmra.mxu0 %v8202_v56  ;;  %v3131_v10 = vadd.f32 %v2928_v0, %v2022_v63  ;;  %v2026_v8 = vpop.f32.mrf.mxu1  ;;  %v8206_v63 = vld [vmem:[#allocation3 + $0x1b8] sm:$0xff]  ;;  %v8134_v0 = vld [vmem:[#allocation3 + $0x1c8] sm:$0xff] }
 0x36b   :  { %4006 = vmatmul.bf16.gmra.mxu3 %v8347_v15 }
 0x36c   :  { %v4165_v9 = vadd.f32 %v3962_v1, %v3131_v10  ;;  %2972 = vmatmul.bf16.gmra.mxu2 %v8275_v14 }
 0x36d   :  { %2065 = vmatmul.bf16.gmra.mxu1 %v8131_v5 }
 0x36e   :  { %4293 = vst [vmem:[#allocation2 + $0x270] sm:$0xff] %v4165_v9  ;;  %v3967_v19 = vpop.f32.mrf.mxu3  ;;  %v8350_v9 = vld [vmem:[#allocation3 + $0x198] sm:$0xff] }
 0x36f   :  { %v1262_v11 = vpop.f32.mrf.mxu0  ;;  %v2933_v18 = vpop.f32.mrf.mxu2 }
 0x370   :  { %v2024_v13 = vadd.f32 %v2023_v12, %v1262_v11  ;;  %v8278_v12 = vld [vmem:[#allocation3 + $0x1a8] sm:$0xff] }
 0x372   :  { %v3132_v6 = vadd.f32 %v2930_v2, %v2024_v13  ;;  %v2028_v22 = vpop.f32.mrf.mxu1 }
 0x374   :  { %v4166_v16 = vadd.f32 %v3964_v3, %v3132_v6 }
 0x376   :  { %4294 = vst [vmem:[#allocation2 + $0x278] sm:$0xff] %v4166_v16  ;;  %v3969_v26 = vpop.f32.mrf.mxu3 }
 0x377   :  { %v1265_v7 = vpop.f32.mrf.mxu0  ;;  %v2935_v25 = vpop.f32.mrf.mxu2 }
 0x378   :  { %v2027_v17 = vadd.f32 %v2026_v8, %v1265_v7 }
 0x37a   :  { %1304 = vmatmul.bf16.gmra.mxu0 %v8203_v4  ;;  %v3133_v20 = vadd.f32 %v2933_v18, %v2027_v17  ;;  %v2031_v31 = vpop.f32.mrf.mxu1  ;;  %v8207_v17 = vld [vmem:[#allocation3 + $0x1c0] sm:$0xff]  ;;  %v8135_v18 = vld [vmem:[#allocation3 + $0x1d0] sm:$0xff] }
 0x37b   :  { %4011 = vmatmul.bf16.gmra.mxu3 %v8348_v33 }
 0x37c   :  { %v4167_v23 = vadd.f32 %v3967_v19, %v3133_v20  ;;  %2977 = vmatmul.bf16.gmra.mxu2 %v8276_v32 }
 0x37d   :  { %2070 = vmatmul.bf16.gmra.mxu1 %v8132_v28 }
 0x37e   :  { %4295 = vst [vmem:[#allocation2 + $0x280] sm:$0xff] %v4167_v23  ;;  %v3972_v38 = vpop.f32.mrf.mxu3  ;;  %v8351_v23 = vld [vmem:[#allocation3 + $0x1a0] sm:$0xff] }
 0x37f   :  { %v1267_v21 = vpop.f32.mrf.mxu0  ;;  %v2938_v37 = vpop.f32.mrf.mxu2 }
 0x380   :  { %v2029_v24 = vadd.f32 %v2028_v22, %v1267_v21  ;;  %v8279_v22 = vld [vmem:[#allocation3 + $0x1b0] sm:$0xff] }
 0x382   :  { %v3134_v29 = vadd.f32 %v2935_v25, %v2029_v24  ;;  %v2033_v41 = vpop.f32.mrf.mxu1 }
 0x384   :  { %v4168_v35 = vadd.f32 %v3969_v26, %v3134_v29 }
 0x386   :  { %4296 = vst [vmem:[#allocation2 + $0x288] sm:$0xff] %v4168_v35  ;;  %v3974_v45 = vpop.f32.mrf.mxu3 }
 0x387   :  { %v1270_v30 = vpop.f32.mrf.mxu0  ;;  %v2940_v44 = vpop.f32.mrf.mxu2 }
 0x388   :  { %v2032_v36 = vadd.f32 %v2031_v31, %v1270_v30 }
 0x38a   :  { %1309 = vmatmul.bf16.gmra.mxu0 %v8204_v27  ;;  %v3135_v39 = vadd.f32 %v2938_v37, %v2032_v36  ;;  %v2036_v50 = vpop.f32.mrf.mxu1  ;;  %v8208_v36 = vld [vmem:[#allocation3 + $0x1c8] sm:$0xff]  ;;  %v8136_v37 = vld [vmem:[#allocation3 + $0x1d8] sm:$0xff] }
 0x38b   :  { %4016 = vmatmul.bf16.gmra.mxu3 %v8349_v52 }
 0x38c   :  { %v4169_v42 = vadd.f32 %v3972_v38, %v3135_v39  ;;  %2982 = vmatmul.bf16.gmra.mxu2 %v8277_v51 }
 0x38d   :  { %2075 = vmatmul.bf16.gmra.mxu1 %v8133_v47 }
 0x38e   :  { %4297 = vst [vmem:[#allocation2 + $0x290] sm:$0xff] %v4169_v42  ;;  %v3977_v56 = vpop.f32.mrf.mxu3  ;;  %v8352_v42 = vld [vmem:[#allocation3 + $0x1a8] sm:$0xff] }
 0x38f   :  { %v1272_v40 = vpop.f32.mrf.mxu0  ;;  %v2943_v55 = vpop.f32.mrf.mxu2 }
 0x390   :  { %v2034_v43 = vadd.f32 %v2033_v41, %v1272_v40  ;;  %v8280_v41 = vld [vmem:[#allocation3 + $0x1b8] sm:$0xff] }
 0x392   :  { %v3136_v48 = vadd.f32 %v2940_v44, %v2034_v43  ;;  %v2038_v59 = vpop.f32.mrf.mxu1 }
 0x394   :  { %v4170_v53 = vadd.f32 %v3974_v45, %v3136_v48 }
 0x396   :  { %4298 = vst [vmem:[#allocation2 + $0x298] sm:$0xff] %v4170_v53  ;;  %v3979_v62 = vpop.f32.mrf.mxu3 }
 0x397   :  { %v1275_v49 = vpop.f32.mrf.mxu0  ;;  %v2945_v61 = vpop.f32.mrf.mxu2 }
 0x398   :  { %v2037_v54 = vadd.f32 %v2036_v50, %v1275_v49 }
 0x39a   :  { %1314 = vmatmul.bf16.gmra.mxu0 %v8205_v46  ;;  %v3137_v57 = vadd.f32 %v2943_v55, %v2037_v54  ;;  %v2041_v11 = vpop.f32.mrf.mxu1  ;;  %v8209_v54 = vld [vmem:[#allocation3 + $0x1d0] sm:$0xff]  ;;  %v8137_v55 = vld [vmem:[#allocation3 + $0x1e0] sm:$0xff] }
 0x39b   :  { %4021 = vmatmul.bf16.gmra.mxu3 %v8350_v9 }
 0x39c   :  { %v4171_v34 = vadd.f32 %v3977_v56, %v3137_v57  ;;  %2987 = vmatmul.bf16.gmra.mxu2 %v8278_v12 }
 0x39d   :  { %2080 = vmatmul.bf16.gmra.mxu1 %v8134_v0 }
 0x39e   :  { %4299 = vst [vmem:[#allocation2 + $0x2a0] sm:$0xff] %v4171_v34  ;;  %v3982_v4 = vpop.f32.mrf.mxu3  ;;  %v8353_v34 = vld [vmem:[#allocation3 + $0x1b0] sm:$0xff] }
 0x39f   :  { %v1277_v58 = vpop.f32.mrf.mxu0  ;;  %v2948_v3 = vpop.f32.mrf.mxu2 }
 0x3a0   :  { %v2039_v60 = vadd.f32 %v2038_v59, %v1277_v58  ;;  %v8281_v59 = vld [vmem:[#allocation3 + $0x1c0] sm:$0xff] }
 0x3a2   :  { %v3138_v1 = vadd.f32 %v2945_v61, %v2039_v60  ;;  %v2043_v7 = vpop.f32.mrf.mxu1 }
 0x3a4   :  { %v4172_v13 = vadd.f32 %v3979_v62, %v3138_v1 }
 0x3a6   :  { %4300 = vst [vmem:[#allocation2 + $0x2a8] sm:$0xff] %v4172_v13  ;;  %v3984_v16 = vpop.f32.mrf.mxu3 }
 0x3a7   :  { %v1280_v10 = vpop.f32.mrf.mxu0  ;;  %v2950_v15 = vpop.f32.mrf.mxu2 }
 0x3a8   :  { %v2042_v2 = vadd.f32 %v2041_v11, %v1280_v10 }
 0x3aa   :  { %1319 = vmatmul.bf16.gmra.mxu0 %v8206_v63  ;;  %v3139_v5 = vadd.f32 %v2948_v3, %v2042_v2  ;;  %v2046_v21 = vpop.f32.mrf.mxu1  ;;  %v8210_v2 = vld [vmem:[#allocation3 + $0x1d8] sm:$0xff]  ;;  %v8138_v3 = vld [vmem:[#allocation3 + $0x1e8] sm:$0xff] }
 0x3ab   :  { %4026 = vmatmul.bf16.gmra.mxu3 %v8351_v23 }
 0x3ac   :  { %v4173_v8 = vadd.f32 %v3982_v4, %v3139_v5  ;;  %2992 = vmatmul.bf16.gmra.mxu2 %v8279_v22 }
 0x3ad   :  { %2085 = vmatmul.bf16.gmra.mxu1 %v8135_v18 }
 0x3ae   :  { %4301 = vst [vmem:[#allocation2 + $0x2b0] sm:$0xff] %v4173_v8  ;;  %v3987_v27 = vpop.f32.mrf.mxu3  ;;  %v8354_v8 = vld [vmem:[#allocation3 + $0x1b8] sm:$0xff] }
 0x3af   :  { %v1282_v6 = vpop.f32.mrf.mxu0  ;;  %v2953_v26 = vpop.f32.mrf.mxu2 }
 0x3b0   :  { %v2044_v14 = vadd.f32 %v2043_v7, %v1282_v6  ;;  %v8282_v7 = vld [vmem:[#allocation3 + $0x1c8] sm:$0xff] }
 0x3b2   :  { %v3140_v19 = vadd.f32 %v2950_v15, %v2044_v14  ;;  %v2048_v30 = vpop.f32.mrf.mxu1 }
 0x3b4   :  { %v4174_v24 = vadd.f32 %v3984_v16, %v3140_v19 }
 0x3b6   :  { %4302 = vst [vmem:[#allocation2 + $0x2b8] sm:$0xff] %v4174_v24  ;;  %v3989_v35 = vpop.f32.mrf.mxu3 }
 0x3b7   :  { %v1285_v20 = vpop.f32.mrf.mxu0  ;;  %v2955_v33 = vpop.f32.mrf.mxu2 }
 0x3b8   :  { %v2047_v25 = vadd.f32 %v2046_v21, %v1285_v20 }
 0x3ba   :  { %1324 = vmatmul.bf16.gmra.mxu0 %v8207_v17  ;;  %v3141_v28 = vadd.f32 %v2953_v26, %v2047_v25  ;;  %v2051_v40 = vpop.f32.mrf.mxu1  ;;  %v8211_v25 = vld [vmem:[#allocation3 + $0x1e0] sm:$0xff]  ;;  %v8139_v26 = vld [vmem:[#allocation3 + $0x1f0] sm:$0xff] }
 0x3bb   :  { %4031 = vmatmul.bf16.gmra.mxu3 %v8352_v42 }
 0x3bc   :  { %v4175_v31 = vadd.f32 %v3987_v27, %v3141_v28  ;;  %2997 = vmatmul.bf16.gmra.mxu2 %v8280_v41 }
 0x3bd   :  { %2090 = vmatmul.bf16.gmra.mxu1 %v8136_v37 }
 0x3be   :  { %4303 = vst [vmem:[#allocation2 + $0x2c0] sm:$0xff] %v4175_v31  ;;  %v3992_v46 = vpop.f32.mrf.mxu3  ;;  %v8355_v31 = vld [vmem:[#allocation3 + $0x1c0] sm:$0xff] }
 0x3bf   :  { %v1287_v29 = vpop.f32.mrf.mxu0  ;;  %v2958_v45 = vpop.f32.mrf.mxu2 }
 0x3c0   :  { %v2049_v32 = vadd.f32 %v2048_v30, %v1287_v29  ;;  %v8283_v30 = vld [vmem:[#allocation3 + $0x1d0] sm:$0xff] }
 0x3c2   :  { %v3142_v38 = vadd.f32 %v2955_v33, %v2049_v32  ;;  %v2053_v49 = vpop.f32.mrf.mxu1 }
 0x3c4   :  { %v4176_v43 = vadd.f32 %v3989_v35, %v3142_v38 }
 0x3c6   :  { %4304 = vst [vmem:[#allocation2 + $0x2c8] sm:$0xff] %v4176_v43  ;;  %v3994_v53 = vpop.f32.mrf.mxu3 }
 0x3c7   :  { %v1290_v39 = vpop.f32.mrf.mxu0  ;;  %v2960_v52 = vpop.f32.mrf.mxu2 }
 0x3c8   :  { %v2052_v44 = vadd.f32 %v2051_v40, %v1290_v39 }
 0x3ca   :  { %1329 = vmatmul.bf16.gmra.mxu0 %v8208_v36  ;;  %v3143_v47 = vadd.f32 %v2958_v45, %v2052_v44  ;;  %v2056_v58 = vpop.f32.mrf.mxu1  ;;  %v8212_v44 = vld [vmem:[#allocation3 + $0x1e8] sm:$0xff]  ;;  %v8140_v45 = vld [vmem:[#allocation3 + $0x1f8] sm:$0xff] }
 0x3cb   :  { %4036 = vmatmul.bf16.gmra.mxu3 %v8353_v34 }
 0x3cc   :  { %v4177_v50 = vadd.f32 %v3992_v46, %v3143_v47  ;;  %3002 = vmatmul.bf16.gmra.mxu2 %v8281_v59 }
 0x3cd   :  { %2095 = vmatmul.bf16.gmra.mxu1 %v8137_v55 }
 0x3ce   :  { %4305 = vst [vmem:[#allocation2 + $0x2d0] sm:$0xff] %v4177_v50  ;;  %v3997_v63 = vpop.f32.mrf.mxu3  ;;  %v8356_v50 = vld [vmem:[#allocation3 + $0x1c8] sm:$0xff] }
 0x3cf   :  { %v1292_v48 = vpop.f32.mrf.mxu0  ;;  %v2963_v62 = vpop.f32.mrf.mxu2 }
 0x3d0   :  { %v2054_v51 = vadd.f32 %v2053_v49, %v1292_v48  ;;  %v8284_v49 = vld [vmem:[#allocation3 + $0x1d8] sm:$0xff] }
 0x3d2   :  { %v3144_v56 = vadd.f32 %v2960_v52, %v2054_v51  ;;  %v2058_v10 = vpop.f32.mrf.mxu1 }
 0x3d4   :  { %v4178_v60 = vadd.f32 %v3994_v53, %v3144_v56 }
 0x3d6   :  { %4306 = vst [vmem:[#allocation2 + $0x2d8] sm:$0xff] %v4178_v60  ;;  %v3999_v13 = vpop.f32.mrf.mxu3 }
 0x3d7   :  { %v1295_v57 = vpop.f32.mrf.mxu0  ;;  %v2965_v9 = vpop.f32.mrf.mxu2 }
 0x3d8   :  { %v2057_v61 = vadd.f32 %v2056_v58, %v1295_v57 }
 0x3da   :  { %1334 = vmatmul.bf16.gmra.mxu0 %v8209_v54  ;;  %v3145_v0 = vadd.f32 %v2963_v62, %v2057_v61  ;;  %v2061_v6 = vpop.f32.mrf.mxu1  ;;  %v8213_v61 = vld [vmem:[#allocation3 + $0x1f0] sm:$0xff]  ;;  %v8141_v62 = vld [vmem:[#allocation3 + $0x200] sm:$0xff] }
 0x3db   :  { %4041 = vmatmul.bf16.gmra.mxu3 %v8354_v8 }
 0x3dc   :  { %v4179_v11 = vadd.f32 %v3997_v63, %v3145_v0  ;;  %3007 = vmatmul.bf16.gmra.mxu2 %v8282_v7 }
 0x3dd   :  { %2100 = vmatmul.bf16.gmra.mxu1 %v8138_v3 }
 0x3de   :  { %4307 = vst [vmem:[#allocation2 + $0x2e0] sm:$0xff] %v4179_v11  ;;  %v4002_v17 = vpop.f32.mrf.mxu3  ;;  %v8357_v11 = vld [vmem:[#allocation3 + $0x1d0] sm:$0xff] }
 0x3df   :  { %v1297_v1 = vpop.f32.mrf.mxu0  ;;  %v2968_v16 = vpop.f32.mrf.mxu2 }
 0x3e0   :  { %v2059_v12 = vadd.f32 %v2058_v10, %v1297_v1  ;;  %v8285_v10 = vld [vmem:[#allocation3 + $0x1e0] sm:$0xff] }
 0x3e2   :  { %v3146_v4 = vadd.f32 %v2965_v9, %v2059_v12  ;;  %v2063_v20 = vpop.f32.mrf.mxu1 }
 0x3e4   :  { %v4180_v14 = vadd.f32 %v3999_v13, %v3146_v4 }
 0x3e6   :  { %4308 = vst [vmem:[#allocation2 + $0x2e8] sm:$0xff] %v4180_v14  ;;  %v4004_v24 = vpop.f32.mrf.mxu3 }
 0x3e7   :  { %v1300_v5 = vpop.f32.mrf.mxu0  ;;  %v2970_v23 = vpop.f32.mrf.mxu2 }
 0x3e8   :  { %v2062_v15 = vadd.f32 %v2061_v6, %v1300_v5 }
 0x3ea   :  { %1339 = vmatmul.bf16.gmra.mxu0 %v8210_v2  ;;  %v3147_v18 = vadd.f32 %v2968_v16, %v2062_v15  ;;  %v2066_v29 = vpop.f32.mrf.mxu1  ;;  %v8214_v15 = vld [vmem:[#allocation3 + $0x1f8] sm:$0xff]  ;;  %v8142_v16 = vld [vmem:[#allocation3 + $0x208] sm:$0xff] }
 0x3eb   :  { %4046 = vmatmul.bf16.gmra.mxu3 %v8355_v31 }
 0x3ec   :  { %v4181_v21 = vadd.f32 %v4002_v17, %v3147_v18  ;;  %3012 = vmatmul.bf16.gmra.mxu2 %v8283_v30 }
 0x3ed   :  { %2105 = vmatmul.bf16.gmra.mxu1 %v8139_v26 }
 0x3ee   :  { %4309 = vst [vmem:[#allocation2 + $0x2f0] sm:$0xff] %v4181_v21  ;;  %v4007_v36 = vpop.f32.mrf.mxu3  ;;  %v8358_v21 = vld [vmem:[#allocation3 + $0x1d8] sm:$0xff] }
 0x3ef   :  { %v1302_v19 = vpop.f32.mrf.mxu0  ;;  %v2973_v35 = vpop.f32.mrf.mxu2 }
 0x3f0   :  { %v2064_v22 = vadd.f32 %v2063_v20, %v1302_v19  ;;  %v8286_v20 = vld [vmem:[#allocation3 + $0x1e8] sm:$0xff] }
 0x3f2   :  { %v3148_v27 = vadd.f32 %v2970_v23, %v2064_v22  ;;  %v2068_v39 = vpop.f32.mrf.mxu1 }
 0x3f4   :  { %v4182_v32 = vadd.f32 %v4004_v24, %v3148_v27 }
 0x3f6   :  { %4310 = vst [vmem:[#allocation2 + $0x2f8] sm:$0xff] %v4182_v32  ;;  %v4009_v43 = vpop.f32.mrf.mxu3 }
 0x3f7   :  { %v1305_v28 = vpop.f32.mrf.mxu0  ;;  %v2975_v42 = vpop.f32.mrf.mxu2 }
 0x3f8   :  { %v2067_v33 = vadd.f32 %v2066_v29, %v1305_v28 }
 0x3fa   :  { %1344 = vmatmul.bf16.gmra.mxu0 %v8211_v25  ;;  %v3149_v37 = vadd.f32 %v2973_v35, %v2067_v33  ;;  %v2071_v48 = vpop.f32.mrf.mxu1  ;;  %v8215_v33 = vld [vmem:[#allocation3 + $0x200] sm:$0xff]  ;;  %v8143_v35 = vld [vmem:[#allocation3 + $0x210] sm:$0xff] }
 0x3fb   :  { %4051 = vmatmul.bf16.gmra.mxu3 %v8356_v50 }
 0x3fc   :  { %v4183_v40 = vadd.f32 %v4007_v36, %v3149_v37  ;;  %3017 = vmatmul.bf16.gmra.mxu2 %v8284_v49 }
 0x3fd   :  { %2110 = vmatmul.bf16.gmra.mxu1 %v8140_v45 }
 0x3fe   :  { %4311 = vst [vmem:[#allocation2 + $0x300] sm:$0xff] %v4183_v40  ;;  %v4012_v54 = vpop.f32.mrf.mxu3  ;;  %v8359_v40 = vld [vmem:[#allocation3 + $0x1e0] sm:$0xff] }
 0x3ff   :  { %v1307_v38 = vpop.f32.mrf.mxu0  ;;  %v2978_v53 = vpop.f32.mrf.mxu2 }
 0x400   :  { %v2069_v41 = vadd.f32 %v2068_v39, %v1307_v38  ;;  %v8287_v39 = vld [vmem:[#allocation3 + $0x1f0] sm:$0xff] }
 0x402   :  { %v3150_v46 = vadd.f32 %v2975_v42, %v2069_v41  ;;  %v2073_v57 = vpop.f32.mrf.mxu1 }
 0x404   :  { %v4184_v51 = vadd.f32 %v4009_v43, %v3150_v46 }
 0x406   :  { %4312 = vst [vmem:[#allocation2 + $0x308] sm:$0xff] %v4184_v51  ;;  %v4014_v60 = vpop.f32.mrf.mxu3 }
 0x407   :  { %v1310_v47 = vpop.f32.mrf.mxu0  ;;  %v2980_v34 = vpop.f32.mrf.mxu2 }
 0x408   :  { %v2072_v52 = vadd.f32 %v2071_v48, %v1310_v47 }
 0x40a   :  { %1349 = vmatmul.bf16.gmra.mxu0 %v8212_v44  ;;  %v3151_v55 = vadd.f32 %v2978_v53, %v2072_v52  ;;  %v2076_v1 = vpop.f32.mrf.mxu1  ;;  %v8216_v52 = vld [vmem:[#allocation3 + $0x208] sm:$0xff]  ;;  %v8144_v53 = vld [vmem:[#allocation3 + $0x218] sm:$0xff] }
 0x40b   :  { %4056 = vmatmul.bf16.gmra.mxu3 %v8357_v11 }
 0x40c   :  { %v4185_v58 = vadd.f32 %v4012_v54, %v3151_v55  ;;  %3022 = vmatmul.bf16.gmra.mxu2 %v8285_v10 }
 0x40d   :  { %2115 = vmatmul.bf16.gmra.mxu1 %v8141_v62 }
 0x40e   :  { %4313 = vst [vmem:[#allocation2 + $0x310] sm:$0xff] %v4185_v58  ;;  %v4017_v2 = vpop.f32.mrf.mxu3  ;;  %v8360_v58 = vld [vmem:[#allocation3 + $0x1e8] sm:$0xff] }
 0x40f   :  { %v1312_v56 = vpop.f32.mrf.mxu0  ;;  %v2983_v13 = vpop.f32.mrf.mxu2 }
 0x410   :  { %v2074_v59 = vadd.f32 %v2073_v57, %v1312_v56  ;;  %v8288_v57 = vld [vmem:[#allocation3 + $0x1f8] sm:$0xff] }
 0x412   :  { %v3152_v63 = vadd.f32 %v2980_v34, %v2074_v59  ;;  %v2078_v5 = vpop.f32.mrf.mxu1 }
 0x414   :  { %v4186_v12 = vadd.f32 %v4014_v60, %v3152_v63 }
 0x416   :  { %4314 = vst [vmem:[#allocation2 + $0x318] sm:$0xff] %v4186_v12  ;;  %v4019_v14 = vpop.f32.mrf.mxu3 }
 0x417   :  { %v1315_v0 = vpop.f32.mrf.mxu0  ;;  %v2985_v8 = vpop.f32.mrf.mxu2 }
 0x418   :  { %v2077_v9 = vadd.f32 %v2076_v1, %v1315_v0 }
 0x41a   :  { %1354 = vmatmul.bf16.gmra.mxu0 %v8213_v61  ;;  %v3153_v3 = vadd.f32 %v2983_v13, %v2077_v9  ;;  %v2081_v19 = vpop.f32.mrf.mxu1  ;;  %v8217_v9 = vld [vmem:[#allocation3 + $0x210] sm:$0xff]  ;;  %v8145_v13 = vld [vmem:[#allocation3 + $0x220] sm:$0xff] }
 0x41b   :  { %4061 = vmatmul.bf16.gmra.mxu3 %v8358_v21 }
 0x41c   :  { %v4187_v6 = vadd.f32 %v4017_v2, %v3153_v3  ;;  %3027 = vmatmul.bf16.gmra.mxu2 %v8286_v20 }
 0x41d   :  { %2120 = vmatmul.bf16.gmra.mxu1 %v8142_v16 }
 0x41e   :  { %4315 = vst [vmem:[#allocation2 + $0x320] sm:$0xff] %v4187_v6  ;;  %v4022_v25 = vpop.f32.mrf.mxu3  ;;  %v8361_v6 = vld [vmem:[#allocation3 + $0x1f0] sm:$0xff] }
 0x41f   :  { %v1317_v4 = vpop.f32.mrf.mxu0  ;;  %v2988_v24 = vpop.f32.mrf.mxu2 }
 0x420   :  { %v2079_v7 = vadd.f32 %v2078_v5, %v1317_v4  ;;  %v8289_v5 = vld [vmem:[#allocation3 + $0x200] sm:$0xff] }
 0x422   :  { %v3154_v17 = vadd.f32 %v2985_v8, %v2079_v7  ;;  %v2083_v28 = vpop.f32.mrf.mxu1 }
 0x424   :  { %v4188_v22 = vadd.f32 %v4019_v14, %v3154_v17 }
 0x426   :  { %4316 = vst [vmem:[#allocation2 + $0x328] sm:$0xff] %v4188_v22  ;;  %v4024_v32 = vpop.f32.mrf.mxu3 }
 0x427   :  { %v1320_v18 = vpop.f32.mrf.mxu0  ;;  %v2990_v31 = vpop.f32.mrf.mxu2 }
 0x428   :  { %v2082_v23 = vadd.f32 %v2081_v19, %v1320_v18 }
 0x42a   :  { %1359 = vmatmul.bf16.gmra.mxu0 %v8214_v15  ;;  %v3155_v26 = vadd.f32 %v2988_v24, %v2082_v23  ;;  %v2086_v38 = vpop.f32.mrf.mxu1  ;;  %v8218_v23 = vld [vmem:[#allocation3 + $0x218] sm:$0xff]  ;;  %v8146_v24 = vld [vmem:[#allocation3 + $0x228] sm:$0xff] }
 0x42b   :  { %4066 = vmatmul.bf16.gmra.mxu3 %v8359_v40 }
 0x42c   :  { %v4189_v29 = vadd.f32 %v4022_v25, %v3155_v26  ;;  %3032 = vmatmul.bf16.gmra.mxu2 %v8287_v39 }
 0x42d   :  { %2125 = vmatmul.bf16.gmra.mxu1 %v8143_v35 }
 0x42e   :  { %4317 = vst [vmem:[#allocation2 + $0x330] sm:$0xff] %v4189_v29  ;;  %v4027_v44 = vpop.f32.mrf.mxu3  ;;  %v8362_v29 = vld [vmem:[#allocation3 + $0x1f8] sm:$0xff] }
 0x42f   :  { %v1322_v27 = vpop.f32.mrf.mxu0  ;;  %v2993_v43 = vpop.f32.mrf.mxu2 }
 0x430   :  { %v2084_v30 = vadd.f32 %v2083_v28, %v1322_v27  ;;  %v8290_v28 = vld [vmem:[#allocation3 + $0x208] sm:$0xff] }
 0x432   :  { %v3156_v36 = vadd.f32 %v2990_v31, %v2084_v30  ;;  %v2088_v47 = vpop.f32.mrf.mxu1 }
 0x434   :  { %v4190_v41 = vadd.f32 %v4024_v32, %v3156_v36 }
 0x436   :  { %4318 = vst [vmem:[#allocation2 + $0x338] sm:$0xff] %v4190_v41  ;;  %v4029_v51 = vpop.f32.mrf.mxu3 }
 0x437   :  { %v1325_v37 = vpop.f32.mrf.mxu0  ;;  %v2995_v50 = vpop.f32.mrf.mxu2 }
 0x438   :  { %v2087_v42 = vadd.f32 %v2086_v38, %v1325_v37 }
 0x43a   :  { %1364 = vmatmul.bf16.gmra.mxu0 %v8215_v33  ;;  %v3157_v45 = vadd.f32 %v2993_v43, %v2087_v42  ;;  %v2091_v56 = vpop.f32.mrf.mxu1 }
 0x43b   :  { %4071 = vmatmul.bf16.gmra.mxu3 %v8360_v58 }
 0x43c   :  { %v4191_v48 = vadd.f32 %v4027_v44, %v3157_v45  ;;  %3037 = vmatmul.bf16.gmra.mxu2 %v8288_v57 }
 0x43d   :  { %2130 = vmatmul.bf16.gmra.mxu1 %v8144_v53 }
 0x43e   :  { %4319 = vst [vmem:[#allocation2 + $0x340] sm:$0xff] %v4191_v48  ;;  %v4032_v61 = vpop.f32.mrf.mxu3 }
 0x43f   :  { %v1327_v46 = vpop.f32.mrf.mxu0  ;;  %v2998_v60 = vpop.f32.mrf.mxu2 }
 0x440   :  { %v2089_v49 = vadd.f32 %v2088_v47, %v1327_v46 }
 0x442   :  { %v3158_v54 = vadd.f32 %v2995_v50, %v2089_v49  ;;  %v2093_v0 = vpop.f32.mrf.mxu1 }
 0x444   :  { %v4192_v59 = vadd.f32 %v4029_v51, %v3158_v54 }
 0x446   :  { %4320 = vst [vmem:[#allocation2 + $0x348] sm:$0xff] %v4192_v59  ;;  %v4034_v12 = vpop.f32.mrf.mxu3 }
 0x447   :  { %v1330_v55 = vpop.f32.mrf.mxu0  ;;  %v3000_v11 = vpop.f32.mrf.mxu2 }
 0x448   :  { %v2092_v34 = vadd.f32 %v2091_v56, %v1330_v55 }
 0x44a   :  { %1369 = vmatmul.bf16.gmra.mxu0 %v8216_v52  ;;  %v3159_v62 = vadd.f32 %v2998_v60, %v2092_v34  ;;  %v2096_v4 = vpop.f32.mrf.mxu1 }
 0x44b   :  { %4076 = vmatmul.bf16.gmra.mxu3 %v8361_v6 }
 0x44c   :  { %v4193_v1 = vadd.f32 %v4032_v61, %v3159_v62  ;;  %3042 = vmatmul.bf16.gmra.mxu2 %v8289_v5 }
 0x44d   :  { %2135 = vmatmul.bf16.gmra.mxu1 %v8145_v13 }
 0x44e   :  { %4321 = vst [vmem:[#allocation2 + $0x350] sm:$0xff] %v4193_v1  ;;  %v4037_v15 = vpop.f32.mrf.mxu3 }
 0x44f   :  { %v1332_v63 = vpop.f32.mrf.mxu0  ;;  %v3003_v14 = vpop.f32.mrf.mxu2 }
 0x450   :  { %v2094_v10 = vadd.f32 %v2093_v0, %v1332_v63 }
 0x452   :  { %v3160_v2 = vadd.f32 %v3000_v11, %v2094_v10  ;;  %v2098_v18 = vpop.f32.mrf.mxu1 }
 0x454   :  { %v4194_v7 = vadd.f32 %v4034_v12, %v3160_v2 }
 0x456   :  { %4322 = vst [vmem:[#allocation2 + $0x358] sm:$0xff] %v4194_v7  ;;  %v4039_v22 = vpop.f32.mrf.mxu3 }
 0x457   :  { %v1335_v3 = vpop.f32.mrf.mxu0  ;;  %v3005_v21 = vpop.f32.mrf.mxu2 }
 0x458   :  { %v2097_v8 = vadd.f32 %v2096_v4, %v1335_v3 }
 0x45a   :  { %1374 = vmatmul.bf16.gmra.mxu0 %v8217_v9  ;;  %v3161_v16 = vadd.f32 %v3003_v14, %v2097_v8  ;;  %v2101_v27 = vpop.f32.mrf.mxu1 }
 0x45b   :  { %4081 = vmatmul.bf16.gmra.mxu3 %v8362_v29 }
 0x45c   :  { %v4195_v19 = vadd.f32 %v4037_v15, %v3161_v16  ;;  %3047 = vmatmul.bf16.gmra.mxu2 %v8290_v28 }
 0x45d   :  { %2140 = vmatmul.bf16.gmra.mxu1 %v8146_v24 }
 0x45e   :  { %4323 = vst [vmem:[#allocation2 + $0x360] sm:$0xff] %v4195_v19  ;;  %v4042_v33 = vpop.f32.mrf.mxu3 }
 0x45f   :  { %v1337_v17 = vpop.f32.mrf.mxu0  ;;  %v3008_v32 = vpop.f32.mrf.mxu2 }
 0x460   :  { %v2099_v20 = vadd.f32 %v2098_v18, %v1337_v17 }
 0x462   :  { %v3162_v25 = vadd.f32 %v3005_v21, %v2099_v20  ;;  %v2103_v37 = vpop.f32.mrf.mxu1 }
 0x464   :  { %v4196_v30 = vadd.f32 %v4039_v22, %v3162_v25 }
 0x466   :  { %4324 = vst [vmem:[#allocation2 + $0x368] sm:$0xff] %v4196_v30  ;;  %v4044_v41 = vpop.f32.mrf.mxu3 }
 0x467   :  { %v1340_v26 = vpop.f32.mrf.mxu0  ;;  %v3010_v40 = vpop.f32.mrf.mxu2 }
 0x468   :  { %v2102_v31 = vadd.f32 %v2101_v27, %v1340_v26 }
 0x46a   :  { %1379 = vmatmul.bf16.gmra.mxu0 %v8218_v23  ;;  %v3163_v35 = vadd.f32 %v3008_v32, %v2102_v31  ;;  %v2106_v44 = vpop.f32.mrf.mxu1 }
 0x46c   :  { %v4197_v38 = vadd.f32 %v4042_v33, %v3163_v35 }
 0x46e   :  { %4325 = vst [vmem:[#allocation2 + $0x370] sm:$0xff] %v4197_v38  ;;  %v4047_v48 = vpop.f32.mrf.mxu3 }
 0x46f   :  { %v1342_v36 = vpop.f32.mrf.mxu0  ;;  %v3013_v47 = vpop.f32.mrf.mxu2 }
 0x470   :  { %v2104_v39 = vadd.f32 %v2103_v37, %v1342_v36 }
 0x472   :  { %v3164_v42 = vadd.f32 %v3010_v40, %v2104_v39  ;;  %v2108_v51 = vpop.f32.mrf.mxu1 }
 0x474   :  { %v4198_v45 = vadd.f32 %v4044_v41, %v3164_v42 }
 0x476   :  { %4326 = vst [vmem:[#allocation2 + $0x378] sm:$0xff] %v4198_v45  ;;  %v4049_v55 = vpop.f32.mrf.mxu3 }
 0x477   :  { %v1345_v43 = vpop.f32.mrf.mxu0  ;;  %v3015_v54 = vpop.f32.mrf.mxu2 }
 0x478   :  { %v2107_v46 = vadd.f32 %v2106_v44, %v1345_v43 }
 0x47a   :  { %v3165_v49 = vadd.f32 %v3013_v47, %v2107_v46  ;;  %v2111_v58 = vpop.f32.mrf.mxu1 }
 0x47c   :  { %v4199_v52 = vadd.f32 %v4047_v48, %v3165_v49 }
 0x47e   :  { %4327 = vst [vmem:[#allocation2 + $0x380] sm:$0xff] %v4199_v52  ;;  %v4052_v61 = vpop.f32.mrf.mxu3 }
 0x47f   :  { %v1347_v50 = vpop.f32.mrf.mxu0  ;;  %v3018_v60 = vpop.f32.mrf.mxu2 }
 0x480   :  { %v2109_v53 = vadd.f32 %v2108_v51, %v1347_v50 }
 0x482   :  { %v3166_v56 = vadd.f32 %v3015_v54, %v2109_v53  ;;  %v2113_v0 = vpop.f32.mrf.mxu1 }
 0x484   :  { %v4200_v59 = vadd.f32 %v4049_v55, %v3166_v56 }
 0x486   :  { %4328 = vst [vmem:[#allocation2 + $0x388] sm:$0xff] %v4200_v59  ;;  %v4054_v12 = vpop.f32.mrf.mxu3 }
 0x487   :  { %v1350_v57 = vpop.f32.mrf.mxu0  ;;  %v3020_v11 = vpop.f32.mrf.mxu2 }
 0x488   :  { %v2112_v34 = vadd.f32 %v2111_v58, %v1350_v57 }
 0x48a   :  { %v3167_v62 = vadd.f32 %v3018_v60, %v2112_v34  ;;  %v2116_v2 = vpop.f32.mrf.mxu1 }
 0x48c   :  { %v4201_v1 = vadd.f32 %v4052_v61, %v3167_v62 }
 0x48e   :  { %4329 = vst [vmem:[#allocation2 + $0x390] sm:$0xff] %v4201_v1  ;;  %v4057_v6 = vpop.f32.mrf.mxu3 }
 0x48f   :  { %v1352_v63 = vpop.f32.mrf.mxu0  ;;  %v3023_v5 = vpop.f32.mrf.mxu2 }
 0x490   :  { %v2114_v10 = vadd.f32 %v2113_v0, %v1352_v63 }
 0x492   :  { %v3168_v9 = vadd.f32 %v3020_v11, %v2114_v10  ;;  %v2118_v14 = vpop.f32.mrf.mxu1  ;;  %v4343_v10 = vld [vmem:[#allocation7] sm:$0xff]   ;;  %v4344_v11 = vld [vmem:[#allocation7 + $0x8] sm:$0xff]  }
 0x494   :  { %v4202_v3 = vadd.f32 %v4054_v12, %v3168_v9  ;;  %v4345_v12 = vld [vmem:[#allocation7 + $0x10] sm:$0xff]   ;;  %v4346_v9 = vld [vmem:[#allocation7 + $0x18] sm:$0xff]  }
 0x496   :  { %4330 = vst [vmem:[#allocation2 + $0x398] sm:$0xff] %v4202_v3  ;;  %v4059_v18 = vpop.f32.mrf.mxu3  ;;  %v4349_v3 = vld [vmem:[#allocation8 + $0x18] sm:$0xff]  }
 0x497   :  { %v1355_v13 = vpop.f32.mrf.mxu0  ;;  %v3025_v17 = vpop.f32.mrf.mxu2 }
 0x498   :  { %v2117_v4 = vadd.f32 %v2116_v2, %v1355_v13  ;;  %v4347_v13 = vld [vmem:[#allocation8] sm:$0xff]   ;;  %v4348_v2 = vld [vmem:[#allocation8 + $0x10] sm:$0xff]  }
 0x49a   :  { %v3169_v7 = vadd.f32 %v3023_v5, %v2117_v4  ;;  %v2121_v21 = vpop.f32.mrf.mxu1  ;;  %v4350_v4 = vld [vmem:[#allocation8 + $0x8] sm:$0xff]  }
 0x49c   :  { %v4203_v15 = vadd.f32 %v4057_v6, %v3169_v7 }
 0x49e   :  { %4331 = vst [vmem:[#allocation2 + $0x3a0] sm:$0xff] %v4203_v15  ;;  %v4062_v25 = vpop.f32.mrf.mxu3 }
 0x49f   :  { %v1357_v8 = vpop.f32.mrf.mxu0  ;;  %v3028_v24 = vpop.f32.mrf.mxu2 }
 0x4a0   :  { %v2119_v16 = vadd.f32 %v2118_v14, %v1357_v8 }
 0x4a2   :  { %v3170_v19 = vadd.f32 %v3025_v17, %v2119_v16  ;;  %v2123_v28 = vpop.f32.mrf.mxu1 }
 0x4a4   :  { %v4204_v22 = vadd.f32 %v4059_v18, %v3170_v19 }
 0x4a6   :  { %4332 = vst [vmem:[#allocation2 + $0x3a8] sm:$0xff] %v4204_v22  ;;  %v4064_v32 = vpop.f32.mrf.mxu3 }
 0x4a7   :  { %v1360_v20 = vpop.f32.mrf.mxu0  ;;  %v3030_v31 = vpop.f32.mrf.mxu2 }
 0x4a8   :  { %v2122_v23 = vadd.f32 %v2121_v21, %v1360_v20 }
 0x4aa   :  { %v3171_v26 = vadd.f32 %v3028_v24, %v2122_v23  ;;  %v2126_v36 = vpop.f32.mrf.mxu1 }
 0x4ac   :  { %v4205_v29 = vadd.f32 %v4062_v25, %v3171_v26 }
 0x4ae   :  { %4333 = vst [vmem:[#allocation2 + $0x3b0] sm:$0xff] %v4205_v29  ;;  %v4067_v40 = vpop.f32.mrf.mxu3 }
 0x4af   :  { %v1362_v27 = vpop.f32.mrf.mxu0  ;;  %v3033_v39 = vpop.f32.mrf.mxu2 }
 0x4b0   :  { %v2124_v30 = vadd.f32 %v2123_v28, %v1362_v27 }
 0x4b2   :  { %v3172_v33 = vadd.f32 %v3030_v31, %v2124_v30  ;;  %v2128_v43 = vpop.f32.mrf.mxu1 }
 0x4b4   :  { %v4206_v37 = vadd.f32 %v4064_v32, %v3172_v33 }
 0x4b6   :  { %4334 = vst [vmem:[#allocation2 + $0x3b8] sm:$0xff] %v4206_v37  ;;  %v4069_v47 = vpop.f32.mrf.mxu3 }
 0x4b7   :  { %v1365_v35 = vpop.f32.mrf.mxu0  ;;  %v3035_v46 = vpop.f32.mrf.mxu2 }
 0x4b8   :  { %v2127_v38 = vadd.f32 %v2126_v36, %v1365_v35 }
 0x4ba   :  { %v3173_v41 = vadd.f32 %v3033_v39, %v2127_v38  ;;  %v2131_v50 = vpop.f32.mrf.mxu1 }
 0x4bc   :  { %v4207_v44 = vadd.f32 %v4067_v40, %v3173_v41 }
 0x4be   :  { %4335 = vst [vmem:[#allocation2 + $0x3c0] sm:$0xff] %v4207_v44  ;;  %v4072_v54 = vpop.f32.mrf.mxu3 }
 0x4bf   :  { %v1367_v42 = vpop.f32.mrf.mxu0  ;;  %v3038_v53 = vpop.f32.mrf.mxu2 }
 0x4c0   :  { %v2129_v45 = vadd.f32 %v2128_v43, %v1367_v42 }
 0x4c2   :  { %v3174_v48 = vadd.f32 %v3035_v46, %v2129_v45  ;;  %v2133_v57 = vpop.f32.mrf.mxu1 }
 0x4c4   :  { %v4208_v51 = vadd.f32 %v4069_v47, %v3174_v48 }
 0x4c6   :  { %4336 = vst [vmem:[#allocation2 + $0x3c8] sm:$0xff] %v4208_v51  ;;  %v4074_v60 = vpop.f32.mrf.mxu3 }
 0x4c7   :  { %v1370_v49 = vpop.f32.mrf.mxu0  ;;  %v3040_v34 = vpop.f32.mrf.mxu2 }
 0x4c8   :  { %v2132_v52 = vadd.f32 %v2131_v50, %v1370_v49 }
 0x4ca   :  { %v3175_v55 = vadd.f32 %v3038_v53, %v2132_v52  ;;  %v2136_v63 = vpop.f32.mrf.mxu1 }
 0x4cc   :  { %v4209_v58 = vadd.f32 %v4072_v54, %v3175_v55 }
 0x4ce   :  { %4337 = vst [vmem:[#allocation2 + $0x3d0] sm:$0xff] %v4209_v58  ;;  %v4077_v6 = vpop.f32.mrf.mxu3 }
 0x4cf   :  { %v1372_v56 = vpop.f32.mrf.mxu0  ;;  %v3043_v5 = vpop.f32.mrf.mxu2 }
 0x4d0   :  { %v2134_v59 = vadd.f32 %v2133_v57, %v1372_v56 }
 0x4d2   :  { %v3176_v61 = vadd.f32 %v3040_v34, %v2134_v59  ;;  %v2138_v14 = vpop.f32.mrf.mxu1 }
 0x4d4   :  { %v4210_v0 = vadd.f32 %v4074_v60, %v3176_v61 }
 0x4d6   :  { %4338 = vst [vmem:[#allocation2 + $0x3d8] sm:$0xff] %v4210_v0  ;;  %v4079_v18 = vpop.f32.mrf.mxu3 }
 0x4d7   :  { %v1375_v62 = vpop.f32.mrf.mxu0  ;;  %v3045_v17 = vpop.f32.mrf.mxu2 }
 0x4d8   :  { %v2137_v1 = vadd.f32 %v2136_v63, %v1375_v62 }
 0x4da   :  { %v3177_v7 = vadd.f32 %v3043_v5, %v2137_v1  ;;  %v2141_v21 = vpop.f32.mrf.mxu1 }
 0x4dc   :  { %v4211_v15 = vadd.f32 %v4077_v6, %v3177_v7 }
 0x4de   :  { %4339 = vst [vmem:[#allocation2 + $0x3e0] sm:$0xff] %v4211_v15  ;;  %v4082_v25 = vpop.f32.mrf.mxu3 }
 0x4df   :  { %v1377_v8 = vpop.f32.mrf.mxu0  ;;  %v3048_v24 = vpop.f32.mrf.mxu2 }
 0x4e0   :  { %v2139_v16 = vadd.f32 %v2138_v14, %v1377_v8 }
 0x4e2   :  { %v3178_v19 = vadd.f32 %v3045_v17, %v2139_v16  ;;  %v2143_v29 = vpop.f32.mrf.mxu1 }
 0x4e4   :  { %v4212_v22 = vadd.f32 %v4079_v18, %v3178_v19 }
 0x4e6   :  { %4340 = vst [vmem:[#allocation2 + $0x3e8] sm:$0xff] %v4212_v22  ;;  %v4084_v33 = vpop.f32.mrf.mxu3 }
 0x4e7   :  { %v1380_v20 = vpop.f32.mrf.mxu0  ;;  %v3050_v31 = vpop.f32.mrf.mxu2 }
 0x4e8   :  { %v2142_v23 = vadd.f32 %v2141_v21, %v1380_v20 }
 0x4ea   :  { %v3179_v26 = vadd.f32 %v3048_v24, %v2142_v23 }
 0x4ec   :  { %v4213_v27 = vadd.f32 %v4082_v25, %v3179_v26 }
 0x4ee   :  { %4341 = vst [vmem:[#allocation2 + $0x3f0] sm:$0xff] %v4213_v27 }
 0x4ef   :  { %v1382_v28 = vpop.f32.mrf.mxu0 }
 0x4f0   :  { %v2144_v30 = vadd.f32 %v2143_v29, %v1382_v28 }
 0x4f2   :  { %v3180_v32 = vadd.f32 %v3050_v31, %v2144_v30 }
 0x4f4   :  { %v4214_v35 = vadd.f32 %v4084_v33, %v3180_v32 }
 0x4f6   :  { %4342 = vst [vmem:[#allocation2 + $0x3f8] sm:$0xff] %v4214_v35 }
 0x4f7 LB: > { %v4366_v36 = vmul.f32 0.75, %v10129_v10  ;;  %v4367_v37 = vmul.f32 0.75, %v10125_v11  ;;  %s8371_s9 = sshll.u32 %s10133_s8, 7  ;;  %v4380_v38 = vmul.f32 0.96875, %v10113_v13  ;;  %v4381_v39 = vmul.f32 0.96875, %v10109_v2  ;;  %s8372_s11 = sshll.u32 %s10133_s8, 6  ;;  %s10133_s8 = sphi %s10291_s8, %s4356_s8   ;;  %v10129_v10 = vphi %v4343_v10, %v11678_v10   ;;  %v10125_v11 = vphi %v4344_v11, %v11677_v11   ;;  %v10121_v12 = vphi %v4345_v12, %v11676_v12   ;;  %v10117_v9 = vphi %v4346_v9, %v11675_v9   ;;  %v10113_v13 = vphi %v4347_v13, %v11674_v13   ;;  %v10109_v2 = vphi %v4348_v2, %v11673_v2   ;;  %v10105_v3 = vphi %v4349_v3, %v11672_v3   ;;  %v10101_v4 = vphi %v4350_v4, %v11671_v4  }
 0x4f8   : > { %s10305_s10 = scalar_lea.vmem [#allocation2], %s8371_s9  ;;  %v4369_v44 = vmul.f32 0.75, %v10117_v9  ;;  %v4368_v47 = vmul.f32 0.75, %v10121_v12  ;;  %v4382_v48 = vmul.f32 0.96875, %v10105_v3  ;;  %v4383_v49 = vmul.f32 0.96875, %v10101_v4  ;;  %s10317_s12 = scalar_lea.vmem [#allocation4], %s8372_s11 }
 0x4f9   : > { %v10147_v34 = vmov 0.0   ;;  %s4356_s8 = sadd.s32 1, %s10133_s8  }
 0x4fa   : > { %p4353_p1 = scmp.ge.s32.totalorder %s4356_s8, 8  }
 0x4fb   :  { %s10148_s13 = smov (%p4353_p1), [#allocation15]   ;;  %s6703_s17 = sshll.u32 (%p4353_p1), %s11670_s3, 4  ;;  %s6704_s17 = int_to_ptr.hbm [resolvable:$true] %s6703_s17 }
 0x4fc   :  { %s6701_s14 = sshll.u32 (%p4353_p1), %s10148_s13, 4  ;;  %s6702_s14 = int_to_ptr.vmem [resolvable:$true] %s6701_s14 }
 0x4fd   : > { %v4372_v40 = vld [vmem:[%s10305_s10] sm:$0xff]  ;;  %v4373_v41 = vld [vmem:[%s10305_s10 + $0x8] sm:$0xff]  ;;  %v4374_v45 = vld [vmem:[%s10305_s10 + $0x10] sm:$0xff] }
 0x4fe   : > { %v4376_v42 = vadd.f32 %v4372_v40, %v4366_v36  ;;  %v4377_v43 = vadd.f32 %v4373_v41, %v4367_v37  ;;  %v4375_v46 = vld [vmem:[%s10305_s10 + $0x18] sm:$0xff]  ;;  %v8041_v50 = vld [vmem:[%s10305_s10 + $0x20] sm:$0xff]  ;;  %v4378_v55 = vadd.f32 %v4374_v45, %v4368_v47  ;;  %v8042_v58 = vld [vmem:[%s10305_s10 + $0x28] sm:$0xff] }
 0x4ff   : > { %v4379_v53 = vadd.f32 %v4375_v46, %v4369_v44  ;;  %v8043_v2 = vld [vmem:[%s10305_s10 + $0x30] sm:$0xff]  ;;  %v8044_v6 = vld [vmem:[%s10305_s10 + $0x38] sm:$0xff]  ;;  %v8053_v26 = vld [vmem:[%s10305_s10 + $0x40] sm:$0xff] }
 0x500   : > { %v4384_v51 = vadd.f32 %v4380_v38, %v4376_v42  ;;  %v4385_v52 = vadd.f32 %v4381_v39, %v4377_v43  ;;  %v4413_v54 = vmul.f32 0.75, %v4376_v42  ;;  %v4414_v56 = vmul.f32 0.75, %v4377_v43  ;;  %v8054_v31 = vld [vmem:[%s10305_s10 + $0x48] sm:$0xff]  ;;  %v8055_v36 = vld [vmem:[%s10305_s10 + $0x50] sm:$0xff]  ;;  %v8056_v40 = vld [vmem:[%s10305_s10 + $0x58] sm:$0xff] }
 0x501   : > { %v4387_v57 = vadd.f32 %v4383_v49, %v4379_v53  ;;  %v4386_v11 = vadd.f32 %v4382_v48, %v4378_v55  ;;  %v4415_v9 = vmul.f32 0.75, %v4378_v55  ;;  %v4416_v13 = vmul.f32 0.75, %v4379_v53 }
 0x502   : > { %vm4388_vm0 = vcmp.ge.f32.partialorder %v4384_v51, 640.0  ;;  %vm4389_vm1 = vcmp.ge.f32.partialorder %v4385_v52, 640.0  ;;  %v4423_v59 = vadd.f32 %v8041_v50, %v4413_v54  ;;  %v4424_v12 = vadd.f32 %v8042_v58, %v4414_v56  ;;  %v8065_v58 = vld [vmem:[%s10305_s10 + $0x60] sm:$0xff] }
 0x503   : > { %v4392_v60 = vsel %vm4388_vm0, 1.0, %v10147_v34  ;;  %v4393_v61 = vsel %vm4389_vm1, 1.0, %v10147_v34  ;;  %v4408_v62 = vsel %vm4388_vm0, 0.0, %v4384_v51  ;;  %v4409_v63 = vsel %vm4389_vm1, 0.0, %v4385_v52 }
 0x504   : > { %v8404_v0 = vpack.c.bf16 %v4393_v61, %v4392_v60  ;;  %v4427_v1 = vmul.f32 0.96875, %v4408_v62  ;;  %v4428_v10 = vmul.f32 0.96875, %v4409_v63  ;;  %vm4391_vm2 = vcmp.ge.f32.partialorder %v4387_v57, 640.0  ;;  %v8066_v62 = vld [vmem:[%s10305_s10 + $0x68] sm:$0xff] }
 0x505   : > { %vm4390_vm3 = vcmp.ge.f32.partialorder %v4386_v11, 640.0  ;;  %v4395_v3 = vsel %vm4391_vm2, 1.0, %v10147_v34  ;;  %v4411_v4 = vsel %vm4391_vm2, 0.0, %v4387_v57  ;;  %v4425_v18 = vadd.f32 %v8043_v2, %v4415_v9 }
 0x506   : > { %9459 = vst [vmem:[%s10317_s12 + $0x40] sm:$0xff] %v8404_v0   ;;  %v4431_v5 = vadd.f32 %v4427_v1, %v4423_v59  ;;  %v4394_v7 = vsel %vm4390_vm3, 1.0, %v10147_v34  ;;  %v4410_v8 = vsel %vm4390_vm3, 0.0, %v4386_v11  ;;  %v4430_v14 = vmul.f32 0.96875, %v4411_v4 }
 0x507   : > { %v4432_v15 = vadd.f32 %v4428_v10, %v4424_v12  ;;  %v8407_v16 = vpack.c.bf16 %v4395_v3, %v4394_v7  ;;  %v4429_v17 = vmul.f32 0.96875, %v4410_v8  ;;  %v4426_v21 = vadd.f32 %v8044_v6, %v4416_v13  ;;  %v8067_v10 = vld [vmem:[%s10305_s10 + $0x70] sm:$0xff]  ;;  %v8068_v3 = vld [vmem:[%s10305_s10 + $0x78] sm:$0xff] }
 0x508   : > { %vm4435_vm4 = vcmp.ge.f32.partialorder %v4431_v5, 640.0  ;;  %v4460_v30 = vmul.f32 0.75, %v4423_v59  ;;  %v4461_v32 = vmul.f32 0.75, %v4424_v12  ;;  %v4462_v33 = vmul.f32 0.75, %v4425_v18 }
 0x509   : > { %vm4436_vm5 = vcmp.ge.f32.partialorder %v4432_v15, 640.0  ;;  %v4439_v19 = vsel %vm4435_vm4, 1.0, %v10147_v34  ;;  %v4455_v20 = vsel %vm4435_vm4, 0.0, %v4431_v5  ;;  %9460 = vst [vmem:[%s10317_s12 + $0x48] sm:$0xff] %v8407_v16   ;;  %v4433_v25 = vadd.f32 %v4429_v17, %v4425_v18 }
 0x50a   : > { %v4440_v22 = vsel %vm4436_vm5, 1.0, %v10147_v34  ;;  %v4456_v23 = vsel %vm4436_vm5, 0.0, %v4432_v15  ;;  %v4474_v24 = vmul.f32 0.96875, %v4455_v20  ;;  %v4434_v29 = vadd.f32 %v4430_v14, %v4426_v21 }
 0x50b   : > { %v8410_v27 = vpack.c.bf16 %v4440_v22, %v4439_v19  ;;  %v4475_v28 = vmul.f32 0.96875, %v4456_v23  ;;  %vm4437_vm6 = vcmp.ge.f32.partialorder %v4433_v25, 640.0  ;;  %v4463_v35 = vmul.f32 0.75, %v4426_v21 }
 0x50c   : > { %vm4438_vm7 = vcmp.ge.f32.partialorder %v4434_v29, 640.0  ;;  %v4441_v37 = vsel %vm4437_vm6, 1.0, %v10147_v34  ;;  %v4457_v38 = vsel %vm4437_vm6, 0.0, %v4433_v25  ;;  %v4470_v39 = vadd.f32 %v8053_v26, %v4460_v30 }
 0x50d   : > { %9461 = vst [vmem:[%s10317_s12 + $0x50] sm:$0xff] %v8410_v27   ;;  %v4442_v41 = vsel %vm4438_vm7, 1.0, %v10147_v34  ;;  %v4458_v42 = vsel %vm4438_vm7, 0.0, %v4434_v29  ;;  %v4476_v43 = vmul.f32 0.96875, %v4457_v38  ;;  %v4471_v44 = vadd.f32 %v8054_v31, %v4461_v32  ;;  %v10369_v29 = vld [vmem:[#allocation14] ss:$0 sm:$0xff] (%p4353_p1) }
 0x50e   : > { %v8413_v45 = vpack.c.bf16 %v4442_v41, %v4441_v37  ;;  %v4477_v46 = vmul.f32 0.96875, %v4458_v42  ;;  %v4478_v47 = vadd.f32 %v4474_v24, %v4470_v39  ;;  %v4472_v48 = vadd.f32 %v8055_v36, %v4462_v33  ;;  %v10373_v32 = vld [vmem:[#allocation14 + $0x1] ss:$0 sm:$0xff] (%p4353_p1)  ;;  %v10381_v37 = vld [vmem:[#allocation14 + $0x2] ss:$0 sm:$0xff] (%p4353_p1) }
 0x50f   : > { %v4479_v49 = vadd.f32 %v4475_v28, %v4471_v44  ;;  %v4473_v50 = vadd.f32 %v8056_v40, %v4463_v35  ;;  %v4507_v51 = vmul.f32 0.75, %v4470_v39  ;;  %v4508_v53 = vmul.f32 0.75, %v4471_v44  ;;  %v10388_v42 = vld [vmem:[#allocation14 + $0x3] ss:$0 sm:$0xff] (%p4353_p1) }
 0x510   : > { %9462 = vst [vmem:[%s10317_s12 + $0x58] sm:$0xff] %v8413_v45   ;;  %vm4482_vm8 = vcmp.ge.f32.partialorder %v4478_v47, 640.0  ;;  %v4480_v52 = vadd.f32 %v4476_v43, %v4472_v48  ;;  %v4509_v54 = vmul.f32 0.75, %v4472_v48 }
 0x511   : > { %vm4483_vm9 = vcmp.ge.f32.partialorder %v4479_v49, 640.0  ;;  %v4486_v55 = vsel %vm4482_vm8, 1.0, %v10147_v34  ;;  %v4502_v56 = vsel %vm4482_vm8, 0.0, %v4478_v47  ;;  %v4481_v57 = vadd.f32 %v4477_v46, %v4473_v50 }
 0x512   : > { %v4487_v59 = vsel %vm4483_vm9, 1.0, %v10147_v34  ;;  %v4503_v60 = vsel %vm4483_vm9, 0.0, %v4479_v49  ;;  %v4521_v61 = vmul.f32 0.96875, %v4502_v56  ;;  %vm4484_vm10 = vcmp.ge.f32.partialorder %v4480_v52, 640.0 }
 0x513   : > { %v8416_v63 = vpack.c.bf16 %v4487_v59, %v4486_v55  ;;  %v4522_v0 = vmul.f32 0.96875, %v4503_v60  ;;  %vm4485_vm11 = vcmp.ge.f32.partialorder %v4481_v57, 640.0  ;;  %v4488_v1 = vsel %vm4484_vm10, 1.0, %v10147_v34 }
 0x514   : > { %v4489_v11 = vsel %vm4485_vm11, 1.0, %v10147_v34  ;;  %v4504_v12 = vsel %vm4484_vm10, 0.0, %v4480_v52  ;;  %v4505_v9 = vsel %vm4485_vm11, 0.0, %v4481_v57  ;;  %v4517_v5 = vadd.f32 %v8065_v58, %v4507_v51  }
 0x515   : > { %9463 = vst [vmem:[%s10317_s12 + $0x60] sm:$0xff] %v8416_v63   ;;  %v8419_v13 = vpack.c.bf16 %v4489_v11, %v4488_v1  ;;  %v4523_v2 = vmul.f32 0.96875, %v4504_v12  ;;  %v4518_v6 = vadd.f32 %v8066_v62, %v4508_v53   ;;  %v4524_v4 = vmul.f32 0.96875, %v4505_v9 }
 0x516   : > { %v4525_v7 = vadd.f32 %v4521_v61, %v4517_v5  ;;  %v4510_v8 = vmul.f32 0.75, %v4473_v50  ;;  %v4519_v14 = vadd.f32 %v8067_v10, %v4509_v54   ;;  %v11678_v10 = vmov %v4517_v5  ;;  %4553 = vst [vmem:[#allocation7] sm:$0xff] (%p4353_p1), %v4517_v5 }
 0x517   : > { %9464 = vst [vmem:[%s10317_s12 + $0x68] sm:$0xff] %v8419_v13   ;;  %v4526_v15 = vadd.f32 %v4522_v0, %v4518_v6  ;;  %v11677_v11 = vmov %v4518_v6 }
 0x518   : > { %vm4529_vm12 = vcmp.ge.f32.partialorder %v4525_v7, 640.0  ;;  %v4520_v16 = vadd.f32 %v8068_v3, %v4510_v8   ;;  %v4527_v17 = vadd.f32 %v4523_v2, %v4519_v14  ;;  %v11676_v12 = vmov %v4519_v14  ;;  %4554 = vst [vmem:[#allocation7 + $0x8] sm:$0xff] (%p4353_p1), %v4518_v6 }
 0x519   : > { %vm4530_vm13 = vcmp.ge.f32.partialorder %v4526_v15, 640.0  ;;  %v4533_v18 = vsel %vm4529_vm12, 1.0, %v10147_v34  ;;  %v4549_v19 = vsel %vm4529_vm12, 0.0, %v4525_v7   ;;  %4555 = vst [vmem:[#allocation7 + $0x10] sm:$0xff] (%p4353_p1), %v4519_v14 }
 0x51a   : > { %v4534_v20 = vsel %vm4530_vm13, 1.0, %v10147_v34  ;;  %v4550_v21 = vsel %vm4530_vm13, 0.0, %v4526_v15   ;;  %v4528_v22 = vadd.f32 %v4524_v4, %v4520_v16  ;;  %vm4531_vm14 = vcmp.ge.f32.partialorder %v4527_v17, 640.0  ;;  %4556 = vst [vmem:[#allocation7 + $0x18] sm:$0xff] (%p4353_p1), %v4520_v16 }
 0x51b   : > { %v8422_v23 = vpack.c.bf16 %v4534_v20, %v4533_v18  ;;  %v4535_v24 = vsel %vm4531_vm14, 1.0, %v10147_v34  ;;  %v4551_v25 = vsel %vm4531_vm14, 0.0, %v4527_v17   ;;  %v11673_v2 = vmov %v4550_v21  ;;  %4557 = vst [vmem:[#allocation8] sm:$0xff] (%p4353_p1), %v4549_v19 }
 0x51c   : > { %vm4532_vm15 = vcmp.ge.f32.partialorder %v4528_v22, 640.0  ;;  %v11672_v3 = vmov %v4551_v25  ;;  %v11674_v13 = vmov %v4549_v19  ;;  %v11675_v9 = vmov %v4520_v16  ;;  %4355 = sbr.rel (!%p4353_p1) target bundleno = 1271 (0x4f7), region = 103  ;;  %4558 = vst [vmem:[#allocation8 + $0x10] sm:$0xff] (%p4353_p1), %v4550_v21 }
 0x51d   : > { %9465 = vst [vmem:[%s10317_s12 + $0x70] sm:$0xff] %v8422_v23   ;;  %v4536_v26 = vsel %vm4532_vm15, 1.0, %v10147_v34  ;;  %v4552_v27 = vsel %vm4532_vm15, 0.0, %v4528_v22  }
 0x51e   : > { %v8425_v28 = vpack.c.bf16 %v4536_v26, %v4535_v24  ;;  %v11671_v4 = vmov %v4552_v27  ;;  %4559 = vst [vmem:[#allocation8 + $0x18] sm:$0xff] (%p4353_p1), %v4551_v25 }
 0x51f   :  { %4560 = vst [vmem:[#allocation8 + $0x8] sm:$0xff] (%p4353_p1), %v4552_v27 }
 0x520   : > { %9466 = vst [vmem:[%s10317_s12 + $0x78] sm:$0xff] %v8425_v28  }
 0x527   :  { %v8428_v34 = vld [vmem:[#allocation4 + $0x30] sm:$0xff]   ;;  %v8684_v31 = vld [vmem:[#allocation4 + $0x20] sm:$0xff]   ;;  %v9467_v49 = vld [vmem:[#allocation4 + $0x38] sm:$0xff]  }
 0x528   :  { %v10371_v30 = vunpack.c.l.bf16 %v8428_v34  ;;  %v10375_v33 = vunpack.c.h.bf16 %v8428_v34  ;;  %v10377_v35 = vunpack.c.l.bf16 %v8684_v31  ;;  %v10379_v36 = vld [vmem:[#allocation4 + $0x10] sm:$0xff]   ;;  %v10383_v38 = vunpack.c.h.bf16 %v8684_v31  ;;  %v9196_v41 = vld [vmem:[#allocation4] sm:$0xff]   ;;  %v9530_v50 = vld [vmem:[#allocation4 + $0x28] sm:$0xff]  }
 0x529   :  { %v8941_v40 = vunpack.c.l.bf16 %v10379_v36  ;;  %v8942_v44 = vunpack.c.h.bf16 %v10379_v36  ;;  %v9197_v46 = vunpack.c.l.bf16 %v9196_v41  ;;  %v9198_v48 = vunpack.c.h.bf16 %v9196_v41  ;;  %v10397_v51 = vld [vmem:[#allocation4 + $0x18] sm:$0xff]   ;;  %v9656_v56 = vld [vmem:[#allocation4 + $0x8] sm:$0xff]   ;;  %v9468_v9 = vld [vmem:[#allocation4 + $0x40] sm:$0xff]  }
 0x52a   :  { %v4822_v39 = vmul.f32 %v10369_v29, %v10371_v30  ;;  %v4823_v43 = vmul.f32 %v10369_v29, %v10375_v33  ;;  %v5212_v45 = vmul.f32 %v10373_v32, %v10377_v35  ;;  %v5213_v47 = vmul.f32 %v10373_v32, %v10383_v38  ;;  %v9469_v21 = vld [vmem:[#allocation4 + $0x48] sm:$0xff]  }
 0x52b   :  { %v5730_v52 = vmul.f32 %v10381_v37, %v8941_v40  ;;  %v5731_v53 = vmul.f32 %v10381_v37, %v8942_v44  ;;  %v10403_v54 = vunpack.c.l.bf16 %v9467_v49  ;;  %v10405_v55 = vunpack.c.l.bf16 %v9530_v50 }
 0x52c   :  { %v5340_v57 = vadd.f32 %v5212_v45, %v4822_v39  ;;  %v6247_v58 = vmul.f32 %v10388_v42, %v9197_v46  ;;  %v5341_v59 = vadd.f32 %v5213_v47, %v4823_v43  ;;  %v6248_v60 = vmul.f32 %v10388_v42, %v9198_v48  ;;  %v9470_v45 = vld [vmem:[#allocation4 + $0x50] sm:$0xff]  }
 0x52d   :  { %v4824_v61 = vmul.f32 %v10369_v29, %v10403_v54  ;;  %v5214_v62 = vmul.f32 %v10373_v32, %v10405_v55  ;;  %v8945_v63 = vunpack.c.l.bf16 %v10397_v51  ;;  %v9201_v0 = vunpack.c.l.bf16 %v9656_v56 }
 0x52e   :  { %v5858_v1 = vadd.f32 %v5730_v52, %v5340_v57  ;;  %v5859_v10 = vadd.f32 %v5731_v53, %v5341_v59  ;;  %v10414_v11 = vunpack.c.h.bf16 %v9467_v49  ;;  %v10416_v12 = vunpack.c.h.bf16 %v9530_v50 }
 0x52f   :  { %v5342_v5 = vadd.f32 %v5214_v62, %v4824_v61  ;;  %v5732_v13 = vmul.f32 %v10381_v37, %v8945_v63  ;;  %v6249_v2 = vmul.f32 %v10388_v42, %v9201_v0  ;;  %v8946_v6 = vunpack.c.h.bf16 %v10397_v51 }
 0x530   :  { %v6375_v3 = vadd.f32 %v6247_v58, %v5858_v1  ;;  %v6376_v4 = vadd.f32 %v6248_v60, %v5859_v10  ;;  %v4825_v7 = vmul.f32 %v10369_v29, %v10414_v11  ;;  %v5215_v8 = vmul.f32 %v10373_v32, %v10416_v12  ;;  %v9471_v1 = vld [vmem:[#allocation4 + $0x58] sm:$0xff]  }
 0x531   :  { %v5860_v14 = vadd.f32 %v5732_v13, %v5342_v5  ;;  %v5733_v15 = vmul.f32 %v10381_v37, %v8946_v6  ;;  %v9202_v16 = vunpack.c.h.bf16 %v9656_v56  ;;  %v10426_v17 = vunpack.c.l.bf16 %v9468_v9 }
 0x532   :  { %6503 = vst [vmem:[#allocation15] sm:$0xff] %v6375_v3  ;;  %v5343_v18 = vadd.f32 %v5215_v8, %v4825_v7  ;;  %v5216_v19 = vmul.f32 %v10373_v32, %v10371_v30  ;;  %v5734_v20 = vmul.f32 %v10381_v37, %v10377_v35  ;;  %v10435_v25 = vunpack.c.h.bf16 %v9468_v9 }
 0x533   :  { %6504 = vst [vmem:[#allocation15 + $0x8] sm:$0xff] %v6376_v4  ;;  %v6377_v22 = vadd.f32 %v6249_v2, %v5860_v14  ;;  %v6250_v23 = vmul.f32 %v10388_v42, %v9202_v16  ;;  %v4826_v24 = vmul.f32 %v10369_v29, %v10426_v17  ;;  %v6251_v27 = vmul.f32 %v10388_v42, %v8941_v40  ;;  %v9472_v16 = vld [vmem:[#allocation4 + $0x60] sm:$0xff]  }
 0x534   :  { %v5861_v26 = vadd.f32 %v5733_v15, %v5343_v18  ;;  %v5217_v28 = vmul.f32 %v10373_v32, %v10375_v33  ;;  %v5735_v34 = vmul.f32 %v10381_v37, %v10383_v38  ;;  %v4827_v39 = vmul.f32 %v10369_v29, %v10435_v25 }
 0x535   :  { %6505 = vst [vmem:[#allocation15 + $0x10] sm:$0xff] %v6377_v22  ;;  %v5344_v31 = vadd.f32 %v5216_v19, %v4826_v24  ;;  %v10444_v41 = vunpack.c.l.bf16 %v9469_v21  ;;  %v5218_v43 = vmul.f32 %v10373_v32, %v10403_v54  ;;  %v6252_v40 = vmul.f32 %v10388_v42, %v8942_v44 }
 0x536   :  { %v6378_v46 = vadd.f32 %v6250_v23, %v5861_v26  ;;  %v5736_v47 = vmul.f32 %v10381_v37, %v10405_v55  ;;  %v10453_v48 = vunpack.c.h.bf16 %v9469_v21  ;;  %v5345_v50 = vadd.f32 %v5217_v28, %v4827_v39 }
 0x537   :  { %v5862_v49 = vadd.f32 %v5734_v20, %v5344_v31  ;;  %v4828_v51 = vmul.f32 %v10369_v29, %v10444_v41  ;;  %v5219_v52 = vmul.f32 %v10373_v32, %v10414_v11  ;;  %v6253_v53 = vmul.f32 %v10388_v42, %v8945_v63 }
 0x538   :  { %6506 = vst [vmem:[#allocation15 + $0x18] sm:$0xff] %v6378_v46  ;;  %v4829_v36 = vmul.f32 %v10369_v29, %v10453_v48  ;;  %v5737_v44 = vmul.f32 %v10381_v37, %v10416_v12  ;;  %v10464_v56 = vunpack.c.l.bf16 %v9470_v45  ;;  %v5863_v58 = vadd.f32 %v5735_v34, %v5345_v50 }
 0x539   :  { %v6379_v57 = vadd.f32 %v6251_v27, %v5862_v49  ;;  %v5346_v59 = vadd.f32 %v5218_v43, %v4828_v51  ;;  %v5220_v60 = vmul.f32 %v10373_v32, %v10426_v17  ;;  %v6254_v62 = vmul.f32 %v10388_v42, %v8946_v6 }
 0x53a   :  { %v5347_v61 = vadd.f32 %v5219_v52, %v4829_v36  ;;  %v4830_v63 = vmul.f32 %v10369_v29, %v10464_v56  ;;  %v5738_v0 = vmul.f32 %v10381_v37, %v10371_v30  ;;  %v6380_v10 = vadd.f32 %v6252_v40, %v5863_v58 }
 0x53b   :  { %6507 = vst [vmem:[#allocation15 + $0x20] sm:$0xff] %v6379_v57  ;;  %v5864_v9 = vadd.f32 %v5736_v47, %v5346_v59  ;;  %v10473_v5 = vunpack.c.h.bf16 %v9470_v45  ;;  %v5221_v13 = vmul.f32 %v10373_v32, %v10435_v25  ;;  %v6255_v6 = vmul.f32 %v10388_v42, %v10377_v35  ;;  %v9473_v47 = vld [vmem:[#allocation4 + $0x68] sm:$0xff]  }
 0x53c   :  { %v5865_v2 = vadd.f32 %v5737_v44, %v5347_v61  ;;  %v5348_v3 = vadd.f32 %v5220_v60, %v4830_v63  ;;  %v5739_v4 = vmul.f32 %v10381_v37, %v10375_v33  ;;  %6508 = vst [vmem:[#allocation15 + $0x28] sm:$0xff] %v6380_v10  ;;  %v10483_v14 = vunpack.c.l.bf16 %v9471_v1 }
 0x53d   :  { %v6381_v7 = vadd.f32 %v6253_v53, %v5864_v9  ;;  %v4831_v8 = vmul.f32 %v10369_v29, %v10473_v5  ;;  %v5222_v15 = vmul.f32 %v10373_v32, %v10444_v41  ;;  %v6256_v20 = vmul.f32 %v10388_v42, %v10383_v38 }
 0x53e   :  { %v6382_v18 = vadd.f32 %v6254_v62, %v5865_v2  ;;  %v5866_v19 = vadd.f32 %v5738_v0, %v5348_v3  ;;  %v5740_v35 = vmul.f32 %v10381_v37, %v10403_v54  ;;  %v4832_v22 = vmul.f32 %v10369_v29, %v10483_v14  ;;  %v9474_v0 = vld [vmem:[#allocation4 + $0x70] sm:$0xff]  }
 0x53f   :  { %6509 = vst [vmem:[#allocation15 + $0x30] sm:$0xff] %v6381_v7  ;;  %v5349_v21 = vadd.f32 %v5221_v13, %v4831_v8  ;;  %v10493_v23 = vunpack.c.h.bf16 %v9471_v1  ;;  %v5223_v24 = vmul.f32 %v10373_v32, %v10453_v48  ;;  %v6257_v27 = vmul.f32 %v10388_v42, %v10405_v55 }
 0x540   :  { %6510 = vst [vmem:[#allocation15 + $0x38] sm:$0xff] %v6382_v18  ;;  %v6383_v26 = vadd.f32 %v6255_v6, %v5866_v19  ;;  %v5741_v38 = vmul.f32 %v10381_v37, %v10414_v11  ;;  %v10501_v28 = vunpack.c.l.bf16 %v9472_v16  ;;  %v5350_v31 = vadd.f32 %v5222_v15, %v4832_v22 }
 0x541   :  { %v5867_v34 = vadd.f32 %v5739_v4, %v5349_v21  ;;  %v4833_v39 = vmul.f32 %v10369_v29, %v10493_v23  ;;  %v5224_v43 = vmul.f32 %v10373_v32, %v10464_v56  ;;  %v6258_v45 = vmul.f32 %v10388_v42, %v10416_v12 }
 0x542   :  { %6511 = vst [vmem:[#allocation15 + $0x40] sm:$0xff] %v6383_v26  ;;  %v4834_v55 = vmul.f32 %v10369_v29, %v10501_v28  ;;  %v5742_v46 = vmul.f32 %v10381_v37, %v10426_v17  ;;  %v10513_v40 = vunpack.c.h.bf16 %v9472_v16  ;;  %v5868_v50 = vadd.f32 %v5740_v35, %v5350_v31  ;;  %v9475_v16 = vld [vmem:[#allocation4 + $0x78] sm:$0xff]  }
 0x543   :  { %v6384_v49 = vadd.f32 %v6256_v20, %v5867_v34  ;;  %v5351_v51 = vadd.f32 %v5223_v24, %v4833_v39  ;;  %v5225_v52 = vmul.f32 %v10373_v32, %v10473_v5  ;;  %v6259_v36 = vmul.f32 %v10388_v42, %v10371_v30 }
 0x544   :  { %v5352_v53 = vadd.f32 %v5224_v43, %v4834_v55  ;;  %v4835_v12 = vmul.f32 %v10369_v29, %v10513_v40  ;;  %v5743_v44 = vmul.f32 %v10381_v37, %v10435_v25  ;;  %v6385_v57 = vadd.f32 %v6257_v27, %v5868_v50 }
 0x545   :  { %6512 = vst [vmem:[#allocation15 + $0x48] sm:$0xff] %v6384_v49  ;;  %v5869_v58 = vadd.f32 %v5741_v38, %v5351_v51  ;;  %v10523_v59 = vunpack.c.l.bf16 %v9473_v47  ;;  %v5226_v60 = vmul.f32 %v10373_v32, %v10483_v14  ;;  %v6260_v63 = vmul.f32 %v10388_v42, %v10375_v33 }
 0x546   :  { %v5870_v61 = vadd.f32 %v5742_v46, %v5352_v53  ;;  %v5353_v62 = vadd.f32 %v5225_v52, %v4835_v12  ;;  %v5744_v30 = vmul.f32 %v10381_v37, %v10444_v41  ;;  %6513 = vst [vmem:[#allocation15 + $0x50] sm:$0xff] %v6385_v57  ;;  %v10533_v9 = vunpack.c.h.bf16 %v9473_v47  ;;  %v9476_v47 = vld [vmem:[#allocation4 + $0x80] sm:$0xff]  }
 0x547   :  { %v6386_v1 = vadd.f32 %v6258_v45, %v5869_v58  ;;  %v4836_v10 = vmul.f32 %v10369_v29, %v10523_v59  ;;  %v5227_v13 = vmul.f32 %v10373_v32, %v10493_v23  ;;  %v6261_v6 = vmul.f32 %v10388_v42, %v10403_v54 }
 0x548   :  { %v6387_v2 = vadd.f32 %v6259_v36, %v5870_v61  ;;  %v5871_v3 = vadd.f32 %v5743_v44, %v5353_v62  ;;  %v5745_v33 = vmul.f32 %v10381_v37, %v10453_v48  ;;  %v4837_v7 = vmul.f32 %v10369_v29, %v10533_v9  ;;  %v9477_v61 = vld [vmem:[#allocation4 + $0x88] sm:$0xff]  }
 0x549   :  { %6514 = vst [vmem:[#allocation15 + $0x58] sm:$0xff] %v6386_v1  ;;  %v5354_v4 = vadd.f32 %v5226_v60, %v4836_v10  ;;  %v10543_v8 = vunpack.c.l.bf16 %v9474_v0  ;;  %v5228_v15 = vmul.f32 %v10373_v32, %v10501_v28  ;;  %v6262_v19 = vmul.f32 %v10388_v42, %v10414_v11 }
 0x54a   :  { %6515 = vst [vmem:[#allocation15 + $0x60] sm:$0xff] %v6387_v2  ;;  %v6388_v18 = vadd.f32 %v6260_v63, %v5871_v3  ;;  %v5746_v54 = vmul.f32 %v10381_v37, %v10464_v56  ;;  %v10551_v20 = vunpack.c.h.bf16 %v9474_v0  ;;  %v5355_v21 = vadd.f32 %v5227_v13, %v4837_v7 }
 0x54b   :  { %v5872_v35 = vadd.f32 %v5744_v30, %v5354_v4  ;;  %v4838_v22 = vmul.f32 %v10369_v29, %v10543_v8  ;;  %v5229_v24 = vmul.f32 %v10373_v32, %v10513_v40  ;;  %v6263_v26 = vmul.f32 %v10388_v42, %v10426_v17 }
 0x54c   :  { %6516 = vst [vmem:[#allocation15 + $0x68] sm:$0xff] %v6388_v18  ;;  %v4839_v11 = vmul.f32 %v10369_v29, %v10551_v20  ;;  %v5747_v27 = vmul.f32 %v10381_v37, %v10473_v5  ;;  %v10563_v38 = vunpack.c.l.bf16 %v9475_v16  ;;  %v5873_v31 = vadd.f32 %v5745_v33, %v5355_v21 }
 0x54d   :  { %v6389_v34 = vadd.f32 %v6261_v6, %v5872_v35  ;;  %v5356_v39 = vadd.f32 %v5228_v15, %v4838_v22  ;;  %v5230_v43 = vmul.f32 %v10373_v32, %v10523_v59  ;;  %v6264_v55 = vmul.f32 %v10388_v42, %v10435_v25 }
 0x54e   :  { %v5357_v45 = vadd.f32 %v5229_v24, %v4839_v11  ;;  %v4840_v17 = vmul.f32 %v10369_v29, %v10563_v38  ;;  %v5748_v46 = vmul.f32 %v10381_v37, %v10483_v14  ;;  %v6390_v49 = vadd.f32 %v6262_v19, %v5873_v31 }
 0x54f   :  { %6517 = vst [vmem:[#allocation15 + $0x70] sm:$0xff] %v6389_v34  ;;  %v5874_v50 = vadd.f32 %v5746_v54, %v5356_v39  ;;  %v10573_v51 = vunpack.c.h.bf16 %v9475_v16  ;;  %v5231_v52 = vmul.f32 %v10373_v32, %v10533_v9  ;;  %v6265_v25 = vmul.f32 %v10388_v42, %v10444_v41  ;;  %v9478_v54 = vld [vmem:[#allocation4 + $0x90] sm:$0xff]  }
 0x550   :  { %v5875_v53 = vadd.f32 %v5747_v27, %v5357_v45  ;;  %v5358_v36 = vadd.f32 %v5230_v43, %v4840_v17  ;;  %v5749_v12 = vmul.f32 %v10381_v37, %v10493_v23  ;;  %6518 = vst [vmem:[#allocation15 + $0x78] sm:$0xff] %v6390_v49  ;;  %v10583_v58 = vunpack.c.l.bf16 %v9476_v47 }
 0x551   :  { %v6391_v44 = vadd.f32 %v6263_v26, %v5874_v50  ;;  %v4841_v57 = vmul.f32 %v10369_v29, %v10573_v51  ;;  %v5232_v60 = vmul.f32 %v10373_v32, %v10543_v8  ;;  %v6266_v30 = vmul.f32 %v10388_v42, %v10453_v48 }
 0x552   :  { %v6392_v62 = vadd.f32 %v6264_v55, %v5875_v53  ;;  %v5876_v63 = vadd.f32 %v5748_v46, %v5358_v36  ;;  %v5750_v41 = vmul.f32 %v10381_v37, %v10501_v28  ;;  %v4842_v1 = vmul.f32 %v10369_v29, %v10583_v58  ;;  %v9479_v46 = vld [vmem:[#allocation4 + $0x98] sm:$0xff]  }
 0x553   :  { %6519 = vst [vmem:[#allocation15 + $0x80] sm:$0xff] %v6391_v44  ;;  %v5359_v0 = vadd.f32 %v5231_v52, %v4841_v57  ;;  %v10593_v10 = vunpack.c.h.bf16 %v9476_v47  ;;  %v5233_v13 = vmul.f32 %v10373_v32, %v10551_v20  ;;  %v6267_v3 = vmul.f32 %v10388_v42, %v10464_v56 }
 0x554   :  { %6520 = vst [vmem:[#allocation15 + $0x88] sm:$0xff] %v6392_v62  ;;  %v6393_v2 = vadd.f32 %v6265_v25, %v5876_v63  ;;  %v5751_v48 = vmul.f32 %v10381_v37, %v10513_v40  ;;  %v10601_v6 = vunpack.c.l.bf16 %v9477_v61  ;;  %v5360_v4 = vadd.f32 %v5232_v60, %v4842_v1 }
 0x555   :  { %v5877_v33 = vadd.f32 %v5749_v12, %v5359_v0  ;;  %v4843_v7 = vmul.f32 %v10369_v29, %v10593_v10  ;;  %v5234_v15 = vmul.f32 %v10373_v32, %v10563_v38  ;;  %v6268_v16 = vmul.f32 %v10388_v42, %v10473_v5 }
 0x556   :  { %6521 = vst [vmem:[#allocation15 + $0x90] sm:$0xff] %v6393_v2  ;;  %v4844_v56 = vmul.f32 %v10369_v29, %v10601_v6  ;;  %v5752_v18 = vmul.f32 %v10381_v37, %v10523_v59  ;;  %v10613_v19 = vunpack.c.h.bf16 %v9477_v61  ;;  %v5878_v21 = vadd.f32 %v5750_v41, %v5360_v4  ;;  %v9480_v61 = vld [vmem:[#allocation4 + $0xa0] sm:$0xff]  }
 0x557   :  { %v6394_v35 = vadd.f32 %v6266_v30, %v5877_v33  ;;  %v5361_v22 = vadd.f32 %v5233_v13, %v4843_v7  ;;  %v5235_v24 = vmul.f32 %v10373_v32, %v10573_v51  ;;  %v6269_v11 = vmul.f32 %v10388_v42, %v10483_v14 }
 0x558   :  { %v5362_v26 = vadd.f32 %v5234_v15, %v4844_v56  ;;  %v4845_v5 = vmul.f32 %v10369_v29, %v10613_v19  ;;  %v5753_v27 = vmul.f32 %v10381_v37, %v10533_v9  ;;  %v6395_v34 = vadd.f32 %v6267_v3, %v5878_v21 }
 0x559   :  { %6522 = vst [vmem:[#allocation15 + $0x98] sm:$0xff] %v6394_v35  ;;  %v5879_v31 = vadd.f32 %v5751_v48, %v5361_v22  ;;  %v10623_v39 = vunpack.c.l.bf16 %v9478_v54  ;;  %v5236_v43 = vmul.f32 %v10373_v32, %v10583_v58  ;;  %v6270_v17 = vmul.f32 %v10388_v42, %v10493_v23 }
 0x55a   :  { %v5880_v45 = vadd.f32 %v5752_v18, %v5362_v26  ;;  %v5363_v55 = vadd.f32 %v5235_v24, %v4845_v5  ;;  %v5754_v14 = vmul.f32 %v10381_v37, %v10543_v8  ;;  %6523 = vst [vmem:[#allocation15 + $0xa0] sm:$0xff] %v6395_v34  ;;  %v10633_v50 = vunpack.c.h.bf16 %v9478_v54  ;;  %v9481_v54 = vld [vmem:[#allocation4 + $0xa8] sm:$0xff]  }
 0x55b   :  { %v6396_v47 = vadd.f32 %v6268_v16, %v5879_v31  ;;  %v4846_v49 = vmul.f32 %v10369_v29, %v10623_v39  ;;  %v5237_v52 = vmul.f32 %v10373_v32, %v10593_v10  ;;  %v6271_v25 = vmul.f32 %v10388_v42, %v10501_v28 }
 0x55c   :  { %v6397_v53 = vadd.f32 %v6269_v11, %v5880_v45  ;;  %v5881_v36 = vadd.f32 %v5753_v27, %v5363_v55  ;;  %v5755_v23 = vmul.f32 %v10381_v37, %v10551_v20  ;;  %v4847_v44 = vmul.f32 %v10369_v29, %v10633_v50  ;;  %v9482_v45 = vld [vmem:[#allocation4 + $0xb0] sm:$0xff]  }
 0x55d   :  { %6524 = vst [vmem:[#allocation15 + $0xa8] sm:$0xff] %v6396_v47  ;;  %v5364_v12 = vadd.f32 %v5236_v43, %v4846_v49  ;;  %v10643_v57 = vunpack.c.l.bf16 %v9479_v46  ;;  %v5238_v60 = vmul.f32 %v10373_v32, %v10601_v6  ;;  %v6272_v63 = vmul.f32 %v10388_v42, %v10513_v40 }
 0x55e   :  { %6525 = vst [vmem:[#allocation15 + $0xb0] sm:$0xff] %v6397_v53  ;;  %v6398_v62 = vadd.f32 %v6270_v17, %v5881_v36  ;;  %v5756_v28 = vmul.f32 %v10381_v37, %v10563_v38  ;;  %v10651_v30 = vunpack.c.h.bf16 %v9479_v46  ;;  %v5365_v0 = vadd.f32 %v5237_v52, %v4847_v44 }
 0x55f   :  { %v5882_v41 = vadd.f32 %v5754_v14, %v5364_v12  ;;  %v4848_v1 = vmul.f32 %v10369_v29, %v10643_v57  ;;  %v5239_v13 = vmul.f32 %v10373_v32, %v10613_v19  ;;  %v6273_v2 = vmul.f32 %v10388_v42, %v10523_v59 }
 0x560   :  { %6526 = vst [vmem:[#allocation15 + $0xb8] sm:$0xff] %v6398_v62  ;;  %v4849_v40 = vmul.f32 %v10369_v29, %v10651_v30  ;;  %v5757_v3 = vmul.f32 %v10381_v37, %v10573_v51  ;;  %v10663_v48 = vunpack.c.l.bf16 %v9480_v61  ;;  %v5883_v4 = vadd.f32 %v5755_v23, %v5365_v0 }
 0x561   :  { %v6399_v33 = vadd.f32 %v6271_v25, %v5882_v41  ;;  %v5366_v7 = vadd.f32 %v5238_v60, %v4848_v1  ;;  %v5240_v15 = vmul.f32 %v10373_v32, %v10623_v39  ;;  %v6274_v56 = vmul.f32 %v10388_v42, %v10533_v9 }
 0x562   :  { %v5367_v16 = vadd.f32 %v5239_v13, %v4849_v40  ;;  %v4850_v59 = vmul.f32 %v10369_v29, %v10663_v48  ;;  %v5758_v18 = vmul.f32 %v10381_v37, %v10583_v58  ;;  %v6400_v35 = vadd.f32 %v6272_v63, %v5883_v4 }
 0x563   :  { %6527 = vst [vmem:[#allocation15 + $0xc0] sm:$0xff] %v6399_v33  ;;  %v5884_v21 = vadd.f32 %v5756_v28, %v5366_v7  ;;  %v10673_v22 = vunpack.c.h.bf16 %v9480_v61  ;;  %v5241_v24 = vmul.f32 %v10373_v32, %v10633_v50  ;;  %v6275_v9 = vmul.f32 %v10388_v42, %v10543_v8  ;;  %v9483_v28 = vld [vmem:[#allocation4 + $0xb8] sm:$0xff]  }
 0x564   :  { %v5885_v26 = vadd.f32 %v5757_v3, %v5367_v16  ;;  %v5368_v11 = vadd.f32 %v5240_v15, %v4850_v59  ;;  %v5759_v5 = vmul.f32 %v10381_v37, %v10593_v10  ;;  %6528 = vst [vmem:[#allocation15 + $0xc8] sm:$0xff] %v6400_v35  ;;  %v10683_v31 = vunpack.c.l.bf16 %v9481_v54 }
 0x565   :  { %v6401_v27 = vadd.f32 %v6273_v2, %v5884_v21  ;;  %v4851_v34 = vmul.f32 %v10369_v29, %v10673_v22  ;;  %v5242_v43 = vmul.f32 %v10373_v32, %v10643_v57  ;;  %v6276_v14 = vmul.f32 %v10388_v42, %v10551_v20 }
 0x566   :  { %v6402_v55 = vadd.f32 %v6274_v56, %v5885_v26  ;;  %v5886_v17 = vadd.f32 %v5758_v18, %v5368_v11  ;;  %v5760_v8 = vmul.f32 %v10381_v37, %v10601_v6  ;;  %v4852_v47 = vmul.f32 %v10369_v29, %v10683_v31  ;;  %v9484_v18 = vld [vmem:[#allocation4 + $0xc0] sm:$0xff]  }
 0x567   :  { %6529 = vst [vmem:[#allocation15 + $0xd0] sm:$0xff] %v6401_v27  ;;  %v5369_v46 = vadd.f32 %v5241_v24, %v4851_v34  ;;  %v10693_v49 = vunpack.c.h.bf16 %v9481_v54  ;;  %v5243_v52 = vmul.f32 %v10373_v32, %v10651_v30  ;;  %v6277_v36 = vmul.f32 %v10388_v42, %v10563_v38 }
 0x568   :  { %6530 = vst [vmem:[#allocation15 + $0xd8] sm:$0xff] %v6402_v55  ;;  %v6403_v53 = vadd.f32 %v6275_v9, %v5886_v17  ;;  %v5761_v20 = vmul.f32 %v10381_v37, %v10613_v19  ;;  %v10701_v25 = vunpack.c.l.bf16 %v9482_v45  ;;  %v5370_v12 = vadd.f32 %v5242_v43, %v4852_v47 }
 0x569   :  { %v5887_v23 = vadd.f32 %v5759_v5, %v5369_v46  ;;  %v4853_v44 = vmul.f32 %v10369_v29, %v10693_v49  ;;  %v5244_v60 = vmul.f32 %v10373_v32, %v10663_v48  ;;  %v6278_v61 = vmul.f32 %v10388_v42, %v10573_v51 }
 0x56a   :  { %6531 = vst [vmem:[#allocation15 + $0xe0] sm:$0xff] %v6403_v53  ;;  %v4854_v38 = vmul.f32 %v10369_v29, %v10701_v25  ;;  %v5762_v62 = vmul.f32 %v10381_v37, %v10623_v39  ;;  %v10713_v63 = vunpack.c.h.bf16 %v9482_v45  ;;  %v5888_v0 = vadd.f32 %v5760_v8, %v5370_v12  ;;  %v9485_v45 = vld [vmem:[#allocation4 + $0xc8] sm:$0xff]  }
 0x56b   :  { %v6404_v41 = vadd.f32 %v6276_v14, %v5887_v23  ;;  %v5371_v1 = vadd.f32 %v5243_v52, %v4853_v44  ;;  %v5245_v13 = vmul.f32 %v10373_v32, %v10673_v22  ;;  %v6279_v40 = vmul.f32 %v10388_v42, %v10583_v58 }
 0x56c   :  { %v5372_v2 = vadd.f32 %v5244_v60, %v4854_v38  ;;  %v4855_v51 = vmul.f32 %v10369_v29, %v10713_v63  ;;  %v5763_v3 = vmul.f32 %v10381_v37, %v10633_v50  ;;  %v6405_v33 = vadd.f32 %v6277_v36, %v5888_v0 }
 0x56d   :  { %6532 = vst [vmem:[#allocation15 + $0xe8] sm:$0xff] %v6404_v41  ;;  %v5889_v4 = vadd.f32 %v5761_v20, %v5371_v1  ;;  %v10723_v7 = vunpack.c.l.bf16 %v9483_v28  ;;  %v5246_v15 = vmul.f32 %v10373_v32, %v10683_v31  ;;  %v6280_v59 = vmul.f32 %v10388_v42, %v10593_v10 }
 0x56e   :  { %v5890_v16 = vadd.f32 %v5762_v62, %v5372_v2  ;;  %v5373_v56 = vadd.f32 %v5245_v13, %v4855_v51  ;;  %v5764_v58 = vmul.f32 %v10381_v37, %v10643_v57  ;;  %6533 = vst [vmem:[#allocation15 + $0xf0] sm:$0xff] %v6405_v33  ;;  %v10733_v21 = vunpack.c.h.bf16 %v9483_v28  ;;  %v9486_v28 = vld [vmem:[#allocation4 + $0xd0] sm:$0xff]  }
 0x56f   :  { %v6406_v54 = vadd.f32 %v6278_v61, %v5889_v4  ;;  %v4856_v35 = vmul.f32 %v10369_v29, %v10723_v7  ;;  %v5247_v24 = vmul.f32 %v10373_v32, %v10693_v49  ;;  %v6281_v9 = vmul.f32 %v10388_v42, %v10601_v6 }
 0x570   :  { %v6407_v26 = vadd.f32 %v6279_v40, %v5890_v16  ;;  %v5891_v11 = vadd.f32 %v5763_v3, %v5373_v56  ;;  %v5765_v10 = vmul.f32 %v10381_v37, %v10651_v30  ;;  %v4857_v27 = vmul.f32 %v10369_v29, %v10733_v21  ;;  %v9487_v16 = vld [vmem:[#allocation4 + $0xd8] sm:$0xff]  }
 0x571   :  { %6534 = vst [vmem:[#allocation15 + $0xf8] sm:$0xff] %v6406_v54  ;;  %v5374_v5 = vadd.f32 %v5246_v15, %v4856_v35  ;;  %v10743_v34 = vunpack.c.l.bf16 %v9484_v18  ;;  %v5248_v43 = vmul.f32 %v10373_v32, %v10701_v25  ;;  %v6282_v17 = vmul.f32 %v10388_v42, %v10613_v19 }
 0x572   :  { %6535 = vst [vmem:[#allocation15 + $0x100] sm:$0xff] %v6407_v26  ;;  %v6408_v55 = vadd.f32 %v6280_v59, %v5891_v11  ;;  %v5766_v6 = vmul.f32 %v10381_v37, %v10663_v48  ;;  %v10751_v14 = vunpack.c.h.bf16 %v9484_v18  ;;  %v5375_v46 = vadd.f32 %v5247_v24, %v4857_v27 }
 0x573   :  { %v5892_v8 = vadd.f32 %v5764_v58, %v5374_v5  ;;  %v4858_v47 = vmul.f32 %v10369_v29, %v10743_v34  ;;  %v5249_v52 = vmul.f32 %v10373_v32, %v10713_v63  ;;  %v6283_v53 = vmul.f32 %v10388_v42, %v10623_v39 }
 0x574   :  { %6536 = vst [vmem:[#allocation15 + $0x108] sm:$0xff] %v6408_v55  ;;  %v4859_v19 = vmul.f32 %v10369_v29, %v10751_v14  ;;  %v5767_v36 = vmul.f32 %v10381_v37, %v10673_v22  ;;  %v10763_v20 = vunpack.c.l.bf16 %v9485_v45  ;;  %v5893_v12 = vadd.f32 %v5765_v10, %v5375_v46 }
 0x575   :  { %v6409_v23 = vadd.f32 %v6281_v9, %v5892_v8  ;;  %v5376_v44 = vadd.f32 %v5248_v43, %v4858_v47  ;;  %v5250_v60 = vmul.f32 %v10373_v32, %v10723_v7  ;;  %v6284_v38 = vmul.f32 %v10388_v42, %v10633_v50 }
 0x576   :  { %v5377_v61 = vadd.f32 %v5249_v52, %v4859_v19  ;;  %v4860_v39 = vmul.f32 %v10369_v29, %v10763_v20  ;;  %v5768_v62 = vmul.f32 %v10381_v37, %v10683_v31  ;;  %v6410_v41 = vadd.f32 %v6282_v17, %v5893_v12 }
 0x577   :  { %6537 = vst [vmem:[#allocation15 + $0x110] sm:$0xff] %v6409_v23  ;;  %v5894_v0 = vadd.f32 %v5766_v6, %v5376_v44  ;;  %v10773_v1 = vunpack.c.h.bf16 %v9485_v45  ;;  %v5251_v13 = vmul.f32 %v10373_v32, %v10733_v21  ;;  %v6285_v50 = vmul.f32 %v10388_v42, %v10643_v57  ;;  %v9488_v6 = vld [vmem:[#allocation4 + $0xe0] sm:$0xff]  }
 0x578   :  { %v5895_v2 = vadd.f32 %v5767_v36, %v5377_v61  ;;  %v5378_v40 = vadd.f32 %v5250_v60, %v4860_v39  ;;  %v5769_v51 = vmul.f32 %v10381_v37, %v10693_v49  ;;  %6538 = vst [vmem:[#allocation15 + $0x118] sm:$0xff] %v6410_v41  ;;  %v10783_v4 = vunpack.c.l.bf16 %v9486_v28 }
 0x579   :  { %v6411_v3 = vadd.f32 %v6283_v53, %v5894_v0  ;;  %v4861_v33 = vmul.f32 %v10369_v29, %v10773_v1  ;;  %v5252_v15 = vmul.f32 %v10373_v32, %v10743_v34  ;;  %v6286_v58 = vmul.f32 %v10388_v42, %v10651_v30 }
 0x57a   :  { %v6412_v56 = vadd.f32 %v6284_v38, %v5895_v2  ;;  %v5896_v59 = vadd.f32 %v5768_v62, %v5378_v40  ;;  %v5770_v57 = vmul.f32 %v10381_v37, %v10701_v25  ;;  %v4862_v54 = vmul.f32 %v10369_v29, %v10783_v4  ;;  %v9489_v62 = vld [vmem:[#allocation4 + $0xe8] sm:$0xff]  }
 0x57b   :  { %6539 = vst [vmem:[#allocation15 + $0x120] sm:$0xff] %v6411_v3  ;;  %v5379_v18 = vadd.f32 %v5251_v13, %v4861_v33  ;;  %v10793_v35 = vunpack.c.h.bf16 %v9486_v28  ;;  %v5253_v24 = vmul.f32 %v10373_v32, %v10751_v14  ;;  %v6287_v11 = vmul.f32 %v10388_v42, %v10663_v48 }
 0x57c   :  { %6540 = vst [vmem:[#allocation15 + $0x128] sm:$0xff] %v6412_v56  ;;  %v6413_v26 = vadd.f32 %v6285_v50, %v5896_v59  ;;  %v5771_v30 = vmul.f32 %v10381_v37, %v10713_v63  ;;  %v10801_v9 = vunpack.c.l.bf16 %v9487_v16  ;;  %v5380_v5 = vadd.f32 %v5252_v15, %v4862_v54 }
 0x57d   :  { %v5897_v10 = vadd.f32 %v5769_v51, %v5379_v18  ;;  %v4863_v27 = vmul.f32 %v10369_v29, %v10793_v35  ;;  %v5254_v43 = vmul.f32 %v10373_v32, %v10763_v20  ;;  %v6288_v45 = vmul.f32 %v10388_v42, %v10673_v22 }
 0x57e   :  { %6541 = vst [vmem:[#allocation15 + $0x130] sm:$0xff] %v6413_v26  ;;  %v4864_v48 = vmul.f32 %v10369_v29, %v10801_v9  ;;  %v5772_v55 = vmul.f32 %v10381_v37, %v10723_v7  ;;  %v10813_v17 = vunpack.c.h.bf16 %v9487_v16  ;;  %v5898_v46 = vadd.f32 %v5770_v57, %v5380_v5  ;;  %v9490_v16 = vld [vmem:[#allocation4 + $0xf0] sm:$0xff]  }
 0x57f   :  { %v6414_v8 = vadd.f32 %v6286_v58, %v5897_v10  ;;  %v5381_v47 = vadd.f32 %v5253_v24, %v4863_v27  ;;  %v5255_v52 = vmul.f32 %v10373_v32, %v10773_v1  ;;  %v6289_v19 = vmul.f32 %v10388_v42, %v10683_v31 }
 0x580   :  { %v5382_v53 = vadd.f32 %v5254_v43, %v4864_v48  ;;  %v4865_v22 = vmul.f32 %v10369_v29, %v10813_v17  ;;  %v5773_v36 = vmul.f32 %v10381_v37, %v10733_v21  ;;  %v6415_v23 = vadd.f32 %v6287_v11, %v5898_v46 }
 0x581   :  { %6542 = vst [vmem:[#allocation15 + $0x138] sm:$0xff] %v6414_v8  ;;  %v5899_v12 = vadd.f32 %v5771_v30, %v5381_v47  ;;  %v10823_v44 = vunpack.c.l.bf16 %v9488_v6  ;;  %v5256_v60 = vmul.f32 %v10373_v32, %v10783_v4  ;;  %v6290_v39 = vmul.f32 %v10388_v42, %v10693_v49 }
 0x582   :  { %v5900_v61 = vadd.f32 %v5772_v55, %v5382_v53  ;;  %v5383_v38 = vadd.f32 %v5255_v52, %v4865_v22  ;;  %v5774_v31 = vmul.f32 %v10381_v37, %v10743_v34  ;;  %6543 = vst [vmem:[#allocation15 + $0x140] sm:$0xff] %v6415_v23  ;;  %v10833_v0 = vunpack.c.h.bf16 %v9488_v6  ;;  %v9491_v6 = vld [vmem:[#allocation4 + $0xf8] sm:$0xff]  }
 0x583   :  { %v6416_v28 = vadd.f32 %v6288_v45, %v5899_v12  ;;  %v4866_v41 = vmul.f32 %v10369_v29, %v10823_v44  ;;  %v5257_v13 = vmul.f32 %v10373_v32, %v10793_v35  ;;  %v6291_v50 = vmul.f32 %v10388_v42, %v10701_v25 }
 0x584   :  { %v6417_v2 = vadd.f32 %v6289_v19, %v5900_v61  ;;  %v5901_v40 = vadd.f32 %v5773_v36, %v5383_v38  ;;  %v5775_v49 = vmul.f32 %v10381_v37, %v10751_v14  ;;  %v4867_v3 = vmul.f32 %v10369_v29, %v10833_v0  ;;  %v9492_v61 = vld [vmem:[#allocation4 + $0x100] sm:$0xff]  }
 0x585   :  { %6544 = vst [vmem:[#allocation15 + $0x148] sm:$0xff] %v6416_v28  ;;  %v5384_v51 = vadd.f32 %v5256_v60, %v4866_v41  ;;  %v10843_v33 = vunpack.c.l.bf16 %v9489_v62  ;;  %v5258_v15 = vmul.f32 %v10373_v32, %v10801_v9  ;;  %v6292_v59 = vmul.f32 %v10388_v42, %v10713_v63 }
 0x586   :  { %6545 = vst [vmem:[#allocation15 + $0x150] sm:$0xff] %v6417_v2  ;;  %v6418_v56 = vadd.f32 %v6290_v39, %v5901_v40  ;;  %v5776_v25 = vmul.f32 %v10381_v37, %v10763_v20  ;;  %v10851_v58 = vunpack.c.h.bf16 %v9489_v62  ;;  %v5385_v18 = vadd.f32 %v5257_v13, %v4867_v3  ;;  %v10903_v3 = vld [vmem:[#allocation14] ss:$0 sm:$0xff] }
 0x587   :  { %v5902_v57 = vadd.f32 %v5774_v31, %v5384_v51  ;;  %v4868_v54 = vmul.f32 %v10369_v29, %v10843_v33  ;;  %v5259_v24 = vmul.f32 %v10373_v32, %v10813_v17  ;;  %v6293_v26 = vmul.f32 %v10388_v42, %v10723_v7 }
 0x588   :  { %6546 = vst [vmem:[#allocation15 + $0x158] sm:$0xff] %v6418_v56  ;;  %v4869_v63 = vmul.f32 %v10369_v29, %v10851_v58  ;;  %v5777_v11 = vmul.f32 %v10381_v37, %v10773_v1  ;;  %v10863_v30 = vunpack.c.l.bf16 %v9490_v16  ;;  %v5903_v5 = vadd.f32 %v5775_v49, %v5385_v18 }
 0x589   :  { %v6419_v10 = vadd.f32 %v6291_v50, %v5902_v57  ;;  %v5386_v27 = vadd.f32 %v5258_v15, %v4868_v54  ;;  %v5260_v43 = vmul.f32 %v10373_v32, %v10823_v44  ;;  %v6294_v48 = vmul.f32 %v10388_v42, %v10733_v21  ;;  %v10907_v15 = vld [vmem:[#allocation14 + $0x1] ss:$0 sm:$0xff] }
 0x58a   :  { %v5387_v45 = vadd.f32 %v5259_v24, %v4869_v63  ;;  %v4870_v7 = vmul.f32 %v10369_v29, %v10863_v30  ;;  %v5778_v55 = vmul.f32 %v10381_v37, %v10783_v4  ;;  %v6420_v8 = vadd.f32 %v6292_v59, %v5903_v5 }
 0x58b   :  { %6547 = vst [vmem:[#allocation15 + $0x160] sm:$0xff] %v6419_v10  ;;  %v5904_v46 = vadd.f32 %v5776_v25, %v5386_v27  ;;  %v10873_v47 = vunpack.c.h.bf16 %v9490_v16  ;;  %v5261_v52 = vmul.f32 %v10373_v32, %v10833_v0  ;;  %v6295_v21 = vmul.f32 %v10388_v42, %v10743_v34  ;;  %v9493_v25 = vld [vmem:[#allocation4 + $0x108] sm:$0xff]  }
 0x58c   :  { %v5905_v53 = vadd.f32 %v5777_v11, %v5387_v45  ;;  %v5388_v19 = vadd.f32 %v5260_v43, %v4870_v7  ;;  %v5779_v22 = vmul.f32 %v10381_v37, %v10793_v35  ;;  %6548 = vst [vmem:[#allocation15 + $0x168] sm:$0xff] %v6420_v8  ;;  %v10883_v12 = vunpack.c.l.bf16 %v9491_v6  ;;  %v10925_v11 = vld [vmem:[#allocation14 + $0x2] ss:$0 sm:$0xff]  ;;  %v10933_v7 = vld [vmem:[#allocation14 + $0x3] ss:$0 sm:$0xff] }
 0x58d   :  { %v6421_v36 = vadd.f32 %v6293_v26, %v5904_v46  ;;  %v4871_v23 = vmul.f32 %v10369_v29, %v10873_v47  ;;  %v5262_v60 = vmul.f32 %v10373_v32, %v10843_v33  ;;  %v6296_v31 = vmul.f32 %v10388_v42, %v10751_v14 }
 0x58e   :  { %v6422_v38 = vadd.f32 %v6294_v48, %v5905_v53  ;;  %v5906_v39 = vadd.f32 %v5778_v55, %v5388_v19  ;;  %v5780_v34 = vmul.f32 %v10381_v37, %v10801_v9  ;;  %v4872_v28 = vmul.f32 %v10369_v29, %v10883_v12  ;;  %v9494_v55 = vld [vmem:[#allocation4 + $0x110] sm:$0xff]  }
 0x58f   :  { %6549 = vst [vmem:[#allocation15 + $0x170] sm:$0xff] %v6421_v36  ;;  %v5389_v62 = vadd.f32 %v5261_v52, %v4871_v23  ;;  %v10893_v41 = vunpack.c.h.bf16 %v9491_v6  ;;  %v5263_v13 = vmul.f32 %v10373_v32, %v10851_v58  ;;  %v6297_v40 = vmul.f32 %v10388_v42, %v10763_v20 }
 0x590   :  { %6550 = vst [vmem:[#allocation15 + $0x178] sm:$0xff] %v6422_v38  ;;  %v6423_v2 = vadd.f32 %v6295_v21, %v5906_v39  ;;  %v5781_v14 = vmul.f32 %v10381_v37, %v10813_v17  ;;  %v10901_v50 = vunpack.c.l.bf16 %v9492_v61  ;;  %v5390_v51 = vadd.f32 %v5262_v60, %v4872_v28 }
 0x591   :  { %v5907_v49 = vadd.f32 %v5779_v22, %v5389_v62  ;;  %v4873_v29 = vmul.f32 %v10903_v3, %v10893_v41  ;;  %v5264_v32 = vmul.f32 %v10907_v15, %v10863_v30  ;;  %v6298_v20 = vmul.f32 %v10388_v42, %v10773_v1 }
 0x592   :  { %6551 = vst [vmem:[#allocation15 + $0x180] sm:$0xff] %v6423_v2  ;;  %v4874_v16 = vmul.f32 %v10903_v3, %v10901_v50  ;;  %v5782_v56 = vmul.f32 %v10381_v37, %v10823_v44  ;;  %v10917_v59 = vunpack.c.h.bf16 %v9492_v61  ;;  %v5908_v18 = vadd.f32 %v5780_v34, %v5390_v51  ;;  %v9495_v61 = vld [vmem:[#allocation4 + $0x118] sm:$0xff]  }
 0x593   :  { %v6424_v57 = vadd.f32 %v6296_v31, %v5907_v49  ;;  %v5391_v54 = vadd.f32 %v5263_v13, %v4873_v29  ;;  %v5265_v24 = vmul.f32 %v10907_v15, %v10873_v47  ;;  %v6299_v63 = vmul.f32 %v10388_v42, %v10783_v4 }
 0x594   :  { %v5392_v26 = vadd.f32 %v5264_v32, %v4874_v16  ;;  %v4875_v1 = vmul.f32 %v10903_v3, %v10917_v59  ;;  %v5783_v37 = vmul.f32 %v10925_v11, %v10833_v0  ;;  %v6425_v10 = vadd.f32 %v6297_v40, %v5908_v18 }
 0x595   :  { %6552 = vst [vmem:[#allocation15 + $0x188] sm:$0xff] %v6424_v57  ;;  %v5909_v5 = vadd.f32 %v5781_v14, %v5391_v54  ;;  %v10929_v27 = vunpack.c.l.bf16 %v9493_v25  ;;  %v5266_v43 = vmul.f32 %v10907_v15, %v10883_v12  ;;  %v6300_v42 = vmul.f32 %v10933_v7, %v10793_v35 }
 0x596   :  { %v5910_v45 = vadd.f32 %v5782_v56, %v5392_v26  ;;  %v5393_v48 = vadd.f32 %v5265_v24, %v4875_v1  ;;  %v5784_v4 = vmul.f32 %v10925_v11, %v10843_v33  ;;  %6553 = vst [vmem:[#allocation15 + $0x190] sm:$0xff] %v6425_v10  ;;  %v10941_v46 = vunpack.c.h.bf16 %v9493_v25  ;;  %v9496_v25 = vld [vmem:[#allocation4 + $0x120] sm:$0xff]  }
 0x597   :  { %v6426_v6 = vadd.f32 %v6298_v20, %v5909_v5  ;;  %v4876_v8 = vmul.f32 %v10903_v3, %v10929_v27  ;;  %v5267_v52 = vmul.f32 %v10907_v15, %v10893_v41  ;;  %v6301_v21 = vmul.f32 %v10933_v7, %v10801_v9 }
 0x598   :  { %v6427_v53 = vadd.f32 %v6299_v63, %v5910_v45  ;;  %v5911_v19 = vadd.f32 %v5783_v37, %v5393_v48  ;;  %v5785_v35 = vmul.f32 %v10925_v11, %v10851_v58  ;;  %v4877_v36 = vmul.f32 %v10903_v3, %v10941_v46  ;;  %v9497_v45 = vld [vmem:[#allocation4 + $0x128] sm:$0xff]  }
 0x599   :  { %6554 = vst [vmem:[#allocation15 + $0x198] sm:$0xff] %v6426_v6  ;;  %v5394_v22 = vadd.f32 %v5266_v43, %v4876_v8  ;;  %v10951_v23 = vunpack.c.l.bf16 %v9494_v55  ;;  %v5268_v60 = vmul.f32 %v10907_v15, %v10901_v50  ;;  %v6302_v39 = vmul.f32 %v10933_v7, %v10813_v17 }
 0x59a   :  { %6555 = vst [vmem:[#allocation15 + $0x1a0] sm:$0xff] %v6427_v53  ;;  %v6428_v38 = vadd.f32 %v6300_v42, %v5911_v19  ;;  %v5786_v9 = vmul.f32 %v10925_v11, %v10863_v30  ;;  %v10959_v31 = vunpack.c.h.bf16 %v9494_v55  ;;  %v5395_v62 = vadd.f32 %v5267_v52, %v4877_v36 }
 0x59b   :  { %v5912_v34 = vadd.f32 %v5784_v4, %v5394_v22  ;;  %v4878_v28 = vmul.f32 %v10903_v3, %v10951_v23  ;;  %v5269_v13 = vmul.f32 %v10907_v15, %v10917_v59  ;;  %v6303_v2 = vmul.f32 %v10933_v7, %v10823_v44 }
 0x59c   :  { %6556 = vst [vmem:[#allocation15 + $0x1a8] sm:$0xff] %v6428_v38  ;;  %v4879_v17 = vmul.f32 %v10903_v3, %v10959_v31  ;;  %v5787_v40 = vmul.f32 %v10925_v11, %v10873_v47  ;;  %v10971_v14 = vunpack.c.l.bf16 %v9495_v61  ;;  %v5913_v51 = vadd.f32 %v5785_v35, %v5395_v62 }
 0x59d   :  { %v6429_v49 = vadd.f32 %v6301_v21, %v5912_v34  ;;  %v5396_v29 = vadd.f32 %v5268_v60, %v4878_v28  ;;  %v5270_v32 = vmul.f32 %v10907_v15, %v10929_v27  ;;  %v6304_v16 = vmul.f32 %v10933_v7, %v10833_v0 }
 0x59e   :  { %v5397_v20 = vadd.f32 %v5269_v13, %v4879_v17  ;;  %v4880_v44 = vmul.f32 %v10903_v3, %v10971_v14  ;;  %v5788_v56 = vmul.f32 %v10925_v11, %v10883_v12  ;;  %v6430_v57 = vadd.f32 %v6302_v39, %v5913_v51 }
 0x59f   :  { %6557 = vst [vmem:[#allocation15 + $0x1b0] sm:$0xff] %v6429_v49  ;;  %v5914_v18 = vadd.f32 %v5786_v9, %v5396_v29  ;;  %v10981_v54 = vunpack.c.h.bf16 %v9495_v61  ;;  %v5271_v24 = vmul.f32 %v10907_v15, %v10941_v46  ;;  %v6305_v0 = vmul.f32 %v10933_v7, %v10843_v33  ;;  %v9498_v9 = vld [vmem:[#allocation4 + $0x130] sm:$0xff]  }
 0x5a0   :  { %v5915_v26 = vadd.f32 %v5787_v40, %v5397_v20  ;;  %v5398_v63 = vadd.f32 %v5270_v32, %v4880_v44  ;;  %v5789_v1 = vmul.f32 %v10925_v11, %v10893_v41  ;;  %6558 = vst [vmem:[#allocation15 + $0x1b8] sm:$0xff] %v6430_v57  ;;  %v10991_v5 = vunpack.c.l.bf16 %v9496_v25 }
 0x5a1   :  { %v6431_v37 = vadd.f32 %v6303_v2, %v5914_v18  ;;  %v4881_v10 = vmul.f32 %v10903_v3, %v10981_v54  ;;  %v5272_v43 = vmul.f32 %v10907_v15, %v10951_v23  ;;  %v6306_v4 = vmul.f32 %v10933_v7, %v10851_v58 }
 0x5a2   :  { %v6432_v48 = vadd.f32 %v6304_v16, %v5915_v26  ;;  %v5916_v42 = vadd.f32 %v5788_v56, %v5398_v63  ;;  %v5790_v33 = vmul.f32 %v10925_v11, %v10901_v50  ;;  %v4882_v6 = vmul.f32 %v10903_v3, %v10991_v5  ;;  %v9499_v56 = vld [vmem:[#allocation4 + $0x138] sm:$0xff]  }
 0x5a3   :  { %6559 = vst [vmem:[#allocation15 + $0x1c0] sm:$0xff] %v6431_v37  ;;  %v5399_v55 = vadd.f32 %v5271_v24, %v4881_v10  ;;  %v11001_v8 = vunpack.c.h.bf16 %v9496_v25  ;;  %v5273_v52 = vmul.f32 %v10907_v15, %v10959_v31  ;;  %v6307_v19 = vmul.f32 %v10933_v7, %v10863_v30 }
 0x5a4   :  { %6560 = vst [vmem:[#allocation15 + $0x1c8] sm:$0xff] %v6432_v48  ;;  %v6433_v53 = vadd.f32 %v6305_v0, %v5916_v42  ;;  %v5791_v58 = vmul.f32 %v10925_v11, %v10917_v59  ;;  %v11009_v21 = vunpack.c.l.bf16 %v9497_v45  ;;  %v5400_v22 = vadd.f32 %v5272_v43, %v4882_v6 }
 0x5a5   :  { %v5917_v35 = vadd.f32 %v5789_v1, %v5399_v55  ;;  %v4883_v36 = vmul.f32 %v10903_v3, %v11001_v8  ;;  %v5274_v60 = vmul.f32 %v10907_v15, %v10971_v14  ;;  %v6308_v61 = vmul.f32 %v10933_v7, %v10873_v47 }
 0x5a6   :  { %6561 = vst [vmem:[#allocation15 + $0x1d0] sm:$0xff] %v6433_v53  ;;  %v4884_v30 = vmul.f32 %v10903_v3, %v11009_v21  ;;  %v5792_v38 = vmul.f32 %v10925_v11, %v10929_v27  ;;  %v11021_v39 = vunpack.c.h.bf16 %v9497_v45  ;;  %v5918_v62 = vadd.f32 %v5790_v33, %v5400_v22  ;;  %v9500_v45 = vld [vmem:[#allocation4 + $0x140] sm:$0xff]  }
 0x5a7   :  { %v6434_v34 = vadd.f32 %v6306_v4, %v5917_v35  ;;  %v5401_v28 = vadd.f32 %v5273_v52, %v4883_v36  ;;  %v5275_v13 = vmul.f32 %v10907_v15, %v10981_v54  ;;  %v6309_v17 = vmul.f32 %v10933_v7, %v10883_v12 }
 0x5a8   :  { %v5402_v2 = vadd.f32 %v5274_v60, %v4884_v30  ;;  %v4885_v47 = vmul.f32 %v10903_v3, %v11021_v39  ;;  %v5793_v40 = vmul.f32 %v10925_v11, %v10941_v46  ;;  %v6435_v49 = vadd.f32 %v6307_v19, %v5918_v62 }
 0x5a9   :  { %6562 = vst [vmem:[#allocation15 + $0x1d8] sm:$0xff] %v6434_v34  ;;  %v5919_v51 = vadd.f32 %v5791_v58, %v5401_v28  ;;  %v11031_v29 = vunpack.c.l.bf16 %v9498_v9  ;;  %v5276_v32 = vmul.f32 %v10907_v15, %v10991_v5  ;;  %v6310_v44 = vmul.f32 %v10933_v7, %v10893_v41 }
 0x5aa   :  { %v5920_v20 = vadd.f32 %v5792_v38, %v5402_v2  ;;  %v5403_v16 = vadd.f32 %v5275_v13, %v4885_v47  ;;  %v5794_v12 = vmul.f32 %v10925_v11, %v10951_v23  ;;  %6563 = vst [vmem:[#allocation15 + $0x1e0] sm:$0xff] %v6435_v49  ;;  %v11041_v18 = vunpack.c.h.bf16 %v9498_v9  ;;  %v9501_v9 = vld [vmem:[#allocation4 + $0x148] sm:$0xff]  }
 0x5ab   :  { %v6436_v25 = vadd.f32 %v6308_v61, %v5919_v51  ;;  %v4886_v57 = vmul.f32 %v10903_v3, %v11031_v29  ;;  %v5277_v24 = vmul.f32 %v10907_v15, %v11001_v8  ;;  %v6311_v0 = vmul.f32 %v10933_v7, %v10901_v50 }
 0x5ac   :  { %v6437_v26 = vadd.f32 %v6309_v17, %v5920_v20  ;;  %v5921_v63 = vadd.f32 %v5793_v40, %v5403_v16  ;;  %v5795_v41 = vmul.f32 %v10925_v11, %v10959_v31  ;;  %v4887_v37 = vmul.f32 %v10903_v3, %v11041_v18  ;;  %v9502_v20 = vld [vmem:[#allocation4 + $0x150] sm:$0xff]  }
 0x5ad   :  { %6564 = vst [vmem:[#allocation15 + $0x1e8] sm:$0xff] %v6436_v25  ;;  %v5404_v1 = vadd.f32 %v5276_v32, %v4886_v57  ;;  %v11051_v10 = vunpack.c.l.bf16 %v9499_v56  ;;  %v5278_v43 = vmul.f32 %v10907_v15, %v11009_v21  ;;  %v6312_v42 = vmul.f32 %v10933_v7, %v10917_v59 }
 0x5ae   :  { %6565 = vst [vmem:[#allocation15 + $0x1f0] sm:$0xff] %v6437_v26  ;;  %v6438_v48 = vadd.f32 %v6310_v44, %v5921_v63  ;;  %v5796_v50 = vmul.f32 %v10925_v11, %v10971_v14  ;;  %v11059_v4 = vunpack.c.h.bf16 %v9499_v56  ;;  %v5405_v55 = vadd.f32 %v5277_v24, %v4887_v37 }
 0x5af   :  { %v5922_v33 = vadd.f32 %v5794_v12, %v5404_v1  ;;  %v4888_v6 = vmul.f32 %v10903_v3, %v11051_v10  ;;  %v5279_v52 = vmul.f32 %v10907_v15, %v11021_v39  ;;  %v6313_v53 = vmul.f32 %v10933_v7, %v10929_v27 }
 0x5b0   :  { %6566 = vst [vmem:[#allocation15 + $0x1f8] sm:$0xff] %v6438_v48  ;;  %v4889_v59 = vmul.f32 %v10903_v3, %v11059_v4  ;;  %v5797_v19 = vmul.f32 %v10925_v11, %v10981_v54  ;;  %v11071_v58 = vunpack.c.l.bf16 %v9500_v45  ;;  %v5923_v22 = vadd.f32 %v5795_v41, %v5405_v55 }
 0x5b1   :  { %v6439_v35 = vadd.f32 %v6311_v0, %v5922_v33  ;;  %v5406_v36 = vadd.f32 %v5278_v43, %v4888_v6  ;;  %v5280_v60 = vmul.f32 %v10907_v15, %v11031_v29  ;;  %v6314_v30 = vmul.f32 %v10933_v7, %v10941_v46 }
 0x5b2   :  { %v5407_v61 = vadd.f32 %v5279_v52, %v4889_v59  ;;  %v4890_v27 = vmul.f32 %v10903_v3, %v11071_v58  ;;  %v5798_v38 = vmul.f32 %v10925_v11, %v10991_v5  ;;  %v6440_v34 = vadd.f32 %v6312_v42, %v5923_v22 }
 0x5b3   :  { %6567 = vst [vmem:[#allocation15 + $0x200] sm:$0xff] %v6439_v35  ;;  %v5924_v62 = vadd.f32 %v5796_v50, %v5406_v36  ;;  %v11081_v28 = vunpack.c.h.bf16 %v9500_v45  ;;  %v5281_v13 = vmul.f32 %v10907_v15, %v11041_v18  ;;  %v6315_v46 = vmul.f32 %v10933_v7, %v10951_v23  ;;  %v9503_v50 = vld [vmem:[#allocation4 + $0x158] sm:$0xff]  }
 0x5b4   :  { %v5925_v2 = vadd.f32 %v5797_v19, %v5407_v61  ;;  %v5408_v17 = vadd.f32 %v5280_v60, %v4890_v27  ;;  %v5799_v47 = vmul.f32 %v10925_v11, %v11001_v8  ;;  %6568 = vst [vmem:[#allocation15 + $0x208] sm:$0xff] %v6440_v34  ;;  %v11091_v51 = vunpack.c.l.bf16 %v9501_v9 }
 0x5b5   :  { %v6441_v40 = vadd.f32 %v6313_v53, %v5924_v62  ;;  %v4891_v49 = vmul.f32 %v10903_v3, %v11081_v28  ;;  %v5282_v32 = vmul.f32 %v10907_v15, %v11051_v10  ;;  %v6316_v12 = vmul.f32 %v10933_v7, %v10959_v31 }
 0x5b6   :  { %v6442_v16 = vadd.f32 %v6314_v30, %v5925_v2  ;;  %v5926_v44 = vadd.f32 %v5798_v38, %v5408_v17  ;;  %v5800_v23 = vmul.f32 %v10925_v11, %v11009_v21  ;;  %v4892_v25 = vmul.f32 %v10903_v3, %v11091_v51  ;;  %v9504_v38 = vld [vmem:[#allocation4 + $0x160] sm:$0xff]  }
 0x5b7   :  { %6569 = vst [vmem:[#allocation15 + $0x210] sm:$0xff] %v6441_v40  ;;  %v5409_v56 = vadd.f32 %v5281_v13, %v4891_v49  ;;  %v11101_v57 = vunpack.c.h.bf16 %v9501_v9  ;;  %v5283_v24 = vmul.f32 %v10907_v15, %v11059_v4  ;;  %v6317_v63 = vmul.f32 %v10933_v7, %v10971_v14 }
 0x5b8   :  { %6570 = vst [vmem:[#allocation15 + $0x218] sm:$0xff] %v6442_v16  ;;  %v6443_v26 = vadd.f32 %v6315_v46, %v5926_v44  ;;  %v5801_v31 = vmul.f32 %v10925_v11, %v11021_v39  ;;  %v11109_v0 = vunpack.c.l.bf16 %v9502_v20  ;;  %v5410_v1 = vadd.f32 %v5282_v32, %v4892_v25 }
 0x5b9   :  { %v5927_v41 = vadd.f32 %v5799_v47, %v5409_v56  ;;  %v4893_v37 = vmul.f32 %v10903_v3, %v11101_v57  ;;  %v5284_v43 = vmul.f32 %v10907_v15, %v11071_v58  ;;  %v6318_v45 = vmul.f32 %v10933_v7, %v10981_v54 }
 0x5ba   :  { %6571 = vst [vmem:[#allocation15 + $0x220] sm:$0xff] %v6443_v26  ;;  %v4894_v14 = vmul.f32 %v10903_v3, %v11109_v0  ;;  %v5802_v48 = vmul.f32 %v10925_v11, %v11031_v29  ;;  %v11121_v42 = vunpack.c.h.bf16 %v9502_v20  ;;  %v5928_v55 = vadd.f32 %v5800_v23, %v5410_v1  ;;  %v9505_v20 = vld [vmem:[#allocation4 + $0x168] sm:$0xff]  }
 0x5bb   :  { %v6444_v33 = vadd.f32 %v6316_v12, %v5927_v41  ;;  %v5411_v6 = vadd.f32 %v5283_v24, %v4893_v37  ;;  %v5285_v52 = vmul.f32 %v10907_v15, %v11081_v28  ;;  %v6319_v59 = vmul.f32 %v10933_v7, %v10991_v5 }
 0x5bc   :  { %v5412_v53 = vadd.f32 %v5284_v43, %v4894_v14  ;;  %v4895_v54 = vmul.f32 %v10903_v3, %v11121_v42  ;;  %v5803_v19 = vmul.f32 %v10925_v11, %v11041_v18  ;;  %v6445_v35 = vadd.f32 %v6317_v63, %v5928_v55 }
 0x5bd   :  { %6572 = vst [vmem:[#allocation15 + $0x228] sm:$0xff] %v6444_v33  ;;  %v5929_v22 = vadd.f32 %v5801_v31, %v5411_v6  ;;  %v11131_v36 = vunpack.c.l.bf16 %v9503_v50  ;;  %v5286_v60 = vmul.f32 %v10907_v15, %v11091_v51  ;;  %v6320_v27 = vmul.f32 %v10933_v7, %v11001_v8 }
 0x5be   :  { %v5930_v61 = vadd.f32 %v5802_v48, %v5412_v53  ;;  %v5413_v30 = vadd.f32 %v5285_v52, %v4895_v54  ;;  %v5804_v5 = vmul.f32 %v10925_v11, %v11051_v10  ;;  %6573 = vst [vmem:[#allocation15 + $0x230] sm:$0xff] %v6445_v35  ;;  %v11141_v62 = vunpack.c.h.bf16 %v9503_v50  ;;  %v9506_v50 = vld [vmem:[#allocation4 + $0x170] sm:$0xff]  }
 0x5bf   :  { %v6446_v9 = vadd.f32 %v6318_v45, %v5929_v22  ;;  %v4896_v34 = vmul.f32 %v10903_v3, %v11131_v36  ;;  %v5287_v13 = vmul.f32 %v10907_v15, %v11101_v57  ;;  %v6321_v46 = vmul.f32 %v10933_v7, %v11009_v21 }
 0x5c0   :  { %v6447_v2 = vadd.f32 %v6319_v59, %v5930_v61  ;;  %v5931_v17 = vadd.f32 %v5803_v19, %v5413_v30  ;;  %v5805_v8 = vmul.f32 %v10925_v11, %v11059_v4  ;;  %v4897_v40 = vmul.f32 %v10903_v3, %v11141_v62  ;;  %v9507_v61 = vld [vmem:[#allocation4 + $0x178] sm:$0xff]  }
 0x5c1   :  { %6574 = vst [vmem:[#allocation15 + $0x238] sm:$0xff] %v6446_v9  ;;  %v5414_v47 = vadd.f32 %v5286_v60, %v4896_v34  ;;  %v11151_v49 = vunpack.c.l.bf16 %v9504_v38  ;;  %v5288_v32 = vmul.f32 %v10907_v15, %v11109_v0  ;;  %v6322_v44 = vmul.f32 %v10933_v7, %v11021_v39 }
 0x5c2   :  { %6575 = vst [vmem:[#allocation15 + $0x240] sm:$0xff] %v6447_v2  ;;  %v6448_v16 = vadd.f32 %v6320_v27, %v5931_v17  ;;  %v5806_v21 = vmul.f32 %v10925_v11, %v11071_v58  ;;  %v11159_v12 = vunpack.c.h.bf16 %v9504_v38  ;;  %v5415_v56 = vadd.f32 %v5287_v13, %v4897_v40 }
 0x5c3   :  { %v5932_v23 = vadd.f32 %v5804_v5, %v5414_v47  ;;  %v4898_v25 = vmul.f32 %v10903_v3, %v11151_v49  ;;  %v5289_v24 = vmul.f32 %v10907_v15, %v11121_v42  ;;  %v6323_v26 = vmul.f32 %v10933_v7, %v11031_v29 }
 0x5c4   :  { %6576 = vst [vmem:[#allocation15 + $0x248] sm:$0xff] %v6448_v16  ;;  %v4899_v39 = vmul.f32 %v10903_v3, %v11159_v12  ;;  %v5807_v63 = vmul.f32 %v10925_v11, %v11081_v28  ;;  %v11171_v31 = vunpack.c.l.bf16 %v9505_v20  ;;  %v5933_v1 = vadd.f32 %v5805_v8, %v5415_v56 }
 0x5c5   :  { %v6449_v41 = vadd.f32 %v6321_v46, %v5932_v23  ;;  %v5416_v37 = vadd.f32 %v5288_v32, %v4898_v25  ;;  %v5290_v43 = vmul.f32 %v10907_v15, %v11131_v36  ;;  %v6324_v14 = vmul.f32 %v10933_v7, %v11041_v18 }
 0x5c6   :  { %v5417_v45 = vadd.f32 %v5289_v24, %v4899_v39  ;;  %v4900_v29 = vmul.f32 %v10903_v3, %v11171_v31  ;;  %v5808_v48 = vmul.f32 %v10925_v11, %v11091_v51  ;;  %v6450_v33 = vadd.f32 %v6322_v44, %v5933_v1 }
 0x5c7   :  { %6577 = vst [vmem:[#allocation15 + $0x250] sm:$0xff] %v6449_v41  ;;  %v5934_v55 = vadd.f32 %v5806_v21, %v5416_v37  ;;  %v11181_v6 = vunpack.c.h.bf16 %v9505_v20  ;;  %v5291_v52 = vmul.f32 %v10907_v15, %v11141_v62  ;;  %v6325_v18 = vmul.f32 %v10933_v7, %v11051_v10  ;;  %v9508_v21 = vld [vmem:[#allocation4 + $0x180] sm:$0xff]  }
 0x5c8   :  { %v5935_v53 = vadd.f32 %v5807_v63, %v5417_v45  ;;  %v5418_v59 = vadd.f32 %v5290_v43, %v4900_v29  ;;  %v5809_v54 = vmul.f32 %v10925_v11, %v11101_v57  ;;  %6578 = vst [vmem:[#allocation15 + $0x258] sm:$0xff] %v6450_v33  ;;  %v11191_v22 = vunpack.c.l.bf16 %v9506_v50 }
 0x5c9   :  { %v6451_v19 = vadd.f32 %v6323_v26, %v5934_v55  ;;  %v4901_v35 = vmul.f32 %v10903_v3, %v11181_v6  ;;  %v5292_v60 = vmul.f32 %v10907_v15, %v11151_v49  ;;  %v6326_v5 = vmul.f32 %v10933_v7, %v11059_v4 }
 0x5ca   :  { %v6452_v30 = vadd.f32 %v6324_v14, %v5935_v53  ;;  %v5936_v27 = vadd.f32 %v5808_v48, %v5418_v59  ;;  %v5810_v10 = vmul.f32 %v10925_v11, %v11109_v0  ;;  %v4902_v9 = vmul.f32 %v10903_v3, %v11191_v22  ;;  %v9509_v48 = vld [vmem:[#allocation4 + $0x188] sm:$0xff]  }
 0x5cb   :  { %6579 = vst [vmem:[#allocation15 + $0x260] sm:$0xff] %v6451_v19  ;;  %v5419_v38 = vadd.f32 %v5291_v52, %v4901_v35  ;;  %v11201_v34 = vunpack.c.h.bf16 %v9506_v50  ;;  %v5293_v13 = vmul.f32 %v10907_v15, %v11159_v12  ;;  %v6327_v17 = vmul.f32 %v10933_v7, %v11071_v58 }
 0x5cc   :  { %6580 = vst [vmem:[#allocation15 + $0x268] sm:$0xff] %v6452_v30  ;;  %v6453_v2 = vadd.f32 %v6325_v18, %v5936_v27  ;;  %v5811_v4 = vmul.f32 %v10925_v11, %v11121_v42  ;;  %v11209_v46 = vunpack.c.l.bf16 %v9507_v61  ;;  %v5420_v47 = vadd.f32 %v5292_v60, %v4902_v9 }
 0x5cd   :  { %v5937_v8 = vadd.f32 %v5809_v54, %v5419_v38  ;;  %v4903_v40 = vmul.f32 %v10903_v3, %v11201_v34  ;;  %v5294_v32 = vmul.f32 %v10907_v15, %v11171_v31  ;;  %v6328_v20 = vmul.f32 %v10933_v7, %v11081_v28 }
 0x5ce   :  { %6581 = vst [vmem:[#allocation15 + $0x270] sm:$0xff] %v6453_v2  ;;  %v4904_v58 = vmul.f32 %v10903_v3, %v11209_v46  ;;  %v5812_v16 = vmul.f32 %v10925_v11, %v11131_v36  ;;  %v11221_v44 = vunpack.c.h.bf16 %v9507_v61  ;;  %v5938_v56 = vadd.f32 %v5810_v10, %v5420_v47  ;;  %v9510_v61 = vld [vmem:[#allocation4 + $0x190] sm:$0xff]  }
 0x5cf   :  { %v6454_v23 = vadd.f32 %v6326_v5, %v5937_v8  ;;  %v5421_v25 = vadd.f32 %v5293_v13, %v4903_v40  ;;  %v5295_v24 = vmul.f32 %v10907_v15, %v11181_v6  ;;  %v6329_v39 = vmul.f32 %v10933_v7, %v11091_v51 }
 0x5d0   :  { %v5422_v26 = vadd.f32 %v5294_v32, %v4904_v58  ;;  %v4905_v28 = vmul.f32 %v10903_v3, %v11221_v44  ;;  %v5813_v63 = vmul.f32 %v10925_v11, %v11141_v62  ;;  %v6455_v41 = vadd.f32 %v6327_v17, %v5938_v56 }
 0x5d1   :  { %6582 = vst [vmem:[#allocation15 + $0x278] sm:$0xff] %v6454_v23  ;;  %v5939_v1 = vadd.f32 %v5811_v4, %v5421_v25  ;;  %v11231_v37 = vunpack.c.l.bf16 %v9508_v21  ;;  %v5296_v43 = vmul.f32 %v10907_v15, %v11191_v22  ;;  %v6330_v29 = vmul.f32 %v10933_v7, %v11101_v57 }
 0x5d2   :  { %v5940_v45 = vadd.f32 %v5812_v16, %v5422_v26  ;;  %v5423_v14 = vadd.f32 %v5295_v24, %v4905_v28  ;;  %v5814_v51 = vmul.f32 %v10925_v11, %v11151_v49  ;;  %6583 = vst [vmem:[#allocation15 + $0x280] sm:$0xff] %v6455_v41  ;;  %v11241_v55 = vunpack.c.h.bf16 %v9508_v21  ;;  %v9511_v21 = vld [vmem:[#allocation4 + $0x198] sm:$0xff]  }
 0x5d3   :  { %v6456_v50 = vadd.f32 %v6328_v20, %v5939_v1  ;;  %v4906_v33 = vmul.f32 %v10903_v3, %v11231_v37  ;;  %v5297_v52 = vmul.f32 %v10907_v15, %v11201_v34  ;;  %v6331_v18 = vmul.f32 %v10933_v7, %v11109_v0 }
 0x5d4   :  { %v6457_v53 = vadd.f32 %v6329_v39, %v5940_v45  ;;  %v5941_v59 = vadd.f32 %v5813_v63, %v5423_v14  ;;  %v5815_v57 = vmul.f32 %v10925_v11, %v11159_v12  ;;  %v4907_v19 = vmul.f32 %v10903_v3, %v11241_v55  ;;  %v9512_v45 = vld [vmem:[#allocation4 + $0x1a0] sm:$0xff]  }
 0x5d5   :  { %6584 = vst [vmem:[#allocation15 + $0x288] sm:$0xff] %v6456_v50  ;;  %v5424_v54 = vadd.f32 %v5296_v43, %v4906_v33  ;;  %v11251_v35 = vunpack.c.l.bf16 %v9509_v48  ;;  %v5298_v60 = vmul.f32 %v10907_v15, %v11209_v46  ;;  %v6332_v27 = vmul.f32 %v10933_v7, %v11121_v42 }
 0x5d6   :  { %6585 = vst [vmem:[#allocation15 + $0x290] sm:$0xff] %v6457_v53  ;;  %v6458_v30 = vadd.f32 %v6330_v29, %v5941_v59  ;;  %v5816_v0 = vmul.f32 %v10925_v11, %v11171_v31  ;;  %v11259_v5 = vunpack.c.h.bf16 %v9509_v48  ;;  %v5425_v38 = vadd.f32 %v5297_v52, %v4907_v19 }
 0x5d7   :  { %v5942_v10 = vadd.f32 %v5814_v51, %v5424_v54  ;;  %v4908_v9 = vmul.f32 %v10903_v3, %v11251_v35  ;;  %v5299_v13 = vmul.f32 %v10907_v15, %v11221_v44  ;;  %v6333_v2 = vmul.f32 %v10933_v7, %v11131_v36 }
 0x5d8   :  { %6586 = vst [vmem:[#allocation15 + $0x298] sm:$0xff] %v6458_v30  ;;  %v4909_v42 = vmul.f32 %v10903_v3, %v11259_v5  ;;  %v5817_v17 = vmul.f32 %v10925_v11, %v11181_v6  ;;  %v11271_v4 = vunpack.c.l.bf16 %v9510_v61  ;;  %v5943_v47 = vadd.f32 %v5815_v57, %v5425_v38 }
 0x5d9   :  { %v6459_v8 = vadd.f32 %v6331_v18, %v5942_v10  ;;  %v5426_v40 = vadd.f32 %v5298_v60, %v4908_v9  ;;  %v5300_v32 = vmul.f32 %v10907_v15, %v11231_v37  ;;  %v6334_v58 = vmul.f32 %v10933_v7, %v11141_v62 }
 0x5da   :  { %v5427_v20 = vadd.f32 %v5299_v13, %v4909_v42  ;;  %v4910_v36 = vmul.f32 %v10903_v3, %v11271_v4  ;;  %v5818_v16 = vmul.f32 %v10925_v11, %v11191_v22  ;;  %v6460_v23 = vadd.f32 %v6332_v27, %v5943_v47 }
 0x5db   :  { %6587 = vst [vmem:[#allocation15 + $0x2a0] sm:$0xff] %v6459_v8  ;;  %v5944_v56 = vadd.f32 %v5816_v0, %v5426_v40  ;;  %v11281_v25 = vunpack.c.h.bf16 %v9510_v61  ;;  %v5301_v24 = vmul.f32 %v10907_v15, %v11241_v55  ;;  %v6335_v62 = vmul.f32 %v10933_v7, %v11151_v49  ;;  %v9513_v0 = vld [vmem:[#allocation4 + $0x1a8] sm:$0xff]  }
 0x5dc   :  { %v5945_v26 = vadd.f32 %v5817_v17, %v5427_v20  ;;  %v5428_v39 = vadd.f32 %v5300_v32, %v4910_v36  ;;  %v5819_v28 = vmul.f32 %v10925_v11, %v11201_v34  ;;  %6588 = vst [vmem:[#allocation15 + $0x2a8] sm:$0xff] %v6460_v23  ;;  %v11291_v1 = vunpack.c.l.bf16 %v9511_v21 }
 0x5dd   :  { %v6461_v63 = vadd.f32 %v6333_v2, %v5944_v56  ;;  %v4911_v41 = vmul.f32 %v10903_v3, %v11281_v25  ;;  %v5302_v43 = vmul.f32 %v10907_v15, %v11251_v35  ;;  %v6336_v51 = vmul.f32 %v10933_v7, %v11159_v12 }
 0x5de   :  { %v6462_v14 = vadd.f32 %v6334_v58, %v5945_v26  ;;  %v5946_v29 = vadd.f32 %v5818_v16, %v5428_v39  ;;  %v5820_v49 = vmul.f32 %v10925_v11, %v11209_v46  ;;  %v4912_v50 = vmul.f32 %v10903_v3, %v11291_v1  ;;  %v9514_v16 = vld [vmem:[#allocation4 + $0x1b0] sm:$0xff]  }
 0x5df   :  { %6589 = vst [vmem:[#allocation15 + $0x2b0] sm:$0xff] %v6461_v63  ;;  %v5429_v48 = vadd.f32 %v5301_v24, %v4911_v41  ;;  %v11301_v33 = vunpack.c.h.bf16 %v9511_v21  ;;  %v5303_v52 = vmul.f32 %v10907_v15, %v11259_v5  ;;  %v6337_v59 = vmul.f32 %v10933_v7, %v11171_v31 }
 0x5e0   :  { %6590 = vst [vmem:[#allocation15 + $0x2b8] sm:$0xff] %v6462_v14  ;;  %v6463_v53 = vadd.f32 %v6335_v62, %v5946_v29  ;;  %v5821_v12 = vmul.f32 %v10925_v11, %v11221_v44  ;;  %v11309_v18 = vunpack.c.l.bf16 %v9512_v45  ;;  %v5430_v54 = vadd.f32 %v5302_v43, %v4912_v50 }
 0x5e1   :  { %v5947_v57 = vadd.f32 %v5819_v28, %v5429_v48  ;;  %v4913_v19 = vmul.f32 %v10903_v3, %v11301_v33  ;;  %v5304_v60 = vmul.f32 %v10907_v15, %v11271_v4  ;;  %v6338_v61 = vmul.f32 %v10933_v7, %v11181_v6 }
 0x5e2   :  { %6591 = vst [vmem:[#allocation15 + $0x2c0] sm:$0xff] %v6463_v53  ;;  %v4914_v31 = vmul.f32 %v10903_v3, %v11309_v18  ;;  %v5822_v30 = vmul.f32 %v10925_v11, %v11231_v37  ;;  %v11321_v27 = vunpack.c.h.bf16 %v9512_v45  ;;  %v5948_v38 = vadd.f32 %v5820_v49, %v5430_v54  ;;  %v9515_v45 = vld [vmem:[#allocation4 + $0x1b8] sm:$0xff]  }
 0x5e3   :  { %v6464_v10 = vadd.f32 %v6336_v51, %v5947_v57  ;;  %v5431_v9 = vadd.f32 %v5303_v52, %v4913_v19  ;;  %v5305_v13 = vmul.f32 %v10907_v15, %v11281_v25  ;;  %v6339_v42 = vmul.f32 %v10933_v7, %v11191_v22 }
 0x5e4   :  { %v5432_v2 = vadd.f32 %v5304_v60, %v4914_v31  ;;  %v4915_v6 = vmul.f32 %v10903_v3, %v11321_v27  ;;  %v5823_v17 = vmul.f32 %v10925_v11, %v11241_v55  ;;  %v6465_v8 = vadd.f32 %v6337_v59, %v5948_v38 }
 0x5e5   :  { %6592 = vst [vmem:[#allocation15 + $0x2c8] sm:$0xff] %v6464_v10  ;;  %v5949_v47 = vadd.f32 %v5821_v12, %v5431_v9  ;;  %v11331_v40 = vunpack.c.l.bf16 %v9513_v0  ;;  %v5306_v32 = vmul.f32 %v10907_v15, %v11291_v1  ;;  %v6340_v36 = vmul.f32 %v10933_v7, %v11201_v34 }
 0x5e6   :  { %v5950_v20 = vadd.f32 %v5822_v30, %v5432_v2  ;;  %v5433_v58 = vadd.f32 %v5305_v13, %v4915_v6  ;;  %v5824_v22 = vmul.f32 %v10925_v11, %v11251_v35  ;;  %6593 = vst [vmem:[#allocation15 + $0x2d0] sm:$0xff] %v6465_v8  ;;  %v11341_v56 = vunpack.c.h.bf16 %v9513_v0  ;;  %v9516_v0 = vld [vmem:[#allocation4 + $0x1c0] sm:$0xff]  }
 0x5e7   :  { %v6466_v21 = vadd.f32 %v6338_v61, %v5949_v47  ;;  %v4916_v23 = vmul.f32 %v10903_v3, %v11331_v40  ;;  %v5307_v24 = vmul.f32 %v10907_v15, %v11301_v33  ;;  %v6341_v62 = vmul.f32 %v10933_v7, %v11209_v46 }
 0x5e8   :  { %v6467_v26 = vadd.f32 %v6339_v42, %v5950_v20  ;;  %v5951_v39 = vadd.f32 %v5823_v17, %v5433_v58  ;;  %v5825_v34 = vmul.f32 %v10925_v11, %v11259_v5  ;;  %v4917_v63 = vmul.f32 %v10903_v3, %v11341_v56  ;;  %v9517_v20 = vld [vmem:[#allocation4 + $0x1c8] sm:$0xff]  }
 0x5e9   :  { %6594 = vst [vmem:[#allocation15 + $0x2d8] sm:$0xff] %v6466_v21  ;;  %v5434_v28 = vadd.f32 %v5306_v32, %v4916_v23  ;;  %v11351_v41 = vunpack.c.l.bf16 %v9514_v16  ;;  %v5308_v43 = vmul.f32 %v10907_v15, %v11309_v18  ;;  %v6342_v29 = vmul.f32 %v10933_v7, %v11221_v44 }
 0x5ea   :  { %6595 = vst [vmem:[#allocation15 + $0x2e0] sm:$0xff] %v6467_v26  ;;  %v6468_v14 = vadd.f32 %v6340_v36, %v5951_v39  ;;  %v5826_v46 = vmul.f32 %v10925_v11, %v11271_v4  ;;  %v11359_v51 = vunpack.c.h.bf16 %v9514_v16  ;;  %v5435_v48 = vadd.f32 %v5307_v24, %v4917_v63 }
 0x5eb   :  { %v5952_v49 = vadd.f32 %v5824_v22, %v5434_v28  ;;  %v4918_v50 = vmul.f32 %v10903_v3, %v11351_v41  ;;  %v5309_v52 = vmul.f32 %v10907_v15, %v11321_v27  ;;  %v6343_v53 = vmul.f32 %v10933_v7, %v11231_v37 }
 0x5ec   :  { %6596 = vst [vmem:[#allocation15 + $0x2e8] sm:$0xff] %v6468_v14  ;;  %v4919_v44 = vmul.f32 %v10903_v3, %v11359_v51  ;;  %v5827_v59 = vmul.f32 %v10925_v11, %v11281_v25  ;;  %v11371_v12 = vunpack.c.l.bf16 %v9515_v45  ;;  %v5953_v54 = vadd.f32 %v5825_v34, %v5435_v48 }
 0x5ed   :  { %v6469_v57 = vadd.f32 %v6341_v62, %v5952_v49  ;;  %v5436_v19 = vadd.f32 %v5308_v43, %v4918_v50  ;;  %v5310_v60 = vmul.f32 %v10907_v15, %v11331_v40  ;;  %v6344_v31 = vmul.f32 %v10933_v7, %v11241_v55 }
 0x5ee   :  { %v5437_v61 = vadd.f32 %v5309_v52, %v4919_v44  ;;  %v4920_v37 = vmul.f32 %v10903_v3, %v11371_v12  ;;  %v5828_v30 = vmul.f32 %v10925_v11, %v11291_v1  ;;  %v6470_v10 = vadd.f32 %v6342_v29, %v5953_v54 }
 0x5ef   :  { %6597 = vst [vmem:[#allocation15 + $0x2f0] sm:$0xff] %v6469_v57  ;;  %v5954_v38 = vadd.f32 %v5826_v46, %v5436_v19  ;;  %v11381_v9 = vunpack.c.h.bf16 %v9515_v45  ;;  %v5311_v13 = vmul.f32 %v10907_v15, %v11341_v56  ;;  %v6345_v55 = vmul.f32 %v10933_v7, %v11251_v35  ;;  %v9518_v46 = vld [vmem:[#allocation4 + $0x1d0] sm:$0xff]  }
 0x5f0   :  { %v5955_v2 = vadd.f32 %v5827_v59, %v5437_v61  ;;  %v5438_v42 = vadd.f32 %v5310_v60, %v4920_v37  ;;  %v5829_v6 = vmul.f32 %v10925_v11, %v11301_v33  ;;  %6598 = vst [vmem:[#allocation15 + $0x2f8] sm:$0xff] %v6470_v10  ;;  %v11391_v47 = vunpack.c.l.bf16 %v9516_v0 }
 0x5f1   :  { %v6471_v17 = vadd.f32 %v6343_v53, %v5954_v38  ;;  %v4921_v8 = vmul.f32 %v10903_v3, %v11381_v9  ;;  %v5312_v32 = vmul.f32 %v10907_v15, %v11351_v41  ;;  %v6346_v22 = vmul.f32 %v10933_v7, %v11259_v5 }
 0x5f2   :  { %v6472_v58 = vadd.f32 %v6344_v31, %v5955_v2  ;;  %v5956_v36 = vadd.f32 %v5828_v30, %v5438_v42  ;;  %v5830_v35 = vmul.f32 %v10925_v11, %v11309_v18  ;;  %v4922_v21 = vmul.f32 %v10903_v3, %v11391_v47  ;;  %v9519_v30 = vld [vmem:[#allocation4 + $0x1d8] sm:$0xff]  }
 0x5f3   :  { %6599 = vst [vmem:[#allocation15 + $0x300] sm:$0xff] %v6471_v17  ;;  %v5439_v16 = vadd.f32 %v5311_v13, %v4921_v8  ;;  %v11401_v23 = vunpack.c.h.bf16 %v9516_v0  ;;  %v5313_v24 = vmul.f32 %v10907_v15, %v11359_v51  ;;  %v6347_v39 = vmul.f32 %v10933_v7, %v11271_v4  ;;  %v11449_v17 = vld [vmem:[#allocation14] ss:$0 sm:$0xff] }
 0x5f4   :  { %6600 = vst [vmem:[#allocation15 + $0x308] sm:$0xff] %v6472_v58  ;;  %v6473_v26 = vadd.f32 %v6345_v55, %v5956_v36  ;;  %v5831_v5 = vmul.f32 %v10925_v11, %v11321_v27  ;;  %v11409_v62 = vunpack.c.l.bf16 %v9517_v20  ;;  %v5440_v28 = vadd.f32 %v5312_v32, %v4922_v21  ;;  %v11455_v32 = vld [vmem:[#allocation14 + $0x1] ss:$0 sm:$0xff] }
 0x5f5   :  { %v5957_v34 = vadd.f32 %v5829_v6, %v5439_v16  ;;  %v4923_v63 = vmul.f32 %v10903_v3, %v11401_v23  ;;  %v5314_v43 = vmul.f32 %v10907_v15, %v11371_v12  ;;  %v6348_v45 = vmul.f32 %v10933_v7, %v11281_v25 }
 0x5f6   :  { %6601 = vst [vmem:[#allocation15 + $0x310] sm:$0xff] %v6473_v26  ;;  %v4924_v4 = vmul.f32 %v10903_v3, %v11409_v62  ;;  %v5832_v14 = vmul.f32 %v10925_v11, %v11331_v40  ;;  %v11421_v29 = vunpack.c.h.bf16 %v9517_v20  ;;  %v5958_v48 = vadd.f32 %v5830_v35, %v5440_v28  ;;  %v9520_v20 = vld [vmem:[#allocation4 + $0x1e0] sm:$0xff]  }
 0x5f7   :  { %v6474_v49 = vadd.f32 %v6346_v22, %v5957_v34  ;;  %v5441_v50 = vadd.f32 %v5313_v24, %v4923_v63  ;;  %v5315_v52 = vmul.f32 %v10907_v15, %v11381_v9  ;;  %v6349_v44 = vmul.f32 %v10933_v7, %v11291_v1 }
 0x5f8   :  { %v5442_v53 = vadd.f32 %v5314_v43, %v4924_v4  ;;  %v4925_v25 = vmul.f32 %v10903_v3, %v11421_v29  ;;  %v5833_v59 = vmul.f32 %v10925_v11, %v11341_v56  ;;  %v6475_v57 = vadd.f32 %v6347_v39, %v5958_v48  ;;  %v11473_v39 = vld [vmem:[#allocation14 + $0x2] ss:$0 sm:$0xff]  ;;  %v11481_v4 = vld [vmem:[#allocation14 + $0x3] ss:$0 sm:$0xff] }
 0x5f9   :  { %6602 = vst [vmem:[#allocation15 + $0x318] sm:$0xff] %v6474_v49  ;;  %v5959_v54 = vadd.f32 %v5831_v5, %v5441_v50  ;;  %v11431_v19 = vunpack.c.l.bf16 %v9518_v46  ;;  %v5316_v60 = vmul.f32 %v10907_v15, %v11391_v47  ;;  %v6350_v37 = vmul.f32 %v10933_v7, %v11301_v33 }
 0x5fa   :  { %v5960_v61 = vadd.f32 %v5832_v14, %v5442_v53  ;;  %v5443_v31 = vadd.f32 %v5315_v52, %v4925_v25  ;;  %v5834_v1 = vmul.f32 %v10925_v11, %v11351_v41  ;;  %6603 = vst [vmem:[#allocation15 + $0x320] sm:$0xff] %v6475_v57  ;;  %v11441_v38 = vunpack.c.h.bf16 %v9518_v46  ;;  %v9521_v46 = vld [vmem:[#allocation4 + $0x1e8] sm:$0xff]  }
 0x5fb   :  { %v6476_v0 = vadd.f32 %v6348_v45, %v5959_v54  ;;  %v4926_v10 = vmul.f32 %v10903_v3, %v11431_v19  ;;  %v5317_v13 = vmul.f32 %v10907_v15, %v11401_v23  ;;  %v6351_v55 = vmul.f32 %v10933_v7, %v11309_v18 }
 0x5fc   :  { %v6477_v2 = vadd.f32 %v6349_v44, %v5960_v61  ;;  %v5961_v42 = vadd.f32 %v5833_v59, %v5443_v31  ;;  %v5835_v33 = vmul.f32 %v10925_v11, %v11359_v51  ;;  %v4927_v3 = vmul.f32 %v11449_v17, %v11441_v38  ;;  %v9522_v61 = vld [vmem:[#allocation4 + $0x1f0] sm:$0xff]  }
 0x5fd   :  { %6604 = vst [vmem:[#allocation15 + $0x328] sm:$0xff] %v6476_v0  ;;  %v5444_v6 = vadd.f32 %v5316_v60, %v4926_v10  ;;  %v11453_v8 = vunpack.c.l.bf16 %v9519_v30  ;;  %v5318_v15 = vmul.f32 %v11455_v32, %v11409_v62  ;;  %v6352_v58 = vmul.f32 %v10933_v7, %v11321_v27 }
 0x5fe   :  { %6605 = vst [vmem:[#allocation15 + $0x330] sm:$0xff] %v6477_v2  ;;  %v6478_v18 = vadd.f32 %v6350_v37, %v5961_v42  ;;  %v5836_v36 = vmul.f32 %v10925_v11, %v11371_v12  ;;  %v11463_v22 = vunpack.c.h.bf16 %v9519_v30  ;;  %v5445_v16 = vadd.f32 %v5317_v13, %v4927_v3 }
 0x5ff   :  { %v5962_v35 = vadd.f32 %v5834_v1, %v5444_v6  ;;  %v4928_v21 = vmul.f32 %v11449_v17, %v11453_v8  ;;  %v5319_v24 = vmul.f32 %v11455_v32, %v11421_v29  ;;  %v6353_v26 = vmul.f32 %v10933_v7, %v11331_v40 }
 0x600   :  { %6606 = vst [vmem:[#allocation15 + $0x338] sm:$0xff] %v6478_v18  ;;  %v4929_v27 = vmul.f32 %v11449_v17, %v11463_v22  ;;  %v5837_v11 = vmul.f32 %v11473_v39, %v11381_v9  ;;  %v11477_v5 = vunpack.c.l.bf16 %v9520_v20  ;;  %v5963_v28 = vadd.f32 %v5835_v33, %v5445_v16 }
 0x601   :  { %v6479_v34 = vadd.f32 %v6351_v55, %v5962_v35  ;;  %v5446_v63 = vadd.f32 %v5318_v15, %v4928_v21  ;;  %v5320_v43 = vmul.f32 %v11455_v32, %v11431_v19  ;;  %v6354_v7 = vmul.f32 %v11481_v4, %v11341_v56 }
 0x602   :  { %v5447_v45 = vadd.f32 %v5319_v24, %v4929_v27  ;;  %v4930_v40 = vmul.f32 %v11449_v17, %v11477_v5  ;;  %v5838_v14 = vmul.f32 %v11473_v39, %v11391_v47  ;;  %v6480_v49 = vadd.f32 %v6352_v58, %v5963_v28 }
 0x603   :  { %6607 = vst [vmem:[#allocation15 + $0x340] sm:$0xff] %v6479_v34  ;;  %v5964_v48 = vadd.f32 %v5836_v36, %v5446_v63  ;;  %v11489_v50 = vunpack.c.h.bf16 %v9520_v20  ;;  %v5321_v52 = vmul.f32 %v11455_v32, %v11441_v38  ;;  %v6355_v56 = vmul.f32 %v11481_v4, %v11351_v41  ;;  %v9523_v36 = vld [vmem:[#allocation4 + $0x1f8] sm:$0xff]  }
 0x604   :  { %v5965_v53 = vadd.f32 %v5837_v11, %v5447_v45  ;;  %v5448_v44 = vadd.f32 %v5320_v43, %v4930_v40  ;;  %v5839_v25 = vmul.f32 %v11473_v39, %v11401_v23  ;;  %6608 = vst [vmem:[#allocation15 + $0x348] sm:$0xff] %v6480_v49  ;;  %v11499_v54 = vunpack.c.l.bf16 %v9521_v46 }
 0x605   :  { %v6481_v59 = vadd.f32 %v6353_v26, %v5964_v48  ;;  %v4931_v57 = vmul.f32 %v11449_v17, %v11489_v50  ;;  %v5322_v60 = vmul.f32 %v11455_v32, %v11453_v8  ;;  %v6356_v1 = vmul.f32 %v11481_v4, %v11359_v51 }
 0x606   :  { %v6482_v31 = vadd.f32 %v6354_v7, %v5965_v53  ;;  %v5966_v37 = vadd.f32 %v5838_v14, %v5448_v44  ;;  %v5840_v41 = vmul.f32 %v11473_v39, %v11409_v62  ;;  %v4932_v0 = vmul.f32 %v11449_v17, %v11499_v54  ;;  %v9524_v14 = vld [vmem:[#allocation4 + $0x200] sm:$0xff]  }
 0x607   :  { %6609 = vst [vmem:[#allocation15 + $0x350] sm:$0xff] %v6481_v59  ;;  %v5449_v30 = vadd.f32 %v5321_v52, %v4931_v57  ;;  %v11509_v10 = vunpack.c.h.bf16 %v9521_v46  ;;  %v5323_v13 = vmul.f32 %v11455_v32, %v11463_v22  ;;  %v6357_v42 = vmul.f32 %v11481_v4, %v11371_v12 }
 0x608   :  { %6610 = vst [vmem:[#allocation15 + $0x358] sm:$0xff] %v6482_v31  ;;  %v6483_v2 = vadd.f32 %v6355_v56, %v5966_v37  ;;  %v5841_v51 = vmul.f32 %v11473_v39, %v11421_v29  ;;  %v11517_v55 = vunpack.c.l.bf16 %v9522_v61  ;;  %v5450_v6 = vadd.f32 %v5322_v60, %v4932_v0  ;;  %v9525_v31 = vld [vmem:[#allocation4 + $0x208] sm:$0xff]  }
 0x609   :  { %v5967_v33 = vadd.f32 %v5839_v25, %v5449_v30  ;;  %v4933_v3 = vmul.f32 %v11449_v17, %v11509_v10  ;;  %v5324_v15 = vmul.f32 %v11455_v32, %v11477_v5  ;;  %v6358_v20 = vmul.f32 %v11481_v4, %v11381_v9  ;;  %v6632_v25 = vld [vmem:[#allocation3 + $0x200] sm:$0xff]   ;;  %v6634_v30 = vld [vmem:[#allocation3 + $0x208] sm:$0xff]  }
 0x60a   :  { %6611 = vst [vmem:[#allocation15 + $0x360] sm:$0xff] %v6483_v2  ;;  %v4934_v12 = vmul.f32 %v11449_v17, %v11517_v55  ;;  %v5842_v18 = vmul.f32 %v11473_v39, %v11431_v19  ;;  %v11529_v58 = vunpack.c.h.bf16 %v9522_v61  ;;  %v5968_v16 = vadd.f32 %v5840_v41, %v5450_v6 }
 0x60b   :  { %v6484_v35 = vadd.f32 %v6356_v1, %v5967_v33  ;;  %v5451_v21 = vadd.f32 %v5323_v13, %v4933_v3  ;;  %v5325_v24 = vmul.f32 %v11455_v32, %v11489_v50  ;;  %v6359_v27 = vmul.f32 %v11481_v4, %v11391_v47  ;;  %6648 = vst [vmem:[#allocation3] sm:$0xff] %v6632_v25  }
 0x60c   :  { %v5452_v26 = vadd.f32 %v5324_v15, %v4934_v12  ;;  %v4935_v9 = vmul.f32 %v11449_v17, %v11529_v58  ;;  %v5843_v11 = vmul.f32 %v11473_v39, %v11441_v38  ;;  %v6485_v34 = vadd.f32 %v6357_v42, %v5968_v16  ;;  %6650 = vst [vmem:[#allocation3 + $0x8] sm:$0xff] %v6634_v30  }
 0x60d   :  { %6612 = vst [vmem:[#allocation15 + $0x368] sm:$0xff] %v6484_v35  ;;  %v5969_v28 = vadd.f32 %v5841_v51, %v5451_v21  ;;  %v11539_v63 = vunpack.c.l.bf16 %v9523_v36  ;;  %v5326_v43 = vmul.f32 %v11455_v32, %v11499_v54  ;;  %v6360_v40 = vmul.f32 %v11481_v4, %v11401_v23  ;;  %v6636_v51 = vld [vmem:[#allocation3 + $0x210] sm:$0xff]  }
 0x60e   :  { %v5970_v45 = vadd.f32 %v5842_v18, %v5452_v26  ;;  %v5453_v7 = vadd.f32 %v5325_v24, %v4935_v9  ;;  %v5844_v47 = vmul.f32 %v11473_v39, %v11453_v8  ;;  %6613 = vst [vmem:[#allocation15 + $0x370] sm:$0xff] %v6485_v34  ;;  %v11549_v48 = vunpack.c.h.bf16 %v9523_v36  ;;  %v6638_v36 = vld [vmem:[#allocation3 + $0x218] sm:$0xff]   ;;  %v11589_v24 = vld [vmem:[#allocation4 + $0x210] sm:$0xff]   ;;  %v6640_v34 = vld [vmem:[#allocation3 + $0x220] sm:$0xff]  }
 0x60f   :  { %v6486_v46 = vadd.f32 %v6358_v20, %v5969_v28  ;;  %v4936_v49 = vmul.f32 %v11449_v17, %v11539_v63  ;;  %v5327_v52 = vmul.f32 %v11455_v32, %v11509_v10  ;;  %v6361_v56 = vmul.f32 %v11481_v4, %v11409_v62  ;;  %6652 = vst [vmem:[#allocation3 + $0x10] sm:$0xff] %v6636_v51  }
 0x610   :  { %v6487_v53 = vadd.f32 %v6359_v27, %v5970_v45  ;;  %v5971_v44 = vadd.f32 %v5843_v11, %v5453_v7  ;;  %v5845_v23 = vmul.f32 %v11473_v39, %v11463_v22  ;;  %v4937_v57 = vmul.f32 %v11449_v17, %v11549_v48  ;;  %6654 = vst [vmem:[#allocation3 + $0x18] sm:$0xff] %v6638_v36  }
 0x611   :  { %6614 = vst [vmem:[#allocation15 + $0x378] sm:$0xff] %v6486_v46  ;;  %v5454_v59 = vadd.f32 %v5326_v43, %v4936_v49  ;;  %v11559_v60 = vunpack.c.l.bf16 %v9524_v14  ;;  %v5328_v61 = vmul.f32 %v11455_v32, %v11517_v55  ;;  %v6362_v62 = vmul.f32 %v11481_v4, %v11421_v29  ;;  %v11604_v46 = vld [vmem:[#allocation4 + $0x218] sm:$0xff]  }
 0x612   :  { %6615 = vst [vmem:[#allocation15 + $0x380] sm:$0xff] %v6487_v53  ;;  %v6488_v37 = vadd.f32 %v6360_v40, %v5971_v44  ;;  %v5846_v1 = vmul.f32 %v11473_v39, %v11477_v5  ;;  %v11567_v41 = vunpack.c.h.bf16 %v9524_v14  ;;  %v5455_v13 = vadd.f32 %v5327_v52, %v4937_v57  ;;  %v6642_v44 = vld [vmem:[#allocation3 + $0x228] sm:$0xff]  }
 0x613   :  { %v5972_v0 = vadd.f32 %v5844_v47, %v5454_v59  ;;  %v4938_v2 = vmul.f32 %v11449_v17, %v11559_v60  ;;  %v5329_v42 = vmul.f32 %v11455_v32, %v11529_v58  ;;  %v6363_v29 = vmul.f32 %v11481_v4, %v11431_v19  ;;  %6656 = vst [vmem:[#allocation3 + $0x20] sm:$0xff] %v6640_v34  }
 0x614   :  { %6616 = vst [vmem:[#allocation15 + $0x388] sm:$0xff] %v6488_v37  ;;  %v4939_v33 = vmul.f32 %v11449_v17, %v11567_v41  ;;  %v5847_v6 = vmul.f32 %v11473_v39, %v11489_v50  ;;  %v11579_v3 = vunpack.c.l.bf16 %v9525_v31  ;;  %v5973_v20 = vadd.f32 %v5845_v23, %v5455_v13  ;;  %v6644_v37 = vld [vmem:[#allocation3 + $0x230] sm:$0xff]   ;;  %v6646_v13 = vld [vmem:[#allocation3 + $0x238] sm:$0xff]  }
 0x615   :  { %v6489_v15 = vadd.f32 %v6361_v56, %v5972_v0  ;;  %v5456_v12 = vadd.f32 %v5328_v61, %v4938_v2  ;;  %v5330_v18 = vmul.f32 %v11455_v32, %v11539_v63  ;;  %v6364_v19 = vmul.f32 %v11481_v4, %v11441_v38  ;;  %6658 = vst [vmem:[#allocation3 + $0x28] sm:$0xff] %v6642_v44  }
 0x616   :  { %v5457_v35 = vadd.f32 %v5329_v42, %v4939_v33  ;;  %v4940_v16 = vmul.f32 %v11449_v17, %v11579_v3  ;;  %v5848_v21 = vmul.f32 %v11473_v39, %v11499_v54  ;;  %v6490_v26 = vadd.f32 %v6362_v62, %v5973_v20  ;;  %6660 = vst [vmem:[#allocation3 + $0x30] sm:$0xff] %v6644_v37  }
 0x617   :  { %6617 = vst [vmem:[#allocation15 + $0x390] sm:$0xff] %v6489_v15  ;;  %v5974_v27 = vadd.f32 %v5846_v1, %v5456_v12  ;;  %v11591_v9 = vunpack.c.h.bf16 %v9525_v31  ;;  %v5331_v11 = vmul.f32 %v11455_v32, %v11549_v48  ;;  %v6365_v43 = vmul.f32 %v11481_v4, %v11453_v8  ;;  %v6665_v12 = vld [vmem:[#allocation4 + $0x200] sm:$0xff]  }
 0x618   :  { %v5975_v28 = vadd.f32 %v5847_v6, %v5457_v35  ;;  %v5458_v38 = vadd.f32 %v5330_v18, %v4940_v16  ;;  %v5849_v45 = vmul.f32 %v11473_v39, %v11509_v10  ;;  %6618 = vst [vmem:[#allocation15 + $0x398] sm:$0xff] %v6490_v26  ;;  %v8669_v47 = vunpack.c.l.bf16 %v11589_v24  ;;  %v6667_v26 = vld [vmem:[#allocation4 + $0x208] sm:$0xff]  }
 0x619   :  { %v6491_v7 = vadd.f32 %v6363_v29, %v5974_v27  ;;  %v4941_v40 = vmul.f32 %v11449_v17, %v11591_v9  ;;  %v5332_v14 = vmul.f32 %v11455_v32, %v11559_v60  ;;  %v6366_v8 = vmul.f32 %v11481_v4, %v11463_v22  ;;  %v9528_v29 = vld [vmem:[#allocation4 + $0x220] sm:$0xff]   ;;  %6662 = vst [vmem:[#allocation3 + $0x38] sm:$0xff] %v6646_v13  }
 0x61a   :  { %v6492_v49 = vadd.f32 %v6364_v19, %v5975_v28  ;;  %v5976_v52 = vadd.f32 %v5848_v21, %v5458_v38  ;;  %v5850_v53 = vmul.f32 %v11473_v39, %v11517_v55  ;;  %v4942_v23 = vmul.f32 %v11449_v17, %v8669_v47  ;;  %v9529_v28 = vld [vmem:[#allocation4 + $0x228] sm:$0xff]   ;;  %6681 = vst [vmem:[#allocation4] sm:$0xff] %v6665_v12  }
 0x61b   :  { %6619 = vst [vmem:[#allocation15 + $0x3a0] sm:$0xff] %v6491_v7  ;;  %v5459_v56 = vadd.f32 %v5331_v11, %v4941_v40  ;;  %v8670_v25 = vunpack.c.h.bf16 %v11589_v24  ;;  %v5333_v59 = vmul.f32 %v11455_v32, %v11567_v41  ;;  %v6367_v61 = vmul.f32 %v11481_v4, %v11477_v5 }
 0x61c   :  { %6620 = vst [vmem:[#allocation15 + $0x3a8] sm:$0xff] %v6492_v49  ;;  %v6493_v57 = vadd.f32 %v6365_v43, %v5976_v52  ;;  %v5851_v22 = vmul.f32 %v11473_v39, %v11529_v58  ;;  %v8673_v31 = vunpack.c.l.bf16 %v11604_v46  ;;  %v5460_v1 = vadd.f32 %v5332_v14, %v4942_v23  ;;  %v6671_v23 = vld [vmem:[#allocation4 + $0x218] sm:$0xff]  }
 0x61d   :  { %v5977_v62 = vadd.f32 %v5849_v45, %v5459_v56  ;;  %v4943_v30 = vmul.f32 %v11449_v17, %v8670_v25  ;;  %v5334_v0 = vmul.f32 %v11455_v32, %v11579_v3  ;;  %v6368_v2 = vmul.f32 %v11481_v4, %v11489_v50  ;;  %6683 = vst [vmem:[#allocation4 + $0x8] sm:$0xff] %v6667_v26  }
 0x61e   :  { %6621 = vst [vmem:[#allocation15 + $0x3b0] sm:$0xff] %v6493_v57  ;;  %v4944_v5 = vmul.f32 %v11449_v17, %v8673_v31  ;;  %v5852_v42 = vmul.f32 %v11473_v39, %v11539_v63  ;;  %v8674_v51 = vunpack.c.h.bf16 %v11604_v46  ;;  %v5978_v6 = vadd.f32 %v5850_v53, %v5460_v1  ;;  %v6669_v46 = vld [vmem:[#allocation4 + $0x210] sm:$0xff]   ;;  %v6675_v1 = vld [vmem:[#allocation4 + $0x228] sm:$0xff]  }
 0x61f   :  { %v6494_v33 = vadd.f32 %v6366_v8, %v5977_v62  ;;  %v5461_v15 = vadd.f32 %v5333_v59, %v4943_v30  ;;  %v5335_v20 = vmul.f32 %v11455_v32, %v11591_v9  ;;  %v6369_v50 = vmul.f32 %v11481_v4, %v11499_v54  ;;  %6685 = vst [vmem:[#allocation4 + $0x10] sm:$0xff] %v6669_v46  }
 0x620   :  { %v5462_v18 = vadd.f32 %v5334_v0, %v4944_v5  ;;  %v4945_v36 = vmul.f32 %v11449_v17, %v8674_v51  ;;  %v5853_v35 = vmul.f32 %v11473_v39, %v11549_v48  ;;  %v6495_v19 = vadd.f32 %v6367_v61, %v5978_v6  ;;  %v6673_v61 = vld [vmem:[#allocation4 + $0x220] sm:$0xff]   ;;  %6687 = vst [vmem:[#allocation4 + $0x18] sm:$0xff] %v6671_v23  }
 0x621   :  { %6622 = vst [vmem:[#allocation15 + $0x3b8] sm:$0xff] %v6494_v33  ;;  %v5979_v16 = vadd.f32 %v5851_v22, %v5461_v15  ;;  %v8677_v21 = vunpack.c.l.bf16 %v9528_v29  ;;  %v5336_v24 = vmul.f32 %v11455_v32, %v8669_v47  ;;  %v6370_v34 = vmul.f32 %v11481_v4, %v11509_v10 }
 0x622   :  { %v5980_v27 = vadd.f32 %v5852_v42, %v5462_v18  ;;  %v5463_v11 = vadd.f32 %v5335_v20, %v4945_v36  ;;  %v5854_v54 = vmul.f32 %v11473_v39, %v11559_v60  ;;  %6623 = vst [vmem:[#allocation15 + $0x3c0] sm:$0xff] %v6495_v19  ;;  %v8678_v45 = vunpack.c.h.bf16 %v9528_v29 }
 0x623   :  { %v6496_v38 = vadd.f32 %v6368_v2, %v5979_v16  ;;  %v4946_v43 = vmul.f32 %v11449_v17, %v8677_v21  ;;  %v5337_v7 = vmul.f32 %v11455_v32, %v8670_v25  ;;  %v6371_v14 = vmul.f32 %v11481_v4, %v11517_v55  ;;  %6689 = vst [vmem:[#allocation4 + $0x20] sm:$0xff] %v6673_v61   ;;  %v6679_v2 = vld [vmem:[#allocation4 + $0x238] sm:$0xff]  }
 0x624   :  { %v6497_v40 = vadd.f32 %v6369_v50, %v5980_v27  ;;  %v5981_v47 = vadd.f32 %v5853_v35, %v5463_v11  ;;  %v5855_v10 = vmul.f32 %v11473_v39, %v11567_v41  ;;  %v4947_v49 = vmul.f32 %v11449_v17, %v8678_v45  ;;  %6691 = vst [vmem:[#allocation4 + $0x28] sm:$0xff] %v6675_v1  }
 0x625   :  { %6624 = vst [vmem:[#allocation15 + $0x3c8] sm:$0xff] %v6496_v38  ;;  %v5464_v60 = vadd.f32 %v5336_v24, %v4946_v43  ;;  %v8681_v52 = vunpack.c.l.bf16 %v9529_v28  ;;  %v5338_v8 = vmul.f32 %v11455_v32, %v8673_v31  ;;  %v6372_v44 = vmul.f32 %v11481_v4, %v11529_v58 }
 0x626   :  { %6625 = vst [vmem:[#allocation15 + $0x3d0] sm:$0xff] %v6497_v40  ;;  %v6498_v53 = vadd.f32 %v6370_v34, %v5981_v47  ;;  %v5856_v55 = vmul.f32 %v11473_v39, %v11579_v3  ;;  %v8682_v56 = vunpack.c.h.bf16 %v9529_v28  ;;  %v5465_v25 = vadd.f32 %v5337_v7, %v4947_v49 }
 0x627   :  { %v5982_v41 = vadd.f32 %v5854_v54, %v5464_v60  ;;  %v4948_v59 = vmul.f32 %v11449_v17, %v8681_v52  ;;  %v5339_v57 = vmul.f32 %v11455_v32, %v8674_v51  ;;  %v5857_v31 = vmul.f32 %v11473_v39, %v11591_v9  ;;  %6695 = vst [vmem:[#allocation4 + $0x38] sm:$0xff] %v6679_v2  }
 0x628   :  { %6626 = vst [vmem:[#allocation15 + $0x3d8] sm:$0xff] %v6498_v53  ;;  %v4949_v22 = vmul.f32 %v11449_v17, %v8682_v56  ;;  %v5983_v37 = vadd.f32 %v5855_v10, %v5465_v25  ;;  %v6373_v3 = vmul.f32 %v11481_v4, %v11539_v63  ;;  %v6374_v32 = vmul.f32 %v11481_v4, %v11549_v48  ;;  %v6677_v17 = vld [vmem:[#allocation4 + $0x230] sm:$0xff]  }
 0x629   :  { %v6499_v58 = vadd.f32 %v6371_v14, %v5982_v41  ;;  %v5466_v62 = vadd.f32 %v5338_v8, %v4948_v59  ;;  %6693 = vst [vmem:[#allocation4 + $0x30] sm:$0xff] %v6677_v17  }
 0x62a   :  { %v5467_v30 = vadd.f32 %v5339_v57, %v4949_v22  ;;  %v6500_v0 = vadd.f32 %v6372_v44, %v5983_v37 }
 0x62b   :  { %6627 = vst [vmem:[#allocation15 + $0x3e0] sm:$0xff] %v6499_v58  ;;  %v5984_v13 = vadd.f32 %v5856_v55, %v5466_v62 }
 0x62c   :  { %v5985_v39 = vadd.f32 %v5857_v31, %v5467_v30  ;;  %6628 = vst [vmem:[#allocation15 + $0x3e8] sm:$0xff] %v6500_v0 }
 0x62d   :  { %v6501_v63 = vadd.f32 %v6373_v3, %v5984_v13 }
 0x62e   :  { %v6502_v9 = vadd.f32 %v6374_v32, %v5985_v39 }
 0x62f   :  { %6629 = vst [vmem:[#allocation15 + $0x3f0] sm:$0xff] %v6501_v63 }
 0x630   :  { %6630 = vst [vmem:[#allocation15 + $0x3f8] sm:$0xff] %v6502_v9 }
 0x631   :  { %6709 = dma.vmem_to_hbm [thread:$0]  %s6702_s14, 16384, %s6704_s17, [#allocation11], %s10139_s24, %s10139_s24, %s10140_s25  }
 0x632   :  { %10061 = dma.done.wait [#allocation11], 16384  }
 0x633   :  { %10062 = vsyncadd [#allocation11], 4294950912 }
 0x634   :  { %6714 = vsyncpa [#allocation10], 1 }
 0x635   :  { %6715 = vsyncpa [#allocation13], 1 }
 0x636   :  { %6716 = vsyncpa [#allocation11], 1 }

</bundles_post_ra>
